<compile_context>
chip_gen: v5e
topology: v5e:2x2
jax: 0.10.0
libtpu: 0.0.40
codegen_flags: <defaults>
</compile_context>

<pallas_src>
import math
from functools import partial

import jax
import jax.numpy as jnp
from jax import lax
from jax.experimental import pallas as pl
from jax.experimental.pallas import tpu as pltpu

# ---------------- model hyper-parameters (small) ----------------
B = 2            # batch_size
T = 16           # sent_token_len
LW = 8           # sent_len (number of words)
H = 128          # hidden_dim (model.config.hidden_size)
NH = 4           # attention heads
HD = H // NH
F = 256          # FFN intermediate size
L = 8            # label_size
LPAD = 128       # lane-dense padded label dim for the logits store
VOCAB = 64
TYPE_VOCAB = 2
MAX_POS = 32
TAU = 0.5        # config.tau
TEMP = 0.05      # Similarity temperature
CONTRASTIVE = True


# ---------------- the fused Pallas kernel ----------------
def fused_kernel(x_ref, bias_ref, gmat_ref, s1_ref, s2_ref,
                 embg_ref, embb_ref,
                 wqkv_ref, bqkv_ref,
                 wo_ref, bo_ref,
                 ln1g_ref, ln1b_ref,
                 w1_ref, b1_ref, w2_ref, b2_ref,
                 ln2g_ref, ln2b_ref,
                 tagw_ref, tagp_ref,
                 mlpw_ref, mlpb_ref,
                 logits_ref, loss_ref):
    """Embeddings-LN -> 1 BERT layer -> gather+hidden2tag -> contrastive loss."""
    f32 = jnp.float32
    bf16 = jnp.bfloat16

    def layer_norm(h, g, b):
        mu = jnp.mean(h, axis=-1, keepdims=True)
        var = jnp.mean(jnp.square(h - mu), axis=-1, keepdims=True)
        return (h - mu) * lax.rsqrt(var + 1e-12) * g + b

    x = x_ref[...]                                            # (N, H) f32, N = nb*T
    h0 = layer_norm(x, embg_ref[...], embb_ref[...])          # embedding LayerNorm
    h0b = h0.astype(bf16)

    bias = bias_ref[...]                                      # (N, N) block-diag + pad mask
    scale = 1.0 / math.sqrt(HD)

    # ---- multi-head self-attention over the folded slab ----
    # One fused lane-dense QKV projection: (N, H) x (H, 3H) -> (N, 3H).
    qkv = jnp.dot(h0b, wqkv_ref[...], preferred_element_type=f32) + bqkv_ref[...]

    ctx_heads = []
    for hh in range(NH):                                      # static, unrolled
        lo = hh * HD
        q = qkv[:, lo:lo + HD]                                # (N, HD) f32 lane slices
        k = qkv[:, H + lo:H + lo + HD]
        v = qkv[:, 2 * H + lo:2 * H + lo + HD]
        s = lax.dot_general(q, k, (((1,), (1,)), ((), ())),
                            preferred_element_type=f32) * scale + bias          # (N, N)
        s = s - jnp.max(s, axis=-1, keepdims=True)
        p = jnp.exp(s)
        p = p * pl.reciprocal(jnp.sum(p, axis=-1, keepdims=True), approx=True)
        ctx_heads.append(jnp.dot(p.astype(bf16), v.astype(bf16),
                                 preferred_element_type=f32))                    # (N, HD)
    ctx = jnp.concatenate(ctx_heads, axis=-1)                                    # (N, H)
    attn = jnp.dot(ctx.astype(bf16), wo_ref[...],
                   preferred_element_type=f32) + bo_ref[...]                     # (N, H)

    h1 = layer_norm(h0 + attn, ln1g_ref[...], ln1b_ref[...])

    # ---- feed-forward ----
    h1b = h1.astype(bf16)
    ff = jnp.dot(h1b, w1_ref[...], preferred_element_type=f32) + b1_ref[...]
    ff = jax.nn.gelu(ff)
    ff = jnp.dot(ff.astype(bf16), w2_ref[...], preferred_element_type=f32) + b2_ref[...]
    h2 = layer_norm(h1 + ff, ln2g_ref[...], ln2b_ref[...])    # word_rep, (N, H)
    h2b = h2.astype(bf16)

    # ---- torch.gather(word_rep[0::2], token2word_ids) + hidden2tag + tau*log(ent_freq) ----
    gathered = jnp.dot(gmat_ref[...], h2b, preferred_element_type=f32)           # (B*LW, H)
    logits = jnp.dot(gathered.astype(bf16), tagw_ref[...],
                     preferred_element_type=f32) + tagp_ref[...]                 # (B*LW, LPAD)
    logits_ref[...] = logits                                  # lane-dense store

    # ---- contrastive: CLS select -> MLP(tanh) -> cosine sim / temp -> CE(arange) ----
    z1in = jnp.dot(s1_ref[...], h2b, preferred_element_type=f32)                 # (B, H)
    z2in = jnp.dot(s2_ref[...], h2b, preferred_element_type=f32)
    mw = mlpw_ref[...]
    mb = mlpb_ref[...]
    z1 = jnp.tanh(jnp.dot(z1in.astype(bf16), mw, preferred_element_type=f32) + mb)
    z2 = jnp.tanh(jnp.dot(z2in.astype(bf16), mw, preferred_element_type=f32) + mb)
    n1 = jnp.sum(z1 * z1, axis=-1, keepdims=True)
    n2 = jnp.sum(z2 * z2, axis=-1, keepdims=True)
    z1n = z1 * lax.rsqrt(jnp.maximum(n1, 1e-16))
    z2n = z2 * lax.rsqrt(jnp.maximum(n2, 1e-16))
    sim = lax.dot_general(z1n, z2n, (((1,), (1,)), ((), ())),
                          preferred_element_type=f32) / TEMP                     # (B, B)
    m = jnp.max(sim, axis=-1, keepdims=True)
    lse = m + jnp.log(jnp.sum(jnp.exp(sim - m), axis=-1, keepdims=True))         # (B, 1)
    eye = (lax.broadcasted_iota(jnp.int32, sim.shape, 0)
           == lax.broadcasted_iota(jnp.int32, sim.shape, 1)).astype(f32)
    diag = jnp.sum(sim * eye, axis=-1, keepdims=True)                            # (B, 1)
    loss_ref[...] = jnp.mean(lse - diag, keepdims=True)                          # (1, 1)


# ---------------- wrapper (single pallas_call) ----------------
def _fs(shape):
    nd = len(shape)
    return pl.BlockSpec(shape, lambda *_: (0,) * nd)


def trans_encoder_forward(p, input_ids, attention_mask, token2word_ids):
    bf = lambda a: a.astype(jnp.bfloat16)

    if CONTRASTIVE:
        ids = jnp.repeat(input_ids, 2, axis=0)                  # [2i] = [2i+1] = input[i]
        am = jnp.repeat(attention_mask, 2, axis=0)
        stride = 2
    else:
        ids, am, stride = input_ids, attention_mask, 1
    nb = ids.shape[0]
    N = nb * T

    # embeddings (word + position + type), folded to (N, H)
    word_e = jnp.take(p["word_emb"], ids, axis=0)               # (nb, T, H)
    pos_e = p["pos_emb"][:T][None, :, :]
    type_e = p["type_emb"][0][None, None, :]                    # token_type_ids == 0
    x = (word_e + pos_e + type_e).reshape(N, H).astype(jnp.float32)

    # additive attention bias: block-diagonal across sentences + key-padding mask
    sent = jnp.arange(N, dtype=jnp.int32) // T
    keyok = am.reshape(N).astype(jnp.int32) > 0
    keep = (sent[:, None] == sent[None, :]) & keyok[None, :]
    attn_bias = jnp.where(keep, 0.0, -1e9).astype(jnp.float32)  # (N, N)

    # gather matrix: word (b, w) <- folded row stride*b*T + token2word_ids[b, w]
    rows = stride * jnp.arange(B, dtype=jnp.int32)[:, None] * T + token2word_ids.astype(jnp.int32)
    gmat = jax.nn.one_hot(rows.reshape(-1), N, dtype=jnp.bfloat16)       # (B*LW, N)

    # CLS selectors (pooler rows for the two augmented copies)
    s1 = jax.nn.one_hot(stride * jnp.arange(B, dtype=jnp.int32) * T, N, dtype=jnp.bfloat16)
    s2 = jax.nn.one_hot((stride * jnp.arange(B, dtype=jnp.int32) + (stride - 1)) * T,
                        N, dtype=jnp.bfloat16)

    # fused QKV weight / bias (lane-dense 3H output)
    wqkv = jnp.concatenate([p["wq"], p["wk"], p["wv"]], axis=1)          # (H, 3H)
    bqkv = jnp.concatenate([p["bq"], p["bk"], p["bv"]], axis=1)          # (1, 3H)

    # hidden2tag weight / (bias + tau*log(ent_freq)) padded to a lane-dense 128 slab
    tag_prior = p["tag_b"]
    if TAU > 0:
        tag_prior = tag_prior + TAU * jnp.log(p["ent_freq"] + 1e-12)
    tag_w_pad = jnp.zeros((H, LPAD), jnp.bfloat16).at[:, :L].set(bf(p["tag_w"]))
    tag_prior_pad = jnp.zeros((1, LPAD), jnp.float32).at[:, :L].set(tag_prior)

    in_specs = [
        _fs((N, H)), _fs((N, N)), _fs((B * LW, N)), _fs((B, N)), _fs((B, N)),
        _fs((1, H)), _fs((1, H)),
        _fs((H, 3 * H)), _fs((1, 3 * H)),
        _fs((H, H)), _fs((1, H)),
        _fs((1, H)), _fs((1, H)),
        _fs((H, F)), _fs((1, F)), _fs((F, H)), _fs((1, H)),
        _fs((1, H)), _fs((1, H)),
        _fs((H, LPAD)), _fs((1, LPAD)),
        _fs((H, H)), _fs((1, H)),
    ]

    logits_pad, loss = pl.pallas_call(
        fused_kernel,
        out_shape=(jax.ShapeDtypeStruct((B * LW, LPAD), jnp.float32),
                   jax.ShapeDtypeStruct((1, 1), jnp.float32)),
        grid=(1,),
        in_specs=in_specs,
        out_specs=(_fs((B * LW, LPAD)), _fs((1, 1))),
        compiler_params=pltpu.CompilerParams(dimension_semantics=("arbitrary",)),
    )(x, attn_bias, gmat, s1, s2,
      p["emb_g"], p["emb_b"],
      bf(wqkv), bqkv,
      bf(p["wo"]), p["bo"],
      p["ln1_g"], p["ln1_b"],
      bf(p["w1"]), p["b1"], bf(p["w2"]), p["b2"],
      p["ln2_g"], p["ln2_b"],
      tag_w_pad, tag_prior_pad,
      bf(p["mlp_w"]), p["mlp_b"])

    outputs = logits_pad[:, :L].reshape(B, LW, L)
    contrastive_loss = loss[0, 0] if CONTRASTIVE else jnp.float32(0.0)
    return outputs, contrastive_loss


# ---------------- deterministic parameter init ----------------
def init_params(key):
    ks = jax.random.split(key, 12)
    std = 0.02
    return {
        "word_emb": jax.random.normal(ks[0], (VOCAB, H), jnp.float32) * std,
        "pos_emb": jax.random.normal(ks[1], (MAX_POS, H), jnp.float32) * std,
        "type_emb": jax.random.normal(ks[2], (TYPE_VOCAB, H), jnp.float32) * std,
        "emb_g": jnp.ones((1, H), jnp.float32),
        "emb_b": jnp.zeros((1, H), jnp.float32),
        # full attention projection weights (H, H); head hh uses columns [hh*HD, (hh+1)*HD)
        "wq": jax.random.normal(ks[3], (H, H), jnp.float32) * std,
        "wk": jax.random.normal(ks[4], (H, H), jnp.float32) * std,
        "wv": jax.random.normal(ks[5], (H, H), jnp.float32) * std,
        "bq": jnp.zeros((1, H), jnp.float32),
        "bk": jnp.zeros((1, H), jnp.float32),
        "bv": jnp.zeros((1, H), jnp.float32),
        "wo": jax.random.normal(ks[6], (H, H), jnp.float32) * std,
        "bo": jnp.zeros((1, H), jnp.float32),
        "ln1_g": jnp.ones((1, H), jnp.float32),
        "ln1_b": jnp.zeros((1, H), jnp.float32),
        "w1": jax.random.normal(ks[7], (H, F), jnp.float32) * std,
        "b1": jnp.zeros((1, F), jnp.float32),
        "w2": jax.random.normal(ks[8], (F, H), jnp.float32) * std,
        "b2": jnp.zeros((1, H), jnp.float32),
        "ln2_g": jnp.ones((1, H), jnp.float32),
        "ln2_b": jnp.zeros((1, H), jnp.float32),
        "mlp_w": jax.random.normal(ks[9], (H, H), jnp.float32) * std,   # MLPLayer.dense
        "mlp_b": jnp.zeros((1, H), jnp.float32),
        "tag_w": jax.random.normal(ks[10], (H, L), jnp.float32) * std,  # hidden2tag
        "tag_b": jnp.zeros((1, L), jnp.float32),
        # ent_freq: positive counts, used as tau * log(ent_freq + 1e-12)
        "ent_freq": (jnp.arange(1, L + 1, dtype=jnp.float32) * 3.0).reshape(1, L),
    }


if __name__ == "__main__":
    key = jax.random.PRNGKey(0)
    kp, k1, k2 = jax.random.split(key, 3)
    params = init_params(kp)

    input_ids = jax.random.randint(k1, (B, T), 0, VOCAB, dtype=jnp.int32)
    lens = jnp.array([T, T - 4], dtype=jnp.int32)
    attention_mask = (jnp.arange(T)[None, :] < lens[:, None]).astype(jnp.int32)
    token2word_ids = jax.random.randint(k2, (B, LW), 0, T - 4, dtype=jnp.int32)

    fwd = jax.jit(partial(trans_encoder_forward, params))
    outputs, closs = fwd(input_ids, attention_mask, token2word_ids)
    jax.block_until_ready((outputs, closs))

    assert outputs.shape == (B, LW, L), outputs.shape
    assert bool(jnp.all(jnp.isfinite(outputs))) and bool(jnp.isfinite(closs))
    print("KERNEL_OK")
</pallas_src>

<mosaic_0001>
module attributes {stable_mosaic.version = 11 : i64} {
  func.func @fused_kernel(%arg0: i32, %arg1: memref<64x128xf32, #tpu.memory_space<vmem>>, %arg2: memref<64x64xf32, #tpu.memory_space<vmem>>, %arg3: memref<16x64xbf16, #tpu.memory_space<vmem>>, %arg4: memref<2x64xbf16, #tpu.memory_space<vmem>>, %arg5: memref<2x64xbf16, #tpu.memory_space<vmem>>, %arg6: memref<1x128xf32, #tpu.memory_space<vmem>>, %arg7: memref<1x128xf32, #tpu.memory_space<vmem>>, %arg8: memref<128x384xbf16, #tpu.memory_space<vmem>>, %arg9: memref<1x384xf32, #tpu.memory_space<vmem>>, %arg10: memref<128x128xbf16, #tpu.memory_space<vmem>>, %arg11: memref<1x128xf32, #tpu.memory_space<vmem>>, %arg12: memref<1x128xf32, #tpu.memory_space<vmem>>, %arg13: memref<1x128xf32, #tpu.memory_space<vmem>>, %arg14: memref<128x256xbf16, #tpu.memory_space<vmem>>, %arg15: memref<1x256xf32, #tpu.memory_space<vmem>>, %arg16: memref<256x128xbf16, #tpu.memory_space<vmem>>, %arg17: memref<1x128xf32, #tpu.memory_space<vmem>>, %arg18: memref<1x128xf32, #tpu.memory_space<vmem>>, %arg19: memref<1x128xf32, #tpu.memory_space<vmem>>, %arg20: memref<128x128xbf16, #tpu.memory_space<vmem>>, %arg21: memref<1x128xf32, #tpu.memory_space<vmem>>, %arg22: memref<128x128xbf16, #tpu.memory_space<vmem>>, %arg23: memref<1x128xf32, #tpu.memory_space<vmem>>, %arg24: memref<16x128xf32, #tpu.memory_space<vmem>>, %arg25: memref<1x1xf32, #tpu.memory_space<vmem>>) attributes {dimension_semantics = [#tpu.dimension_semantics<arbitrary>], iteration_bounds = array<i64: 1>, scalar_prefetch = 0 : i64, scratch_operands = 0 : i64, tpu.core_type = #tpu.core_type<tc>, window_params = [{pipeline_mode = #tpu.pipeline_mode<synchronous>, transform_indices = @transform_0, window_bounds = array<i64: 64, 128>}, {pipeline_mode = #tpu.pipeline_mode<synchronous>, transform_indices = @transform_1, window_bounds = array<i64: 64, 64>}, {pipeline_mode = #tpu.pipeline_mode<synchronous>, transform_indices = @transform_2, window_bounds = array<i64: 16, 64>}, {pipeline_mode = #tpu.pipeline_mode<synchronous>, transform_indices = @transform_3, window_bounds = array<i64: 2, 64>}, {pipeline_mode = #tpu.pipeline_mode<synchronous>, transform_indices = @transform_4, window_bounds = array<i64: 2, 64>}, {pipeline_mode = #tpu.pipeline_mode<synchronous>, transform_indices = @transform_5, window_bounds = array<i64: 1, 128>}, {pipeline_mode = #tpu.pipeline_mode<synchronous>, transform_indices = @transform_6, window_bounds = array<i64: 1, 128>}, {pipeline_mode = #tpu.pipeline_mode<synchronous>, transform_indices = @transform_7, window_bounds = array<i64: 128, 384>}, {pipeline_mode = #tpu.pipeline_mode<synchronous>, transform_indices = @transform_8, window_bounds = array<i64: 1, 384>}, {pipeline_mode = #tpu.pipeline_mode<synchronous>, transform_indices = @transform_9, window_bounds = array<i64: 128, 128>}, {pipeline_mode = #tpu.pipeline_mode<synchronous>, transform_indices = @transform_10, window_bounds = array<i64: 1, 128>}, {pipeline_mode = #tpu.pipeline_mode<synchronous>, transform_indices = @transform_11, window_bounds = array<i64: 1, 128>}, {pipeline_mode = #tpu.pipeline_mode<synchronous>, transform_indices = @transform_12, window_bounds = array<i64: 1, 128>}, {pipeline_mode = #tpu.pipeline_mode<synchronous>, transform_indices = @transform_13, window_bounds = array<i64: 128, 256>}, {pipeline_mode = #tpu.pipeline_mode<synchronous>, transform_indices = @transform_14, window_bounds = array<i64: 1, 256>}, {pipeline_mode = #tpu.pipeline_mode<synchronous>, transform_indices = @transform_15, window_bounds = array<i64: 256, 128>}, {pipeline_mode = #tpu.pipeline_mode<synchronous>, transform_indices = @transform_16, window_bounds = array<i64: 1, 128>}, {pipeline_mode = #tpu.pipeline_mode<synchronous>, transform_indices = @transform_17, window_bounds = array<i64: 1, 128>}, {pipeline_mode = #tpu.pipeline_mode<synchronous>, transform_indices = @transform_18, window_bounds = array<i64: 1, 128>}, {pipeline_mode = #tpu.pipeline_mode<synchronous>, transform_indices = @transform_19, window_bounds = array<i64: 128, 128>}, {pipeline_mode = #tpu.pipeline_mode<synchronous>, transform_indices = @transform_20, window_bounds = array<i64: 1, 128>}, {pipeline_mode = #tpu.pipeline_mode<synchronous>, transform_indices = @transform_21, window_bounds = array<i64: 128, 128>}, {pipeline_mode = #tpu.pipeline_mode<synchronous>, transform_indices = @transform_22, window_bounds = array<i64: 1, 128>}, {pipeline_mode = #tpu.pipeline_mode<synchronous>, transform_indices = @transform_23, window_bounds = array<i64: 16, 128>}, {pipeline_mode = #tpu.pipeline_mode<synchronous>, transform_indices = @transform_24, window_bounds = array<i64: 1, 1>}]} {
    %c0 = arith.constant 0 : index
    %c0_0 = arith.constant 0 : index
    %0 = vector.load %arg1[%c0, %c0_0] : memref<64x128xf32, #tpu.memory_space<vmem>>, vector<64x128xf32>
    %c0_1 = arith.constant 0 : index
    %c0_2 = arith.constant 0 : index
    %1 = vector.load %arg6[%c0_1, %c0_2] : memref<1x128xf32, #tpu.memory_space<vmem>>, vector<1x128xf32>
    %c0_3 = arith.constant 0 : index
    %c0_4 = arith.constant 0 : index
    %2 = vector.load %arg7[%c0_3, %c0_4] : memref<1x128xf32, #tpu.memory_space<vmem>>, vector<1x128xf32>
    %cst = arith.constant dense<0.000000e+00> : vector<64xf32>
    %3 = vector.multi_reduction <add>, %0, %cst [1] : vector<64x128xf32> to vector<64xf32>
    %4 = vector.shape_cast %3 : vector<64xf32> to vector<64x1xf32>
    %cst_5 = arith.constant 1.280000e+02 : f32
    %5 = vector.broadcast %cst_5 : f32 to vector<64x1xf32>
    %6 = arith.divf %4, %5 : vector<64x1xf32>
    %7 = vector.broadcast %6 : vector<64x1xf32> to vector<64x128xf32>
    %8 = arith.subf %0, %7 : vector<64x128xf32>
    %9 = arith.mulf %8, %8 : vector<64x128xf32>
    %cst_6 = arith.constant dense<0.000000e+00> : vector<64xf32>
    %10 = vector.multi_reduction <add>, %9, %cst_6 [1] : vector<64x128xf32> to vector<64xf32>
    %11 = vector.shape_cast %10 : vector<64xf32> to vector<64x1xf32>
    %cst_7 = arith.constant 1.280000e+02 : f32
    %12 = vector.broadcast %cst_7 : f32 to vector<64x1xf32>
    %13 = arith.divf %11, %12 : vector<64x1xf32>
    %14 = vector.broadcast %6 : vector<64x1xf32> to vector<64x128xf32>
    %15 = arith.subf %0, %14 : vector<64x128xf32>
    %cst_8 = arith.constant 9.99999996E-13 : f32
    %16 = vector.broadcast %cst_8 : f32 to vector<64x1xf32>
    %17 = arith.addf %13, %16 : vector<64x1xf32>
    %18 = math.rsqrt %17 : vector<64x1xf32>
    %19 = vector.broadcast %18 : vector<64x1xf32> to vector<64x128xf32>
    %20 = arith.mulf %15, %19 : vector<64x128xf32>
    %21 = vector.broadcast %1 : vector<1x128xf32> to vector<64x128xf32>
    %22 = arith.mulf %20, %21 : vector<64x128xf32>
    %23 = vector.broadcast %2 : vector<1x128xf32> to vector<64x128xf32>
    %24 = arith.addf %22, %23 : vector<64x128xf32>
    %25 = arith.truncf %24 : vector<64x128xf32> to vector<64x128xbf16>
    %c0_9 = arith.constant 0 : index
    %c0_10 = arith.constant 0 : index
    %26 = vector.load %arg2[%c0_9, %c0_10] : memref<64x64xf32, #tpu.memory_space<vmem>>, vector<64x64xf32>
    %c0_11 = arith.constant 0 : index
    %c0_12 = arith.constant 0 : index
    %27 = vector.load %arg8[%c0_11, %c0_12] : memref<128x384xbf16, #tpu.memory_space<vmem>>, vector<128x384xbf16>
    %cst_13 = arith.constant dense<0.000000e+00> : vector<64x384xf32>
    %28 = tpu.matmul %25, %27, %cst_13 {dimension_numbers = #tpu.dot_dimension_numbers<[1], [0], [0], [1], [0, 0, 1, 1], [], []>} : vector<64x128xbf16>, vector<128x384xbf16>, vector<64x384xf32> -> vector<64x384xf32>
    %c0_14 = arith.constant 0 : index
    %c0_15 = arith.constant 0 : index
    %29 = vector.load %arg9[%c0_14, %c0_15] : memref<1x384xf32, #tpu.memory_space<vmem>>, vector<1x384xf32>
    %30 = vector.broadcast %29 : vector<1x384xf32> to vector<64x384xf32>
    %31 = arith.addf %28, %30 : vector<64x384xf32>
    %32 = vector.extract_strided_slice %31 {offsets = [0, 0], sizes = [64, 32], strides = [1, 1]} : vector<64x384xf32> to vector<64x32xf32>
    %33 = vector.extract_strided_slice %31 {offsets = [0, 128], sizes = [64, 32], strides = [1, 1]} : vector<64x384xf32> to vector<64x32xf32>
    %34 = vector.extract_strided_slice %31 {offsets = [0, 256], sizes = [64, 32], strides = [1, 1]} : vector<64x384xf32> to vector<64x32xf32>
    %cst_16 = arith.constant dense<0.000000e+00> : vector<64x64xf32>
    %35 = tpu.matmul %32, %33, %cst_16 {dimension_numbers = #tpu.dot_dimension_numbers<[1], [1], [0], [0], [0, 0, 1, 0], [], []>} : vector<64x32xf32>, vector<64x32xf32>, vector<64x64xf32> -> vector<64x64xf32>
    %cst_17 = arith.constant 0.176776692 : f32
    %36 = vector.broadcast %cst_17 : f32 to vector<64x64xf32>
    %37 = arith.mulf %35, %36 : vector<64x64xf32>
    %38 = arith.addf %37, %26 : vector<64x64xf32>
    %cst_18 = arith.constant dense<0xFF800000> : vector<64xf32>
    %39 = vector.multi_reduction <maximumf>, %38, %cst_18 [1] : vector<64x64xf32> to vector<64xf32>
    %40 = vector.shape_cast %39 : vector<64xf32> to vector<64x1xf32>
    %41 = vector.broadcast %40 : vector<64x1xf32> to vector<64x64xf32>
    %42 = arith.subf %38, %41 : vector<64x64xf32>
    %43 = math.exp %42 : vector<64x64xf32>
    %cst_19 = arith.constant dense<0.000000e+00> : vector<64xf32>
    %44 = vector.multi_reduction <add>, %43, %cst_19 [1] : vector<64x64xf32> to vector<64xf32>
    %45 = vector.shape_cast %44 : vector<64xf32> to vector<64x1xf32>
    %46 = tpu.reciprocal %45 {approx = true} : vector<64x1xf32> -> vector<64x1xf32>
    %47 = vector.broadcast %46 : vector<64x1xf32> to vector<64x64xf32>
    %48 = arith.mulf %43, %47 : vector<64x64xf32>
    %49 = arith.truncf %48 : vector<64x64xf32> to vector<64x64xbf16>
    %50 = arith.truncf %34 : vector<64x32xf32> to vector<64x32xbf16>
    %cst_20 = arith.constant dense<0.000000e+00> : vector<64x32xf32>
    %51 = tpu.matmul %49, %50, %cst_20 {dimension_numbers = #tpu.dot_dimension_numbers<[1], [0], [0], [1], [0, 0, 1, 1], [], []>} : vector<64x64xbf16>, vector<64x32xbf16>, vector<64x32xf32> -> vector<64x32xf32>
    %52 = vector.extract_strided_slice %31 {offsets = [0, 32], sizes = [64, 32], strides = [1, 1]} : vector<64x384xf32> to vector<64x32xf32>
    %53 = vector.extract_strided_slice %31 {offsets = [0, 160], sizes = [64, 32], strides = [1, 1]} : vector<64x384xf32> to vector<64x32xf32>
    %54 = vector.extract_strided_slice %31 {offsets = [0, 288], sizes = [64, 32], strides = [1, 1]} : vector<64x384xf32> to vector<64x32xf32>
    %cst_21 = arith.constant dense<0.000000e+00> : vector<64x64xf32>
    %55 = tpu.matmul %52, %53, %cst_21 {dimension_numbers = #tpu.dot_dimension_numbers<[1], [1], [0], [0], [0, 0, 1, 0], [], []>} : vector<64x32xf32>, vector<64x32xf32>, vector<64x64xf32> -> vector<64x64xf32>
    %cst_22 = arith.constant 0.176776692 : f32
    %56 = vector.broadcast %cst_22 : f32 to vector<64x64xf32>
    %57 = arith.mulf %55, %56 : vector<64x64xf32>
    %58 = arith.addf %57, %26 : vector<64x64xf32>
    %cst_23 = arith.constant dense<0xFF800000> : vector<64xf32>
    %59 = vector.multi_reduction <maximumf>, %58, %cst_23 [1] : vector<64x64xf32> to vector<64xf32>
    %60 = vector.shape_cast %59 : vector<64xf32> to vector<64x1xf32>
    %61 = vector.broadcast %60 : vector<64x1xf32> to vector<64x64xf32>
    %62 = arith.subf %58, %61 : vector<64x64xf32>
    %63 = math.exp %62 : vector<64x64xf32>
    %cst_24 = arith.constant dense<0.000000e+00> : vector<64xf32>
    %64 = vector.multi_reduction <add>, %63, %cst_24 [1] : vector<64x64xf32> to vector<64xf32>
    %65 = vector.shape_cast %64 : vector<64xf32> to vector<64x1xf32>
    %66 = tpu.reciprocal %65 {approx = true} : vector<64x1xf32> -> vector<64x1xf32>
    %67 = vector.broadcast %66 : vector<64x1xf32> to vector<64x64xf32>
    %68 = arith.mulf %63, %67 : vector<64x64xf32>
    %69 = arith.truncf %68 : vector<64x64xf32> to vector<64x64xbf16>
    %70 = arith.truncf %54 : vector<64x32xf32> to vector<64x32xbf16>
    %cst_25 = arith.constant dense<0.000000e+00> : vector<64x32xf32>
    %71 = tpu.matmul %69, %70, %cst_25 {dimension_numbers = #tpu.dot_dimension_numbers<[1], [0], [0], [1], [0, 0, 1, 1], [], []>} : vector<64x64xbf16>, vector<64x32xbf16>, vector<64x32xf32> -> vector<64x32xf32>
    %72 = vector.extract_strided_slice %31 {offsets = [0, 64], sizes = [64, 32], strides = [1, 1]} : vector<64x384xf32> to vector<64x32xf32>
    %73 = vector.extract_strided_slice %31 {offsets = [0, 192], sizes = [64, 32], strides = [1, 1]} : vector<64x384xf32> to vector<64x32xf32>
    %74 = vector.extract_strided_slice %31 {offsets = [0, 320], sizes = [64, 32], strides = [1, 1]} : vector<64x384xf32> to vector<64x32xf32>
    %cst_26 = arith.constant dense<0.000000e+00> : vector<64x64xf32>
    %75 = tpu.matmul %72, %73, %cst_26 {dimension_numbers = #tpu.dot_dimension_numbers<[1], [1], [0], [0], [0, 0, 1, 0], [], []>} : vector<64x32xf32>, vector<64x32xf32>, vector<64x64xf32> -> vector<64x64xf32>
    %cst_27 = arith.constant 0.176776692 : f32
    %76 = vector.broadcast %cst_27 : f32 to vector<64x64xf32>
    %77 = arith.mulf %75, %76 : vector<64x64xf32>
    %78 = arith.addf %77, %26 : vector<64x64xf32>
    %cst_28 = arith.constant dense<0xFF800000> : vector<64xf32>
    %79 = vector.multi_reduction <maximumf>, %78, %cst_28 [1] : vector<64x64xf32> to vector<64xf32>
    %80 = vector.shape_cast %79 : vector<64xf32> to vector<64x1xf32>
    %81 = vector.broadcast %80 : vector<64x1xf32> to vector<64x64xf32>
    %82 = arith.subf %78, %81 : vector<64x64xf32>
    %83 = math.exp %82 : vector<64x64xf32>
    %cst_29 = arith.constant dense<0.000000e+00> : vector<64xf32>
    %84 = vector.multi_reduction <add>, %83, %cst_29 [1] : vector<64x64xf32> to vector<64xf32>
    %85 = vector.shape_cast %84 : vector<64xf32> to vector<64x1xf32>
    %86 = tpu.reciprocal %85 {approx = true} : vector<64x1xf32> -> vector<64x1xf32>
    %87 = vector.broadcast %86 : vector<64x1xf32> to vector<64x64xf32>
    %88 = arith.mulf %83, %87 : vector<64x64xf32>
    %89 = arith.truncf %88 : vector<64x64xf32> to vector<64x64xbf16>
    %90 = arith.truncf %74 : vector<64x32xf32> to vector<64x32xbf16>
    %cst_30 = arith.constant dense<0.000000e+00> : vector<64x32xf32>
    %91 = tpu.matmul %89, %90, %cst_30 {dimension_numbers = #tpu.dot_dimension_numbers<[1], [0], [0], [1], [0, 0, 1, 1], [], []>} : vector<64x64xbf16>, vector<64x32xbf16>, vector<64x32xf32> -> vector<64x32xf32>
    %92 = vector.extract_strided_slice %31 {offsets = [0, 96], sizes = [64, 32], strides = [1, 1]} : vector<64x384xf32> to vector<64x32xf32>
    %93 = vector.extract_strided_slice %31 {offsets = [0, 224], sizes = [64, 32], strides = [1, 1]} : vector<64x384xf32> to vector<64x32xf32>
    %94 = vector.extract_strided_slice %31 {offsets = [0, 352], sizes = [64, 32], strides = [1, 1]} : vector<64x384xf32> to vector<64x32xf32>
    %cst_31 = arith.constant dense<0.000000e+00> : vector<64x64xf32>
    %95 = tpu.matmul %92, %93, %cst_31 {dimension_numbers = #tpu.dot_dimension_numbers<[1], [1], [0], [0], [0, 0, 1, 0], [], []>} : vector<64x32xf32>, vector<64x32xf32>, vector<64x64xf32> -> vector<64x64xf32>
    %cst_32 = arith.constant 0.176776692 : f32
    %96 = vector.broadcast %cst_32 : f32 to vector<64x64xf32>
    %97 = arith.mulf %95, %96 : vector<64x64xf32>
    %98 = arith.addf %97, %26 : vector<64x64xf32>
    %cst_33 = arith.constant dense<0xFF800000> : vector<64xf32>
    %99 = vector.multi_reduction <maximumf>, %98, %cst_33 [1] : vector<64x64xf32> to vector<64xf32>
    %100 = vector.shape_cast %99 : vector<64xf32> to vector<64x1xf32>
    %101 = vector.broadcast %100 : vector<64x1xf32> to vector<64x64xf32>
    %102 = arith.subf %98, %101 : vector<64x64xf32>
    %103 = math.exp %102 : vector<64x64xf32>
    %cst_34 = arith.constant dense<0.000000e+00> : vector<64xf32>
    %104 = vector.multi_reduction <add>, %103, %cst_34 [1] : vector<64x64xf32> to vector<64xf32>
    %105 = vector.shape_cast %104 : vector<64xf32> to vector<64x1xf32>
    %106 = tpu.reciprocal %105 {approx = true} : vector<64x1xf32> -> vector<64x1xf32>
    %107 = vector.broadcast %106 : vector<64x1xf32> to vector<64x64xf32>
    %108 = arith.mulf %103, %107 : vector<64x64xf32>
    %109 = arith.truncf %108 : vector<64x64xf32> to vector<64x64xbf16>
    %110 = arith.truncf %94 : vector<64x32xf32> to vector<64x32xbf16>
    %cst_35 = arith.constant dense<0.000000e+00> : vector<64x32xf32>
    %111 = tpu.matmul %109, %110, %cst_35 {dimension_numbers = #tpu.dot_dimension_numbers<[1], [0], [0], [1], [0, 0, 1, 1], [], []>} : vector<64x64xbf16>, vector<64x32xbf16>, vector<64x32xf32> -> vector<64x32xf32>
    %112 = tpu.concatenate %51, %71, %91, %111 in 1 : vector<64x32xf32>, vector<64x32xf32>, vector<64x32xf32>, vector<64x32xf32> -> vector<64x128xf32>
    %113 = arith.truncf %112 : vector<64x128xf32> to vector<64x128xbf16>
    %c0_36 = arith.constant 0 : index
    %c0_37 = arith.constant 0 : index
    %114 = vector.load %arg10[%c0_36, %c0_37] : memref<128x128xbf16, #tpu.memory_space<vmem>>, vector<128x128xbf16>
    %cst_38 = arith.constant dense<0.000000e+00> : vector<64x128xf32>
    %115 = tpu.matmul %113, %114, %cst_38 {dimension_numbers = #tpu.dot_dimension_numbers<[1], [0], [0], [1], [0, 0, 1, 1], [], []>} : vector<64x128xbf16>, vector<128x128xbf16>, vector<64x128xf32> -> vector<64x128xf32>
    %c0_39 = arith.constant 0 : index
    %c0_40 = arith.constant 0 : index
    %116 = vector.load %arg11[%c0_39, %c0_40] : memref<1x128xf32, #tpu.memory_space<vmem>>, vector<1x128xf32>
    %117 = vector.broadcast %116 : vector<1x128xf32> to vector<64x128xf32>
    %118 = arith.addf %115, %117 : vector<64x128xf32>
    %119 = arith.addf %24, %118 : vector<64x128xf32>
    %c0_41 = arith.constant 0 : index
    %c0_42 = arith.constant 0 : index
    %120 = vector.load %arg12[%c0_41, %c0_42] : memref<1x128xf32, #tpu.memory_space<vmem>>, vector<1x128xf32>
    %c0_43 = arith.constant 0 : index
    %c0_44 = arith.constant 0 : index
    %121 = vector.load %arg13[%c0_43, %c0_44] : memref<1x128xf32, #tpu.memory_space<vmem>>, vector<1x128xf32>
    %cst_45 = arith.constant dense<0.000000e+00> : vector<64xf32>
    %122 = vector.multi_reduction <add>, %119, %cst_45 [1] : vector<64x128xf32> to vector<64xf32>
    %123 = vector.shape_cast %122 : vector<64xf32> to vector<64x1xf32>
    %cst_46 = arith.constant 1.280000e+02 : f32
    %124 = vector.broadcast %cst_46 : f32 to vector<64x1xf32>
    %125 = arith.divf %123, %124 : vector<64x1xf32>
    %126 = vector.broadcast %125 : vector<64x1xf32> to vector<64x128xf32>
    %127 = arith.subf %119, %126 : vector<64x128xf32>
    %128 = arith.mulf %127, %127 : vector<64x128xf32>
    %cst_47 = arith.constant dense<0.000000e+00> : vector<64xf32>
    %129 = vector.multi_reduction <add>, %128, %cst_47 [1] : vector<64x128xf32> to vector<64xf32>
    %130 = vector.shape_cast %129 : vector<64xf32> to vector<64x1xf32>
    %cst_48 = arith.constant 1.280000e+02 : f32
    %131 = vector.broadcast %cst_48 : f32 to vector<64x1xf32>
    %132 = arith.divf %130, %131 : vector<64x1xf32>
    %133 = vector.broadcast %125 : vector<64x1xf32> to vector<64x128xf32>
    %134 = arith.subf %119, %133 : vector<64x128xf32>
    %cst_49 = arith.constant 9.99999996E-13 : f32
    %135 = vector.broadcast %cst_49 : f32 to vector<64x1xf32>
    %136 = arith.addf %132, %135 : vector<64x1xf32>
    %137 = math.rsqrt %136 : vector<64x1xf32>
    %138 = vector.broadcast %137 : vector<64x1xf32> to vector<64x128xf32>
    %139 = arith.mulf %134, %138 : vector<64x128xf32>
    %140 = vector.broadcast %120 : vector<1x128xf32> to vector<64x128xf32>
    %141 = arith.mulf %139, %140 : vector<64x128xf32>
    %142 = vector.broadcast %121 : vector<1x128xf32> to vector<64x128xf32>
    %143 = arith.addf %141, %142 : vector<64x128xf32>
    %144 = arith.truncf %143 : vector<64x128xf32> to vector<64x128xbf16>
    %c0_50 = arith.constant 0 : index
    %c0_51 = arith.constant 0 : index
    %145 = vector.load %arg14[%c0_50, %c0_51] : memref<128x256xbf16, #tpu.memory_space<vmem>>, vector<128x256xbf16>
    %cst_52 = arith.constant dense<0.000000e+00> : vector<64x256xf32>
    %146 = tpu.matmul %144, %145, %cst_52 {dimension_numbers = #tpu.dot_dimension_numbers<[1], [0], [0], [1], [0, 0, 1, 1], [], []>} : vector<64x128xbf16>, vector<128x256xbf16>, vector<64x256xf32> -> vector<64x256xf32>
    %c0_53 = arith.constant 0 : index
    %c0_54 = arith.constant 0 : index
    %147 = vector.load %arg15[%c0_53, %c0_54] : memref<1x256xf32, #tpu.memory_space<vmem>>, vector<1x256xf32>
    %148 = vector.broadcast %147 : vector<1x256xf32> to vector<64x256xf32>
    %149 = arith.addf %146, %148 : vector<64x256xf32>
    %150 = arith.mulf %149, %149 : vector<64x256xf32>
    %151 = arith.mulf %149, %150 : vector<64x256xf32>
    %cst_55 = arith.constant 4.471500e-02 : f32
    %152 = vector.broadcast %cst_55 : f32 to vector<64x256xf32>
    %153 = arith.mulf %152, %151 : vector<64x256xf32>
    %154 = arith.addf %149, %153 : vector<64x256xf32>
    %cst_56 = arith.constant 0.797884583 : f32
    %155 = vector.broadcast %cst_56 : f32 to vector<64x256xf32>
    %156 = arith.mulf %155, %154 : vector<64x256xf32>
    %157 = math.tanh %156 : vector<64x256xf32>
    %cst_57 = arith.constant 1.000000e+00 : f32
    %158 = vector.broadcast %cst_57 : f32 to vector<64x256xf32>
    %159 = arith.addf %158, %157 : vector<64x256xf32>
    %cst_58 = arith.constant 5.000000e-01 : f32
    %160 = vector.broadcast %cst_58 : f32 to vector<64x256xf32>
    %161 = arith.mulf %160, %159 : vector<64x256xf32>
    %162 = arith.mulf %149, %161 : vector<64x256xf32>
    %163 = arith.truncf %162 : vector<64x256xf32> to vector<64x256xbf16>
    %c0_59 = arith.constant 0 : index
    %c0_60 = arith.constant 0 : index
    %164 = vector.load %arg16[%c0_59, %c0_60] : memref<256x128xbf16, #tpu.memory_space<vmem>>, vector<256x128xbf16>
    %cst_61 = arith.constant dense<0.000000e+00> : vector<64x128xf32>
    %165 = tpu.matmul %163, %164, %cst_61 {dimension_numbers = #tpu.dot_dimension_numbers<[1], [0], [0], [1], [0, 0, 1, 1], [], []>} : vector<64x256xbf16>, vector<256x128xbf16>, vector<64x128xf32> -> vector<64x128xf32>
    %c0_62 = arith.constant 0 : index
    %c0_63 = arith.constant 0 : index
    %166 = vector.load %arg17[%c0_62, %c0_63] : memref<1x128xf32, #tpu.memory_space<vmem>>, vector<1x128xf32>
    %167 = vector.broadcast %166 : vector<1x128xf32> to vector<64x128xf32>
    %168 = arith.addf %165, %167 : vector<64x128xf32>
    %169 = arith.addf %143, %168 : vector<64x128xf32>
    %c0_64 = arith.constant 0 : index
    %c0_65 = arith.constant 0 : index
    %170 = vector.load %arg18[%c0_64, %c0_65] : memref<1x128xf32, #tpu.memory_space<vmem>>, vector<1x128xf32>
    %c0_66 = arith.constant 0 : index
    %c0_67 = arith.constant 0 : index
    %171 = vector.load %arg19[%c0_66, %c0_67] : memref<1x128xf32, #tpu.memory_space<vmem>>, vector<1x128xf32>
    %cst_68 = arith.constant dense<0.000000e+00> : vector<64xf32>
    %172 = vector.multi_reduction <add>, %169, %cst_68 [1] : vector<64x128xf32> to vector<64xf32>
    %173 = vector.shape_cast %172 : vector<64xf32> to vector<64x1xf32>
    %cst_69 = arith.constant 1.280000e+02 : f32
    %174 = vector.broadcast %cst_69 : f32 to vector<64x1xf32>
    %175 = arith.divf %173, %174 : vector<64x1xf32>
    %176 = vector.broadcast %175 : vector<64x1xf32> to vector<64x128xf32>
    %177 = arith.subf %169, %176 : vector<64x128xf32>
    %178 = arith.mulf %177, %177 : vector<64x128xf32>
    %cst_70 = arith.constant dense<0.000000e+00> : vector<64xf32>
    %179 = vector.multi_reduction <add>, %178, %cst_70 [1] : vector<64x128xf32> to vector<64xf32>
    %180 = vector.shape_cast %179 : vector<64xf32> to vector<64x1xf32>
    %cst_71 = arith.constant 1.280000e+02 : f32
    %181 = vector.broadcast %cst_71 : f32 to vector<64x1xf32>
    %182 = arith.divf %180, %181 : vector<64x1xf32>
    %183 = vector.broadcast %175 : vector<64x1xf32> to vector<64x128xf32>
    %184 = arith.subf %169, %183 : vector<64x128xf32>
    %cst_72 = arith.constant 9.99999996E-13 : f32
    %185 = vector.broadcast %cst_72 : f32 to vector<64x1xf32>
    %186 = arith.addf %182, %185 : vector<64x1xf32>
    %187 = math.rsqrt %186 : vector<64x1xf32>
    %188 = vector.broadcast %187 : vector<64x1xf32> to vector<64x128xf32>
    %189 = arith.mulf %184, %188 : vector<64x128xf32>
    %190 = vector.broadcast %170 : vector<1x128xf32> to vector<64x128xf32>
    %191 = arith.mulf %189, %190 : vector<64x128xf32>
    %192 = vector.broadcast %171 : vector<1x128xf32> to vector<64x128xf32>
    %193 = arith.addf %191, %192 : vector<64x128xf32>
    %194 = arith.truncf %193 : vector<64x128xf32> to vector<64x128xbf16>
    %c0_73 = arith.constant 0 : index
    %c0_74 = arith.constant 0 : index
    %195 = vector.load %arg3[%c0_73, %c0_74] : memref<16x64xbf16, #tpu.memory_space<vmem>>, vector<16x64xbf16>
    %cst_75 = arith.constant dense<0.000000e+00> : vector<16x128xf32>
    %196 = tpu.matmul %195, %194, %cst_75 {dimension_numbers = #tpu.dot_dimension_numbers<[1], [0], [0], [1], [0, 0, 1, 1], [], []>} : vector<16x64xbf16>, vector<64x128xbf16>, vector<16x128xf32> -> vector<16x128xf32>
    %197 = arith.truncf %196 : vector<16x128xf32> to vector<16x128xbf16>
    %c0_76 = arith.constant 0 : index
    %c0_77 = arith.constant 0 : index
    %198 = vector.load %arg20[%c0_76, %c0_77] : memref<128x128xbf16, #tpu.memory_space<vmem>>, vector<128x128xbf16>
    %cst_78 = arith.constant dense<0.000000e+00> : vector<16x128xf32>
    %199 = tpu.matmul %197, %198, %cst_78 {dimension_numbers = #tpu.dot_dimension_numbers<[1], [0], [0], [1], [0, 0, 1, 1], [], []>} : vector<16x128xbf16>, vector<128x128xbf16>, vector<16x128xf32> -> vector<16x128xf32>
    %c0_79 = arith.constant 0 : index
    %c0_80 = arith.constant 0 : index
    %200 = vector.load %arg21[%c0_79, %c0_80] : memref<1x128xf32, #tpu.memory_space<vmem>>, vector<1x128xf32>
    %201 = vector.broadcast %200 : vector<1x128xf32> to vector<16x128xf32>
    %202 = arith.addf %199, %201 : vector<16x128xf32>
    %c0_81 = arith.constant 0 : index
    %c0_82 = arith.constant 0 : index
    %203 = vector.load %arg24[%c0_81, %c0_82] : memref<16x128xf32, #tpu.memory_space<vmem>>, vector<16x128xf32>
    tpu.vector_store %arg24[%c0_81, %c0_82], %202 {strides = array<i32>} : memref<16x128xf32, #tpu.memory_space<vmem>>, vector<16x128xf32>,
    %c0_83 = arith.constant 0 : index
    %c0_84 = arith.constant 0 : index
    %204 = vector.load %arg4[%c0_83, %c0_84] : memref<2x64xbf16, #tpu.memory_space<vmem>>, vector<2x64xbf16>
    %cst_85 = arith.constant dense<0.000000e+00> : vector<2x128xf32>
    %205 = tpu.matmul %204, %194, %cst_85 {dimension_numbers = #tpu.dot_dimension_numbers<[1], [0], [0], [1], [0, 0, 1, 1], [], []>} : vector<2x64xbf16>, vector<64x128xbf16>, vector<2x128xf32> -> vector<2x128xf32>
    %c0_86 = arith.constant 0 : index
    %c0_87 = arith.constant 0 : index
    %206 = vector.load %arg5[%c0_86, %c0_87] : memref<2x64xbf16, #tpu.memory_space<vmem>>, vector<2x64xbf16>
    %cst_88 = arith.constant dense<0.000000e+00> : vector<2x128xf32>
    %207 = tpu.matmul %206, %194, %cst_88 {dimension_numbers = #tpu.dot_dimension_numbers<[1], [0], [0], [1], [0, 0, 1, 1], [], []>} : vector<2x64xbf16>, vector<64x128xbf16>, vector<2x128xf32> -> vector<2x128xf32>
    %c0_89 = arith.constant 0 : index
    %c0_90 = arith.constant 0 : index
    %208 = vector.load %arg22[%c0_89, %c0_90] : memref<128x128xbf16, #tpu.memory_space<vmem>>, vector<128x128xbf16>
    %c0_91 = arith.constant 0 : index
    %c0_92 = arith.constant 0 : index
    %209 = vector.load %arg23[%c0_91, %c0_92] : memref<1x128xf32, #tpu.memory_space<vmem>>, vector<1x128xf32>
    %210 = arith.truncf %205 : vector<2x128xf32> to vector<2x128xbf16>
    %cst_93 = arith.constant dense<0.000000e+00> : vector<2x128xf32>
    %211 = tpu.matmul %210, %208, %cst_93 {dimension_numbers = #tpu.dot_dimension_numbers<[1], [0], [0], [1], [0, 0, 1, 1], [], []>} : vector<2x128xbf16>, vector<128x128xbf16>, vector<2x128xf32> -> vector<2x128xf32>
    %212 = vector.broadcast %209 : vector<1x128xf32> to vector<2x128xf32>
    %213 = arith.addf %211, %212 : vector<2x128xf32>
    %214 = math.tanh %213 : vector<2x128xf32>
    %215 = arith.truncf %207 : vector<2x128xf32> to vector<2x128xbf16>
    %cst_94 = arith.constant dense<0.000000e+00> : vector<2x128xf32>
    %216 = tpu.matmul %215, %208, %cst_94 {dimension_numbers = #tpu.dot_dimension_numbers<[1], [0], [0], [1], [0, 0, 1, 1], [], []>} : vector<2x128xbf16>, vector<128x128xbf16>, vector<2x128xf32> -> vector<2x128xf32>
    %217 = vector.broadcast %209 : vector<1x128xf32> to vector<2x128xf32>
    %218 = arith.addf %216, %217 : vector<2x128xf32>
    %219 = math.tanh %218 : vector<2x128xf32>
    %220 = arith.mulf %214, %214 : vector<2x128xf32>
    %cst_95 = arith.constant dense<0.000000e+00> : vector<2xf32>
    %221 = vector.multi_reduction <add>, %220, %cst_95 [1] : vector<2x128xf32> to vector<2xf32>
    %222 = vector.shape_cast %221 : vector<2xf32> to vector<2x1xf32>
    %223 = arith.mulf %219, %219 : vector<2x128xf32>
    %cst_96 = arith.constant dense<0.000000e+00> : vector<2xf32>
    %224 = vector.multi_reduction <add>, %223, %cst_96 [1] : vector<2x128xf32> to vector<2xf32>
    %225 = vector.shape_cast %224 : vector<2xf32> to vector<2x1xf32>
    %cst_97 = arith.constant 1.000000e-16 : f32
    %226 = vector.broadcast %cst_97 : f32 to vector<2x1xf32>
    %227 = arith.maximumf %222, %226 : vector<2x1xf32>
    %228 = math.rsqrt %227 : vector<2x1xf32>
    %229 = vector.broadcast %228 : vector<2x1xf32> to vector<2x128xf32>
    %230 = arith.mulf %214, %229 : vector<2x128xf32>
    %cst_98 = arith.constant 1.000000e-16 : f32
    %231 = vector.broadcast %cst_98 : f32 to vector<2x1xf32>
    %232 = arith.maximumf %225, %231 : vector<2x1xf32>
    %233 = math.rsqrt %232 : vector<2x1xf32>
    %234 = vector.broadcast %233 : vector<2x1xf32> to vector<2x128xf32>
    %235 = arith.mulf %219, %234 : vector<2x128xf32>
    %cst_99 = arith.constant dense<0.000000e+00> : vector<2x2xf32>
    %236 = tpu.matmul %230, %235, %cst_99 {dimension_numbers = #tpu.dot_dimension_numbers<[1], [1], [0], [0], [0, 0, 1, 0], [], []>} : vector<2x128xf32>, vector<2x128xf32>, vector<2x2xf32> -> vector<2x2xf32>
    %cst_100 = arith.constant 5.000000e-02 : f32
    %237 = vector.broadcast %cst_100 : f32 to vector<2x2xf32>
    %238 = arith.divf %236, %237 : vector<2x2xf32>
    %cst_101 = arith.constant dense<0xFF800000> : vector<2xf32>
    %239 = vector.multi_reduction <maximumf>, %238, %cst_101 [1] : vector<2x2xf32> to vector<2xf32>
    %240 = vector.shape_cast %239 : vector<2xf32> to vector<2x1xf32>
    %241 = vector.broadcast %240 : vector<2x1xf32> to vector<2x2xf32>
    %242 = arith.subf %238, %241 : vector<2x2xf32>
    %243 = math.exp %242 : vector<2x2xf32>
    %cst_102 = arith.constant dense<0.000000e+00> : vector<2xf32>
    %244 = vector.multi_reduction <add>, %243, %cst_102 [1] : vector<2x2xf32> to vector<2xf32>
    %245 = vector.shape_cast %244 : vector<2xf32> to vector<2x1xf32>
    %246 = math.log %245 : vector<2x1xf32>
    %247 = arith.addf %240, %246 : vector<2x1xf32>
    %248 = tpu.iota {dimensions = array<i32: 0>} : vector<2x2xi32>
    %249 = tpu.iota {dimensions = array<i32: 1>} : vector<2x2xi32>
    %250 = arith.cmpi eq, %248, %249 : vector<2x2xi32>
    %251 = arith.extui %250 : vector<2x2xi1> to vector<2x2xi32>
    %252 = arith.sitofp %251 : vector<2x2xi32> to vector<2x2xf32>
    %253 = arith.mulf %238, %252 : vector<2x2xf32>
    %cst_103 = arith.constant dense<0.000000e+00> : vector<2xf32>
    %254 = vector.multi_reduction <add>, %253, %cst_103 [1] : vector<2x2xf32> to vector<2xf32>
    %255 = vector.shape_cast %254 : vector<2xf32> to vector<2x1xf32>
    %256 = arith.subf %247, %255 : vector<2x1xf32>
    %257 = vector.shape_cast %256 : vector<2x1xf32> to vector<1x2x1xf32>
    %cst_104 = arith.constant dense<0.000000e+00> : vector<1xf32>
    %258 = vector.multi_reduction <add>, %257, %cst_104 [1, 2] : vector<1x2x1xf32> to vector<1xf32>
    %259 = vector.shape_cast %258 : vector<1xf32> to vector<1x1x1xf32>
    %260 = vector.extract %259[0, 0, 0] : f32 from vector<1x1x1xf32>
    %261 = vector.broadcast %260 : f32 to vector<1x1xf32>
    %cst_105 = arith.constant 2.000000e+00 : f32
    %262 = vector.broadcast %cst_105 : f32 to vector<1x1xf32>
    %263 = arith.divf %261, %262 : vector<1x1xf32>
    %c0_106 = arith.constant 0 : index
    %c0_107 = arith.constant 0 : index
    %264 = vector.load %arg25[%c0_106, %c0_107] : memref<1x1xf32, #tpu.memory_space<vmem>>, vector<1x1xf32>
    tpu.vector_store %arg25[%c0_106, %c0_107], %263 {strides = array<i32>} : memref<1x1xf32, #tpu.memory_space<vmem>>, vector<1x1xf32>,
    return
  }
  func.func @transform_0(%arg0: i32) -> (i32, i32) {
    %c0_i32 = arith.constant 0 : i32
    %c0_i32_0 = arith.constant 0 : i32
    %c0_i32_1 = arith.constant 0 : i32
    return %c0_i32, %c0_i32_0 : i32, i32
  }
  func.func @transform_1(%arg0: i32) -> (i32, i32) {
    %c0_i32 = arith.constant 0 : i32
    %c0_i32_0 = arith.constant 0 : i32
    %c0_i32_1 = arith.constant 0 : i32
    return %c0_i32, %c0_i32_0 : i32, i32
  }
  func.func @transform_2(%arg0: i32) -> (i32, i32) {
    %c0_i32 = arith.constant 0 : i32
    %c0_i32_0 = arith.constant 0 : i32
    %c0_i32_1 = arith.constant 0 : i32
    return %c0_i32, %c0_i32_0 : i32, i32
  }
  func.func @transform_3(%arg0: i32) -> (i32, i32) {
    %c0_i32 = arith.constant 0 : i32
    %c0_i32_0 = arith.constant 0 : i32
    %c0_i32_1 = arith.constant 0 : i32
    return %c0_i32, %c0_i32_0 : i32, i32
  }
  func.func @transform_4(%arg0: i32) -> (i32, i32) {
    %c0_i32 = arith.constant 0 : i32
    %c0_i32_0 = arith.constant 0 : i32
    %c0_i32_1 = arith.constant 0 : i32
    return %c0_i32, %c0_i32_0 : i32, i32
  }
  func.func @transform_5(%arg0: i32) -> (i32, i32) {
    %c0_i32 = arith.constant 0 : i32
    %c0_i32_0 = arith.constant 0 : i32
    %c0_i32_1 = arith.constant 0 : i32
    return %c0_i32, %c0_i32_0 : i32, i32
  }
  func.func @transform_6(%arg0: i32) -> (i32, i32) {
    %c0_i32 = arith.constant 0 : i32
    %c0_i32_0 = arith.constant 0 : i32
    %c0_i32_1 = arith.constant 0 : i32
    return %c0_i32, %c0_i32_0 : i32, i32
  }
  func.func @transform_7(%arg0: i32) -> (i32, i32) {
    %c0_i32 = arith.constant 0 : i32
    %c0_i32_0 = arith.constant 0 : i32
    %c0_i32_1 = arith.constant 0 : i32
    return %c0_i32, %c0_i32_0 : i32, i32
  }
  func.func @transform_8(%arg0: i32) -> (i32, i32) {
    %c0_i32 = arith.constant 0 : i32
    %c0_i32_0 = arith.constant 0 : i32
    %c0_i32_1 = arith.constant 0 : i32
    return %c0_i32, %c0_i32_0 : i32, i32
  }
  func.func @transform_9(%arg0: i32) -> (i32, i32) {
    %c0_i32 = arith.constant 0 : i32
    %c0_i32_0 = arith.constant 0 : i32
    %c0_i32_1 = arith.constant 0 : i32
    return %c0_i32, %c0_i32_0 : i32, i32
  }
  func.func @transform_10(%arg0: i32) -> (i32, i32) {
    %c0_i32 = arith.constant 0 : i32
    %c0_i32_0 = arith.constant 0 : i32
    %c0_i32_1 = arith.constant 0 : i32
    return %c0_i32, %c0_i32_0 : i32, i32
  }
  func.func @transform_11(%arg0: i32) -> (i32, i32) {
    %c0_i32 = arith.constant 0 : i32
    %c0_i32_0 = arith.constant 0 : i32
    %c0_i32_1 = arith.constant 0 : i32
    return %c0_i32, %c0_i32_0 : i32, i32
  }
  func.func @transform_12(%arg0: i32) -> (i32, i32) {
    %c0_i32 = arith.constant 0 : i32
    %c0_i32_0 = arith.constant 0 : i32
    %c0_i32_1 = arith.constant 0 : i32
    return %c0_i32, %c0_i32_0 : i32, i32
  }
  func.func @transform_13(%arg0: i32) -> (i32, i32) {
    %c0_i32 = arith.constant 0 : i32
    %c0_i32_0 = arith.constant 0 : i32
    %c0_i32_1 = arith.constant 0 : i32
    return %c0_i32, %c0_i32_0 : i32, i32
  }
  func.func @transform_14(%arg0: i32) -> (i32, i32) {
    %c0_i32 = arith.constant 0 : i32
    %c0_i32_0 = arith.constant 0 : i32
    %c0_i32_1 = arith.constant 0 : i32
    return %c0_i32, %c0_i32_0 : i32, i32
  }
  func.func @transform_15(%arg0: i32) -> (i32, i32) {
    %c0_i32 = arith.constant 0 : i32
    %c0_i32_0 = arith.constant 0 : i32
    %c0_i32_1 = arith.constant 0 : i32
    return %c0_i32, %c0_i32_0 : i32, i32
  }
  func.func @transform_16(%arg0: i32) -> (i32, i32) {
    %c0_i32 = arith.constant 0 : i32
    %c0_i32_0 = arith.constant 0 : i32
    %c0_i32_1 = arith.constant 0 : i32
    return %c0_i32, %c0_i32_0 : i32, i32
  }
  func.func @transform_17(%arg0: i32) -> (i32, i32) {
    %c0_i32 = arith.constant 0 : i32
    %c0_i32_0 = arith.constant 0 : i32
    %c0_i32_1 = arith.constant 0 : i32
    return %c0_i32, %c0_i32_0 : i32, i32
  }
  func.func @transform_18(%arg0: i32) -> (i32, i32) {
    %c0_i32 = arith.constant 0 : i32
    %c0_i32_0 = arith.constant 0 : i32
    %c0_i32_1 = arith.constant 0 : i32
    return %c0_i32, %c0_i32_0 : i32, i32
  }
  func.func @transform_19(%arg0: i32) -> (i32, i32) {
    %c0_i32 = arith.constant 0 : i32
    %c0_i32_0 = arith.constant 0 : i32
    %c0_i32_1 = arith.constant 0 : i32
    return %c0_i32, %c0_i32_0 : i32, i32
  }
  func.func @transform_20(%arg0: i32) -> (i32, i32) {
    %c0_i32 = arith.constant 0 : i32
    %c0_i32_0 = arith.constant 0 : i32
    %c0_i32_1 = arith.constant 0 : i32
    return %c0_i32, %c0_i32_0 : i32, i32
  }
  func.func @transform_21(%arg0: i32) -> (i32, i32) {
    %c0_i32 = arith.constant 0 : i32
    %c0_i32_0 = arith.constant 0 : i32
    %c0_i32_1 = arith.constant 0 : i32
    return %c0_i32, %c0_i32_0 : i32, i32
  }
  func.func @transform_22(%arg0: i32) -> (i32, i32) {
    %c0_i32 = arith.constant 0 : i32
    %c0_i32_0 = arith.constant 0 : i32
    %c0_i32_1 = arith.constant 0 : i32
    return %c0_i32, %c0_i32_0 : i32, i32
  }
  func.func @transform_23(%arg0: i32) -> (i32, i32) {
    %c0_i32 = arith.constant 0 : i32
    %c0_i32_0 = arith.constant 0 : i32
    %c0_i32_1 = arith.constant 0 : i32
    return %c0_i32, %c0_i32_0 : i32, i32
  }
  func.func @transform_24(%arg0: i32) -> (i32, i32) {
    %c0_i32 = arith.constant 0 : i32
    %c0_i32_0 = arith.constant 0 : i32
    %c0_i32_1 = arith.constant 0 : i32
    return %c0_i32, %c0_i32_0 : i32, i32
  }
}

</mosaic_0001>

<bundles_post_ra>
// kernel: eq.1
= control target key start
LH: loop header
LB: loop body
LE: loop exit
PB: predicated region body
PF: predicated region fallthrough
CT: control target
= control target key end

     0   :  { %vm7_vm0 = vcmask 64512   ;;  %vm13_vm1 = vcmask 130112   ;;  %s39_s0 = inlined_call_operand.vmem [shape: s32[2,8], index: 0, kind: input, shape index: {}]   ;;  %s40_s1 = inlined_call_operand.vmem [shape: s32[16], index: 1, kind: output, shape index: {}]  }
   0x1   :  { %v4_v0 = vld [vmem:[%s39_s0] sm:$0x3]  ;;  %s22_s0 = smov 8  }
   0x2   :  { %5 = vst [vmem:[#allocation1] sm:$0x3] %v4_v0 }
   0x9   :  { %v10_v1 = vld [vmem:[#allocation1 + $0x1] sm:$0x1]   ;;  %v6_v2 = vld [vmem:[#allocation1] sm:$0x1]  }
   0xa   :  { %11 = vrot.lane.b32.xlu0 %v10_v1, %s22_s0  ;;  %8 = vst.msk [vmem:[#allocation0] sm:$0x1] %vm7_vm0, %v6_v2  }
  0x7c   :  { %v12_v3 = vpop.permute.xlu0 %11  }
  0x7d   :  { %14 = vst.msk [vmem:[#allocation0] sm:$0x1] %vm13_vm1, %v12_v3  }
  0x84   :  { %v17_v4 = vld [vmem:[#allocation0] sm:$0x1] }
  0x85   :  { %20 = vst [vmem:[%s40_s1] sm:$0x1] %v17_v4 }

// kernel: trans_encoder_forward.1
= control target key start
LH: loop header
LB: loop body
LE: loop exit
PB: predicated region body
PF: predicated region fallthrough
CT: control target
= control target key end

     0   :  { %s5710_s0 = inlined_call_operand.vmem [shape: f32[64,128], index: 0, kind: input, shape index: {}]   ;;  %s5711_s1 = inlined_call_operand.vmem [shape: f32[64,64], index: 1, kind: input, shape index: {}]   ;;  %s5712_s2 = inlined_call_operand.vmem [shape: bf16[16,64], index: 2, kind: input, shape index: {}]   ;;  %s5713_s3 = inlined_call_operand.vmem [shape: bf16[2,64], index: 3, kind: input, shape index: {}]   ;;  %s5714_s4 = inlined_call_operand.vmem [shape: bf16[2,64], index: 4, kind: input, shape index: {}]   ;;  %s5715_s5 = inlined_call_operand.vmem [shape: f32[1,128], index: 5, kind: input, shape index: {}, may-alias: {5,11,17}]   ;;  %s5716_s6 = inlined_call_operand.vmem [shape: f32[1,128], index: 6, kind: input, shape index: {}, may-alias: {6,10,12,16,18,22}]   ;;  %s5717_s7 = inlined_call_operand.vmem [shape: bf16[128,384], index: 7, kind: input, shape index: {}]   ;;  %s5718_s8 = inlined_call_operand.vmem [shape: f32[1,384], index: 8, kind: input, shape index: {}]   ;;  %s5719_s9 = inlined_call_operand.vmem [shape: bf16[128,128], index: 9, kind: input, shape index: {}]   ;;  %s5720_s10 = inlined_call_operand.vmem [shape: f32[1,128], index: 10, kind: input, shape index: {}, may-alias: {6,10,12,16,18,22}]   ;;  %s5721_s11 = inlined_call_operand.vmem [shape: f32[1,128], index: 11, kind: input, shape index: {}, may-alias: {5,11,17}]   ;;  %s5722_s12 = inlined_call_operand.vmem [shape: f32[1,128], index: 12, kind: input, shape index: {}, may-alias: {6,10,12,16,18,22}]   ;;  %s5723_s13 = inlined_call_operand.vmem [shape: bf16[128,256], index: 13, kind: input, shape index: {}]   ;;  %s5724_s14 = inlined_call_operand.vmem [shape: f32[1,256], index: 14, kind: input, shape index: {}]   ;;  %s5725_s15 = inlined_call_operand.vmem [shape: bf16[256,128], index: 15, kind: input, shape index: {}]   ;;  %s5726_s16 = inlined_call_operand.vmem [shape: f32[1,128], index: 16, kind: input, shape index: {}, may-alias: {6,10,12,16,18,22}]   ;;  %s5727_s17 = inlined_call_operand.vmem [shape: f32[1,128], index: 17, kind: input, shape index: {}, may-alias: {5,11,17}]   ;;  %s5728_s18 = inlined_call_operand.vmem [shape: f32[1,128], index: 18, kind: input, shape index: {}, may-alias: {6,10,12,16,18,22}]   ;;  %s5729_s19 = inlined_call_operand.vmem [shape: bf16[128,128], index: 19, kind: input, shape index: {}]   ;;  %s5730_s20 = inlined_call_operand.vmem [shape: f32[1,128], index: 20, kind: input, shape index: {}]   ;;  %s5731_s21 = inlined_call_operand.vmem [shape: bf16[128,128], index: 21, kind: input, shape index: {}]   ;;  %s5732_s22 = inlined_call_operand.vmem [shape: f32[1,128], index: 22, kind: input, shape index: {}, may-alias: {6,10,12,16,18,22}]   ;;  %s5733_s23 = inlined_call_operand.vmem [shape: f32[16,128], index: 23, kind: output, shape index: {0}]   ;;  %s5734_s24 = inlined_call_operand.hbm [shape: f32[1,1], index: 24, kind: output, shape index: {1}]  }
   0x1   :  { %5738 = sst [smem:[#allocation5_spill]] %s5710_s0 }
   0x2   :  { %5739 = sst [smem:[#allocation6_spill]] %s5711_s1 }
   0x3   :  { %5740 = sst [smem:[#allocation7_spill]] %s5712_s2 }
   0x4   :  { %5741 = sst [smem:[#allocation8_spill]] %s5713_s3 }
   0x5   :  { %5742 = sst [smem:[#allocation9_spill]] %s5714_s4 }
   0x6   :  { %5743 = sst [smem:[#allocation10_spill]] %s5715_s5 }
   0x7   :  { %5744 = sst [smem:[#allocation11_spill]] %s5716_s6 }
   0x8   :  { %5745 = sst [smem:[#allocation12_spill]] %s5717_s7 }
   0x9   :  { %5746 = sst [smem:[#allocation13_spill]] %s5718_s8 }
   0xa   :  { %s5747_s27 = sld [smem:[#allocation5_spill]] }
  0x10   :  { %v82_v0 = vld [vmem:[%s5747_s27 + $0x20] sm:$0xff]  ;;  %v80_v1 = vld [vmem:[%s5747_s27 + $0x10] sm:$0xff]  ;;  %v83_v3 = vld [vmem:[%s5747_s27 + $0x28] sm:$0xff] }
  0x11   :  { %v78_v2 = vld [vmem:[%s5747_s27] sm:$0xff]  ;;  %96 = vadd.xlane.f32.xlu2 %v82_v0  ;;  %92 = vadd.xlane.f32.xlu1 %v80_v1  ;;  %v81_v4 = vld [vmem:[%s5747_s27 + $0x18] sm:$0xff] }
  0x12   :  { %88 = vadd.xlane.f32.xlu0 %v78_v2 }
  0x13   :  { %30 = vsyncpa [#allocation3], 0  ;;  %v79_v5 = vld [vmem:[%s5747_s27 + $0x8] sm:$0xff]  ;;  %v85_v6 = vld [vmem:[%s5747_s27 + $0x38] sm:$0xff]  ;;  %v3904_v8 = vmov 128.0   ;;  %s5748_s6 = sld [smem:[#allocation12_spill]] }
  0x14   :  { %v84_v7 = vld [vmem:[%s5747_s27 + $0x30] sm:$0xff]  ;;  %3652 = vrcp.f32 %v3904_v8  ;;  %s5753_s26 = sld [smem:[#allocation10_spill]]  ;;  %s3905_s30 = smov 64  }
  0x15   :  { %s5754_s2 = sld [smem:[#allocation11_spill]]  ;;  %s3906_s3 = smov 96  }
  0x16   :  { %s5755_s7 = sld [smem:[#allocation13_spill]]  ;;  %s3907_s25 = smov 32  }
  0x17   :  { %s5756_s1 = sld [smem:[#allocation6_spill]] }
  0x18   :  { %s5763_s0 = sld [smem:[#allocation9_spill]] }
  0x19   :  { %98 = vadd.xlane.f32.xlu2 %v83_v3  ;;  %94 = vadd.xlane.f32.xlu1 %v81_v4  ;;  %v3161_v47 = vld [vmem:[%s5748_s6 + $0xa8] sm:$0xf]  ;;  %v3505_v48 = vld [vmem:[%s5748_s6 + $0xb0] sm:$0xf0]  ;;  %v3504_v49 = vld [vmem:[%s5748_s6 + $0xac] sm:$0xf] }
  0x1a   :  { %90 = vadd.xlane.f32.xlu0 %v79_v5  ;;  %v3653_v9 = vpop.eup %3652  ;;  %v3162_v50 = vor.u32 %v3505_v48, %v3161_v47  ;;  %v3163_v51 = vld [vmem:[%s5748_s6 + $0xb4] sm:$0xf0]  ;;  %v3169_v52 = vld [vmem:[%s5748_s6 + $0xb0] sm:$0xf]  ;;  %v3506_v53 = vld [vmem:[%s5748_s6 + $0xb8] sm:$0xf0] }
  0x1b   :  { %v105_v10 = vmul.f32 128.0, %v3653_v9  ;;  %vm109_vm0 = vweird.f32 %v3653_v9  ;;  %v4121_v54 = vor.u32 %v3504_v49, %v3163_v51  ;;  %v3170_v55 = vor.u32 %v3506_v53, %v3169_v52  ;;  %v3149_v56 = vld [vmem:[%s5748_s6 + $0x90] sm:$0xf]  ;;  %v3502_v57 = vld [vmem:[%s5748_s6 + $0x98] sm:$0xf0] }
  0x1c   :  { %457 = vmatpush.bf16.msra.mxu0 %v3162_v50  ;;  %v3501_v58 = vld [vmem:[%s5748_s6 + $0x94] sm:$0xf]  ;;  %v3150_v59 = vor.u32 %v3502_v57, %v3149_v56  ;;  %v3151_v60 = vld [vmem:[%s5748_s6 + $0x9c] sm:$0xf0]  ;;  %v3157_v61 = vld [vmem:[%s5748_s6 + $0x98] sm:$0xf] }
  0x1d   :  { %v106_v11 = vsub.f32 1.0, %v105_v10  ;;  %3564 = vmatpush.bf16.msra.mxu1 %v4121_v54  ;;  %515 = vmatpush.bf16.msra.mxu2 %v3170_v55  ;;  %v3503_v62 = vld [vmem:[%s5748_s6 + $0xa0] sm:$0xf0]  ;;  %v4142_v63 = vor.u32 %v3501_v58, %v3151_v60  ;;  %v3125_v10 = vld [vmem:[%s5748_s6 + $0x60] sm:$0xf] }
  0x1e   :  { %v3089_v47 = vld [vmem:[%s5748_s6 + $0x18] sm:$0xf]  ;;  %v3487_v48 = vld [vmem:[%s5748_s6 + $0x20] sm:$0xf0]  ;;  %v3486_v49 = vld [vmem:[%s5748_s6 + $0x1c] sm:$0xf] }
  0x1f   :  { %v107_v12 = vmul.f32 %v3653_v9, %v106_v11  ;;  %v3496_v11 = vld [vmem:[%s5748_s6 + $0x68] sm:$0xf0]  ;;  %v3090_v52 = vor.u32 %v3487_v48, %v3089_v47  ;;  %v3091_v53 = vld [vmem:[%s5748_s6 + $0x24] sm:$0xf0]  ;;  %v3097_v55 = vld [vmem:[%s5748_s6 + $0x20] sm:$0xf] }
  0x20   :  { %458 = vmatpush.bf16.msra.mxu0 %v3150_v59  ;;  %v3488_v56 = vld [vmem:[%s5748_s6 + $0x28] sm:$0xf0]  ;;  %v4249_v58 = vor.u32 %v3486_v49, %v3091_v53 }
  0x21   :  { %102 = vadd.xlane.f32.xlu1 %v85_v6  ;;  %v108_v13 = vadd.f32 %v3653_v9, %v107_v12  ;;  %3565 = vmatpush.bf16.msra.mxu1 %v4142_v63  ;;  %v3495_v12 = vld [vmem:[%s5748_s6 + $0x64] sm:$0xf]  ;;  %v3098_v59 = vor.u32 %v3488_v56, %v3097_v55 }
  0x22   :  { %100 = vadd.xlane.f32.xlu0 %v84_v7 }
  0x23   :  { %v4061_v14 = vsel %vm109_vm0, %v3653_v9, %v108_v13  ;;  %v3126_v13 = vor.u32 %v3496_v11, %v3125_v10 }
  0x84   :  { %v97_v15 = vpop.xlane.xlu2 %96  ;;  %v93_v16 = vpop.xlane.xlu1 %92 }
  0x85   :  { %v113_v17 = vmul.f32 %v4061_v14, %v93_v16  ;;  %v89_v18 = vpop.xlane.xlu0 %88  ;;  %v115_v32 = vmul.f32 %v4061_v14, %v97_v15  ;;  %v3127_v15 = vld [vmem:[%s5748_s6 + $0x6c] sm:$0xf0]  ;;  %v3133_v16 = vld [vmem:[%s5748_s6 + $0x68] sm:$0xf] }
  0x86   :  { %v111_v19 = vmul.f32 %v4061_v14, %v89_v18  ;;  %v4184_v18 = vor.u32 %v3495_v12, %v3127_v15 }
  0x87   :  { %v4065_v20 = vsub.f32 %v80_v1, %v113_v17  ;;  %v4089_v37 = vsub.f32 %v82_v0, %v115_v32  ;;  %v3158_v0 = vor.u32 %v3503_v62, %v3157_v61  ;;  %v3137_v1 = vld [vmem:[%s5748_s6 + $0x78] sm:$0xf]  ;;  %v3497_v17 = vld [vmem:[%s5748_s6 + $0x70] sm:$0xf0]  ;;  %v3077_v62 = vld [vmem:[%s5748_s6] sm:$0xf] }
  0x88   :  { %v4067_v21 = vsub.f32 %v78_v2, %v111_v19  ;;  %v3499_v2 = vld [vmem:[%s5748_s6 + $0x80] sm:$0xf0]  ;;  %v3134_v19 = vor.u32 %v3497_v17, %v3133_v16 }
  0x89   :  { %v129_v22 = vmul.f32 %v4065_v20, %v4065_v20  ;;  %v131_v41 = vmul.f32 %v4089_v37, %v4089_v37  ;;  %516 = vmatpush.bf16.msra.mxu2 %v3158_v0  ;;  %v3484_v0 = vld [vmem:[%s5748_s6 + $0x8] sm:$0xf0] }
  0x8a   :  { %v127_v23 = vmul.f32 %v4067_v21, %v4067_v21 }
  0x8b   :  { %139 = vadd.xlane.f32.xlu1 %v129_v22  ;;  %v3113_v22 = vld [vmem:[%s5748_s6 + $0x48] sm:$0xf] }
  0x8c   :  { %135 = vadd.xlane.f32.xlu2 %v127_v23  ;;  %v99_v24 = vpop.xlane.xlu2 %98  ;;  %v95_v25 = vpop.xlane.xlu1 %94  ;;  %v3493_v23 = vld [vmem:[%s5748_s6 + $0x50] sm:$0xf0] }
  0x8d   :  { %v116_v26 = vmul.f32 %v4061_v14, %v99_v24  ;;  %v114_v27 = vmul.f32 %v4061_v14, %v95_v25  ;;  %v91_v28 = vpop.xlane.xlu0 %90  ;;  %v3492_v24 = vld [vmem:[%s5748_s6 + $0x4c] sm:$0xf]  ;;  %v3114_v25 = vor.u32 %v3493_v23, %v3113_v22 }
  0x8e   :  { %v112_v29 = vmul.f32 %v4061_v14, %v91_v28  ;;  %v3494_v28 = vld [vmem:[%s5748_s6 + $0x58] sm:$0xf0] }
  0x8f   :  { %v4076_v30 = vsub.f32 %v83_v3, %v116_v26  ;;  %v4078_v31 = vsub.f32 %v81_v4, %v114_v27  ;;  %v3498_v3 = vld [vmem:[%s5748_s6 + $0x7c] sm:$0xf]  ;;  %v3138_v4 = vor.u32 %v3499_v2, %v3137_v1  ;;  %v3115_v26 = vld [vmem:[%s5748_s6 + $0x54] sm:$0xf0]  ;;  %v3121_v27 = vld [vmem:[%s5748_s6 + $0x50] sm:$0xf]  ;;  %v3078_v1 = vor.u32 %v3484_v0, %v3077_v62 }
  0x90   :  { %v4081_v33 = vsub.f32 %v79_v5, %v112_v29  ;;  %v3139_v5 = vld [vmem:[%s5748_s6 + $0x84] sm:$0xf0]  ;;  %v4205_v29 = vor.u32 %v3492_v24, %v3115_v26  ;;  %v3122_v32 = vor.u32 %v3494_v28, %v3121_v27  ;;  %v3483_v2 = vld [vmem:[%s5748_s6 + $0x4] sm:$0xf] }
  0x91   :  { %v132_v34 = vmul.f32 %v4076_v30, %v4076_v30  ;;  %v130_v35 = vmul.f32 %v4078_v31, %v4078_v31  ;;  %v4163_v8 = vor.u32 %v3498_v3, %v3139_v5  ;;  %459 = vmatpush.bf16.msra.mxu0 %v3138_v4  ;;  %v3079_v3 = vld [vmem:[%s5748_s6 + $0xc] sm:$0xf0]  ;;  %v3085_v4 = vld [vmem:[%s5748_s6 + $0x8] sm:$0xf] }
  0x92   :  { %v128_v36 = vmul.f32 %v4081_v33, %v4081_v33  ;;  %v4270_v5 = vor.u32 %v3483_v2, %v3079_v3 }
  0x93   :  { %145 = vadd.xlane.f32.xlu1 %v132_v34  ;;  %3566 = vmatpush.bf16.msra.mxu1 %v4163_v8  ;;  %v3101_v34 = vld [vmem:[%s5748_s6 + $0x30] sm:$0xf] }
  0x94   :  { %141 = vadd.xlane.f32.xlu2 %v130_v35  ;;  %137 = vadd.xlane.f32.xlu0 %v128_v36  ;;  %v103_v39 = vpop.xlane.xlu1 %102  ;;  %v3490_v35 = vld [vmem:[%s5748_s6 + $0x38] sm:$0xf0]  ;;  %v3489_v36 = vld [vmem:[%s5748_s6 + $0x34] sm:$0xf] }
  0x95   :  { %v101_v38 = vpop.xlane.xlu0 %100  ;;  %v118_v43 = vmul.f32 %v4061_v14, %v103_v39  ;;  %460 = vmatpush.bf16.msra.mxu0 %v3126_v13  ;;  %v3103_v39 = vld [vmem:[%s5748_s6 + $0x3c] sm:$0xf0] }
  0x96   :  { %v117_v40 = vmul.f32 %v4061_v14, %v101_v38  ;;  %v3102_v38 = vor.u32 %v3490_v35, %v3101_v34 }
  0x97   :  { %v4099_v45 = vsub.f32 %v85_v6, %v118_v43  ;;  %v3145_v6 = vld [vmem:[%s5748_s6 + $0x80] sm:$0xf]  ;;  %3567 = vmatpush.bf16.msra.mxu1 %v4184_v18  ;;  %v4226_v43 = vor.u32 %v3489_v36, %v3103_v39 }
  0x98   :  { %v4094_v42 = vsub.f32 %v84_v7, %v117_v40  ;;  %v3500_v7 = vld [vmem:[%s5748_s6 + $0x88] sm:$0xf0]  ;;  %v3109_v40 = vld [vmem:[%s5748_s6 + $0x38] sm:$0xf] }
  0x99   :  { %v134_v46 = vmul.f32 %v4099_v45, %v4099_v45  ;;  %v3146_v9 = vor.u32 %v3500_v7, %v3145_v6  ;;  %461 = vmatpush.bf16.msra.mxu0 %v3114_v25  ;;  %v3485_v6 = vld [vmem:[%s5748_s6 + $0x10] sm:$0xf0] }
  0x9a   :  { %v133_v44 = vmul.f32 %v4094_v42, %v4094_v42  ;;  %v3086_v7 = vor.u32 %v3485_v6, %v3085_v4  ;;  %v4326_v4 = vld [vmem:[%s5753_s26] ss:$0 sm:$0xff] }
  0x9b   :  { %517 = vmatpush.bf16.msra.mxu2 %v3146_v9  ;;  %3568 = vmatpush.bf16.msra.mxu1 %v4205_v29 }
  0x9c   :  { %143 = vadd.xlane.f32.xlu0 %v131_v41  ;;  %147 = vadd.xlane.f32.xlu2 %v133_v44  ;;  %v3491_v41 = vld [vmem:[%s5748_s6 + $0x40] sm:$0xf0]  ;;  %s5761_s6 = sld [smem:[#allocation7_spill]] }
  0x9d   :  { %v3110_v44 = vor.u32 %v3491_v41, %v3109_v40  ;;  %462 = vmatpush.bf16.msra.mxu0 %v3102_v38 }
  0x9f   :  { %518 = vmatpush.bf16.msra.mxu2 %v3134_v19  ;;  %3569 = vmatpush.bf16.msra.mxu1 %v4226_v43 }
  0xa1   :  { %463 = vmatpush.bf16.msra.mxu0 %v3090_v52 }
  0xa3   :  { %519 = vmatpush.bf16.msra.mxu2 %v3122_v32  ;;  %3570 = vmatpush.bf16.msra.mxu1 %v4249_v58 }
  0xa4   :  { %149 = vadd.xlane.f32.xlu0 %v134_v46 }
  0xa5   :  { %464 = vmatpush.bf16.msra.mxu0 %v3078_v1 }
  0xa7   :  { %520 = vmatpush.bf16.msra.mxu2 %v3110_v44  ;;  %3571 = vmatpush.bf16.msra.mxu1 %v4270_v5 }
  0xa9   :  { %486 = vmatpush.bf16.msrb.mxu0 %v4121_v54 }
  0xab   :  { %521 = vmatpush.bf16.msra.mxu2 %v3098_v59 }
  0xad   :  { %487 = vmatpush.bf16.msrb.mxu0 %v4142_v63 }
  0xaf   :  { %522 = vmatpush.bf16.msra.mxu2 %v3086_v7 }
  0xb1   :  { %488 = vmatpush.bf16.msrb.mxu0 %v4163_v8 }
  0xb5   :  { %489 = vmatpush.bf16.msrb.mxu0 %v4184_v18 }
  0xb9   :  { %490 = vmatpush.bf16.msrb.mxu0 %v4205_v29 }
  0xbd   :  { %491 = vmatpush.bf16.msrb.mxu0 %v4226_v43  ;;  %v4339_v43 = vld [vmem:[%s5754_s2] ss:$0 sm:$0xff] }
  0xc1   :  { %492 = vmatpush.bf16.msrb.mxu0 %v4249_v58 }
  0xc5   :  { %493 = vmatpush.bf16.msrb.mxu0 %v4270_v5 }
  0xfe   :  { %v140_v46 = vpop.xlane.xlu1 %139 }
  0xff   :  { %v153_v50 = vmul.f32 %v140_v46, %v4061_v14  ;;  %v136_v51 = vpop.xlane.xlu2 %135 }
 0x100   :  { %v151_v57 = vmul.f32 %v136_v51, %v4061_v14 }
 0x101   :  { %v161_v60 = vadd.f32 1e-12, %v153_v50 }
 0x102   :  { %v4251_v61 = vadd.f32 1e-12, %v151_v57 }
 0x103   :  { %3654 = vrsqrt.f32 %v161_v60  ;;  %vm193_vm3 = vweird.f32 %v161_v60 }
 0x104   :  { %3656 = vrsqrt.f32 %v4251_v61  ;;  %vm173_vm5 = vweird.f32 %v4251_v61 }
 0x106   :  { %v146_v9 = vpop.xlane.xlu1 %145 }
 0x107   :  { %v156_v10 = vmul.f32 %v146_v9, %v4061_v14  ;;  %v142_v11 = vpop.xlane.xlu2 %141  ;;  %v138_v12 = vpop.xlane.xlu0 %137 }
 0x108   :  { %v154_v13 = vmul.f32 %v142_v11, %v4061_v14  ;;  %v152_v15 = vmul.f32 %v138_v12, %v4061_v14 }
 0x109   :  { %v3655_v16 = vpop.eup %3654  ;;  %v4280_v17 = vadd.f32 1e-12, %v156_v10 }
 0x10a   :  { %v3657_v19 = vpop.eup %3656  ;;  %v188_v22 = vmul.f32 %v3655_v16, %v161_v60  ;;  %v162_v23 = vadd.f32 1e-12, %v154_v13  ;;  %v4282_v24 = vadd.f32 1e-12, %v152_v15  ;;  %vm194_vm1 = vweird.f32 %v3655_v16 }
 0x10b   :  { %v168_v54 = vmul.f32 %v3657_v19, %v4251_v61  ;;  %3658 = vrsqrt.f32 %v4280_v17  ;;  %vm174_vm2 = vweird.f32 %v3657_v19  ;;  %vm4299_vm4 = vmor %vm193_vm3, %vm194_vm1  ;;  %vm223_vm13 = vweird.f32 %v4280_v17 }
 0x10c   :  { %v189_v25 = vmul.f32 %v3655_v16, %v188_v22  ;;  %3660 = vrsqrt.f32 %v162_v23  ;;  %vm4308_vm6 = vmor %vm173_vm5, %vm174_vm2  ;;  %vm203_vm9 = vweird.f32 %v162_v23  ;;  %vm183_vm11 = vweird.f32 %v4282_v24 }
 0x10d   :  { %v169_v26 = vmul.f32 %v3657_v19, %v168_v54  ;;  %3662 = vrsqrt.f32 %v4282_v24 }
 0x10e   :  { %v190_v27 = vmul.f32 0.5, %v189_v25 }
 0x10f   :  { %v170_v28 = vmul.f32 0.5, %v169_v26  ;;  %v148_v32 = vpop.xlane.xlu2 %147  ;;  %v144_v34 = vpop.xlane.xlu0 %143 }
 0x110   :  { %v191_v35 = vsub.f32 1.5, %v190_v27  ;;  %v155_v36 = vmul.f32 %v144_v34, %v4061_v14  ;;  %v157_v39 = vmul.f32 %v148_v32, %v4061_v14 }
 0x111   :  { %v4290_v38 = vpop.eup %3658  ;;  %v171_v63 = vsub.f32 1.5, %v170_v28 }
 0x112   :  { %v3661_v40 = vpop.eup %3660  ;;  %v218_v41 = vmul.f32 %v4290_v38, %v4280_v17  ;;  %v192_v44 = vmul.f32 %v3655_v16, %v191_v35  ;;  %v4296_v48 = vadd.f32 1e-12, %v155_v36  ;;  %v4305_v53 = vadd.f32 1e-12, %v157_v39 }
 0x113   :  { %v3663_v8 = vpop.eup %3662  ;;  %v172_v46 = vmul.f32 %v3657_v19, %v171_v63  ;;  %v198_v47 = vmul.f32 %v3661_v40, %v162_v23  ;;  %vm204_vm7 = vweird.f32 %v3661_v40  ;;  %vm224_vm14 = vweird.f32 %v4290_v38 }
 0x114   :  { %v178_v49 = vmul.f32 %v3663_v8, %v4282_v24  ;;  %v219_v51 = vmul.f32 %v4290_v38, %v218_v41  ;;  %3664 = vrsqrt.f32 %v4296_v48  ;;  %v196_v56 = vsel %vm4299_vm4, %v3655_v16, %v192_v44  ;;  %vm205_vm10 = vmor %vm203_vm9, %vm204_vm7 }
 0x115   :  { %v199_v52 = vmul.f32 %v3661_v40, %v198_v47  ;;  %v176_v57 = vsel %vm4308_vm6, %v3657_v19, %v172_v46  ;;  %vm184_vm8 = vweird.f32 %v3663_v8  ;;  %3666 = vrsqrt.f32 %v4305_v53  ;;  %vm225_vm1 = vmor %vm223_vm13, %vm224_vm14 }
 0x116   :  { %v179_v55 = vmul.f32 %v3663_v8, %v178_v49  ;;  %v220_v0 = vmul.f32 0.5, %v219_v51  ;;  %v247_v29 = vmul.f32 %v176_v57, %v4067_v21  ;;  %v249_v6 = vmul.f32 %v196_v56, %v4065_v20  ;;  %vm185_vm12 = vmor %vm183_vm11, %vm184_vm8 }
 0x117   :  { %v200_v59 = vmul.f32 0.5, %v199_v52  ;;  %v150_v60 = vpop.xlane.xlu0 %149  ;;  %vm213_vm15 = vweird.f32 %v4296_v48  ;;  %vm233_vm5 = vweird.f32 %v4305_v53  ;;  %vm544_vm9 = vcmask 261120  }
 0x118   :  { %v180_v61 = vmul.f32 0.5, %v179_v55  ;;  %v158_v62 = vmul.f32 %v150_v60, %v4061_v14  ;;  %v221_v11 = vsub.f32 1.5, %v220_v0  ;;  %v258_v20 = vmul.f32 %v4326_v4, %v247_v29 }
 0x119   :  { %v201_v1 = vsub.f32 1.5, %v200_v59  ;;  %v260_v16 = vmul.f32 %v4326_v4, %v249_v6  ;;  %vm1702_vm11 = vcmask 785408  }
 0x11a   :  { %v181_v2 = vsub.f32 1.5, %v180_v61  ;;  %v4320_v3 = vadd.f32 1e-12, %v158_v62  ;;  %v3665_v9 = vpop.eup %3664  ;;  %v4352_v26 = vadd.f32 %v4339_v43, %v258_v20 }
 0x11b   :  { %v202_v7 = vmul.f32 %v3661_v40, %v201_v1  ;;  %v208_v21 = vmul.f32 %v3665_v9, %v4296_v48  ;;  %v3667_v19 = vpop.eup %3666  ;;  %v4355_v58 = vadd.f32 %v4339_v43, %v260_v16  ;;  %vm214_vm0 = vweird.f32 %v3665_v9 }
 0x11c   :  { %v182_v10 = vmul.f32 %v3663_v8, %v181_v2  ;;  %3668 = vrsqrt.f32 %v4320_v3  ;;  %v228_v28 = vmul.f32 %v3667_v19, %v4305_v53  ;;  %vm215_vm2 = vmor %vm213_vm15, %vm214_vm0  ;;  %vm243_vm3 = vweird.f32 %v4320_v3 }
 0x11d   :  { %v206_v12 = vsel %vm205_vm10, %v3661_v40, %v202_v7  ;;  %v209_v22 = vmul.f32 %v3665_v9, %v208_v21  ;;  %vm234_vm6 = vweird.f32 %v3667_v19  ;;  %vm650_vm10 = vcmask 523264  }
 0x11e   :  { %v186_v13 = vsel %vm185_vm12, %v3663_v8, %v182_v10  ;;  %v250_v15 = vmul.f32 %v206_v12, %v4078_v31  ;;  %v222_v31 = vmul.f32 %v4290_v38, %v221_v11  ;;  %v229_v41 = vmul.f32 %v3667_v19, %v228_v28  ;;  %vm235_vm8 = vmor %vm233_vm5, %vm234_vm6 }
 0x11f   :  { %v248_v23 = vmul.f32 %v186_v13, %v4081_v33  ;;  %v210_v54 = vmul.f32 0.5, %v209_v22 }
 0x120   :  { %v261_v24 = vmul.f32 %v4326_v4, %v250_v15  ;;  %v226_v40 = vsel %vm225_vm1, %v4290_v38, %v222_v31  ;;  %v230_v47 = vmul.f32 0.5, %v229_v41 }
 0x121   :  { %v259_v25 = vmul.f32 %v4326_v4, %v248_v23  ;;  %v211_v32 = vsub.f32 1.5, %v210_v54  ;;  %v252_v46 = vmul.f32 %v226_v40, %v4076_v30 }
 0x122   :  { %v4358_v33 = vadd.f32 %v4339_v43, %v261_v24  ;;  %v3669_v27 = vpop.eup %3668  ;;  %v231_v51 = vsub.f32 1.5, %v230_v47 }
 0x123   :  { %v4363_v34 = vadd.f32 %v4339_v43, %v259_v25  ;;  %v238_v35 = vmul.f32 %v3669_v27, %v4320_v3  ;;  %v212_v63 = vmul.f32 %v3665_v9, %v211_v32  ;;  %v263_v48 = vmul.f32 %v4326_v4, %v252_v46 }
 0x124   :  { %v278_v36 = vpack.c.bf16 %v4358_v33, %v4355_v58  ;;  %vm244_vm4 = vweird.f32 %v3669_v27  ;;  %v232_v52 = vmul.f32 %v3667_v19, %v231_v51 }
 0x125   :  { %v277_v5 = vpack.c.bf16 %v4363_v34, %v4352_v26  ;;  %v239_v39 = vmul.f32 %v3669_v27, %v238_v35  ;;  %v216_v8 = vsel %vm215_vm2, %v3665_v9, %v212_v63  ;;  %vm245_vm7 = vmor %vm243_vm3, %vm244_vm4  ;;  %v4385_v30 = vadd.f32 %v4339_v43, %v263_v48 }
 0x126   :  { %499 = vmatmul.bf16.vlgmr.msra.gmra.mxu1 %v278_v36  ;;  %v251_v17 = vmul.f32 %v216_v8, %v4089_v37  ;;  %v236_v56 = vsel %vm235_vm8, %v3667_v19, %v232_v52 }
 0x127   :  { %465 = vmatmul.bf16.vlgmr.msra.gmra.mxu0 %v277_v5  ;;  %523 = vmatmul.bf16.vlgmr.msra.gmra.mxu2 %v277_v5  ;;  %v240_v44 = vmul.f32 0.5, %v239_v39  ;;  %v253_v53 = vmul.f32 %v236_v56, %v4094_v42  ;;  %v4404_v42 = vld [vmem:[%s5755_s7] sm:$0x7] }
 0x128   :  { %v262_v49 = vmul.f32 %v4326_v4, %v251_v17  ;;  %v4417_v29 = vperm.slane %v4404_v42, 0  ;;  %v325_v39 = vperm.slane %v4404_v42, 2 }
 0x129   :  { %v241_v50 = vsub.f32 1.5, %v240_v44  ;;  %v264_v60 = vmul.f32 %v4326_v4, %v253_v53 }
 0x12a   :  { %v4381_v38 = vadd.f32 %v4339_v43, %v262_v49 }
 0x12b   :  { %v242_v37 = vmul.f32 %v3669_v27, %v241_v50  ;;  %v4397_v62 = vadd.f32 %v4339_v43, %v264_v60 }
 0x12c   :  { %v279_v18 = vpack.c.bf16 %v4385_v30, %v4381_v38 }
 0x12d   :  { %v246_v55 = vsel %vm245_vm7, %v3669_v27, %v242_v37 }
 0x12e   :  { %v254_v57 = vmul.f32 %v246_v55, %v4099_v45  ;;  %v4407_v45 = vperm.slane %v4404_v42, 1 }
 0x130   :  { %v265_v59 = vmul.f32 %v4326_v4, %v254_v57 }
 0x132   :  { %v4394_v61 = vadd.f32 %v4339_v43, %v265_v59 }
 0x134   :  { %v280_v0 = vpack.c.bf16 %v4394_v61, %v4397_v62 }
 0x136   :  { %504 = vmatmul.bf16.gmra.mxu1 %v279_v18 }
 0x137   :  { %470 = vmatmul.bf16.gmra.mxu0 %v278_v36  ;;  %528 = vmatmul.bf16.gmra.mxu2 %v278_v36 }
 0x146   :  { %509 = vmatmul.bf16.gmra.mxu1 %v280_v0 }
 0x147   :  { %475 = vmatmul.bf16.gmra.mxu0 %v279_v18  ;;  %533 = vmatmul.bf16.gmra.mxu2 %v279_v18 }
 0x157   :  { %480 = vmatmul.bf16.gmra.mxu0 %v280_v0  ;;  %538 = vmatmul.bf16.gmra.mxu2 %v280_v0 }
 0x167   :  { %494 = vmatmul.bf16.vlgmr.msrb.gmra.mxu0 %v277_v5 }
 0x1a3   :  { %v500_v1 = vpop.f32.mrf.mxu1 }
 0x1a4   :  { %v466_v2 = vpop.f32.mrf.mxu0  ;;  %v4410_v3 = vadd.f32 %v500_v1, %v4407_v45 }
 0x1a5   :  { %v4422_v7 = vadd.f32 %v466_v2, %v4417_v29 }
 0x1a6   :  { %1078 = vrot.lane.b32.xlu1 %v4410_v3, %s3905_s30  ;;  %808 = vrot.lane.b32.xlu0 %v4410_v3, %s3906_s3 }
 0x1aa   :  { %v4419_v4 = vpop.f32.mrf.mxu2 }
 0x1ab   :  { %v502_v6 = vpop.f32.mrf.mxu1  ;;  %v525_v53 = vadd.f32 %v4419_v4, %v325_v39 }
 0x1ac   :  { %v468_v9 = vpop.f32.mrf.mxu0  ;;  %v503_v10 = vadd.f32 %v502_v6, %v4407_v45 }
 0x1ad   :  { %v4426_v11 = vadd.f32 %v468_v9, %v4417_v29 }
 0x1ae   :  { %810 = vrot.lane.b32.xlu1 %v503_v10, %s3906_s3  ;;  %788 = vrot.lane.b32.xlu0 %v4422_v7, %s3906_s3 }
 0x1af   :  { %790 = vrot.lane.b32.xlu2 %v4426_v11, %s3906_s3 }
 0x1b2   :  { %v4433_v12 = vpop.f32.mrf.mxu2 }
 0x1b3   :  { %v505_v21 = vpop.f32.mrf.mxu1  ;;  %v527_v52 = vadd.f32 %v4433_v12, %v325_v39 }
 0x1b4   :  { %v471_v13 = vpop.f32.mrf.mxu0  ;;  %v506_v16 = vadd.f32 %v505_v21, %v4407_v45 }
 0x1b5   :  { %v4436_v20 = vadd.f32 %v471_v13, %v4417_v29  ;;  %v4498_v59 = vpack.c.bf16 %v527_v52, %v525_v53 }
 0x1b6   :  { %1080 = vrot.lane.b32.xlu0 %v503_v10, %s3905_s30 }
 0x1b7   :  { %792 = vrot.lane.b32.xlu1 %v4436_v20, %s3906_s3  ;;  %1346 = vrot.lane.b32.xlu2 %v503_v10, %s3907_s25 }
 0x1ba   :  { %v529_v43 = vpop.f32.mrf.mxu2 }
 0x1bb   :  { %v507_v15 = vpop.f32.mrf.mxu1  ;;  %v530_v51 = vadd.f32 %v529_v43, %v325_v39 }
 0x1bc   :  { %v473_v19 = vpop.f32.mrf.mxu0  ;;  %v508_v24 = vadd.f32 %v507_v15, %v4407_v45 }
 0x1bd   :  { %v474_v17 = vadd.f32 %v473_v19, %v4417_v29 }
 0x1be   :  { %1082 = vrot.lane.b32.xlu0 %v506_v16, %s3905_s30 }
 0x1bf   :  { %1060 = vrot.lane.b32.xlu1 %v4426_v11, %s3905_s30  ;;  %812 = vrot.lane.b32.xlu2 %v506_v16, %s3906_s3 }
 0x1c2   :  { %v531_v22 = vpop.f32.mrf.mxu2 }
 0x1c3   :  { %v510_v23 = vpop.f32.mrf.mxu1  ;;  %v532_v50 = vadd.f32 %v531_v22, %v325_v39 }
 0x1c4   :  { %v476_v54 = vpop.f32.mrf.mxu0  ;;  %v511_v32 = vadd.f32 %v510_v23, %v4407_v45 }
 0x1c5   :  { %v4487_v18 = vpack.c.bf16 %v532_v50, %v530_v51  ;;  %v477_v56 = vadd.f32 %v476_v54, %v4417_v29  ;;  %v4606_v50 = vld [vmem:[%s5756_s1] sm:$0xff] }
 0x1c6   :  { %814 = vrot.lane.b32.xlu0 %v508_v24, %s3906_s3 }
 0x1c7   :  { %1350 = vrot.lane.b32.xlu1 %v508_v24, %s3907_s25  ;;  %1348 = vrot.lane.b32.xlu2 %v506_v16, %s3907_s25 }
 0x1ca   :  { %v534_v25 = vpop.f32.mrf.mxu2 }
 0x1cb   :  { %v512_v31 = vpop.f32.mrf.mxu1  ;;  %v535_v49 = vadd.f32 %v534_v25, %v325_v39 }
 0x1cc   :  { %v478_v27 = vpop.f32.mrf.mxu0  ;;  %v513_v28 = vadd.f32 %v512_v31, %v4407_v45 }
 0x1cd   :  { %v479_v0 = vadd.f32 %v478_v27, %v4417_v29 }
 0x1ce   :  { %1344 = vrot.lane.b32.xlu0 %v4410_v3, %s3907_s25  ;;  %3171 = vmatpush.xpose.msk.msra.mxu3 %vm544_vm9, %v513_v28 }
 0x1cf   :  { %1324 = vrot.lane.b32.xlu2 %v4422_v7, %s3907_s25  ;;  %1352 = vrot.lane.b32.xlu1 %v511_v32, %s3907_s25 }
 0x1d2   :  { %v536_v35 = vpop.f32.mrf.mxu2  ;;  %3172 = vmatpush.xpose.msk.msra.mxu3 %vm544_vm9, %v511_v32 }
 0x1d3   :  { %v537_v46 = vadd.f32 %v536_v35, %v325_v39 }
 0x1d4   :  { %v481_v36 = vpop.f32.mrf.mxu0 }
 0x1d5   :  { %v4483_v48 = vpack.c.bf16 %v537_v46, %v535_v49  ;;  %v482_v57 = vadd.f32 %v481_v36, %v4417_v29 }
 0x1d6   :  { %1058 = vrot.lane.b32.xlu0 %v4422_v7, %s3905_s30  ;;  %3173 = vmatpush.xpose.msk.msra.mxu3 %vm544_vm9, %v508_v24 }
 0x1d7   :  { %1062 = vrot.lane.b32.xlu2 %v4436_v20, %s3905_s30  ;;  %818 = vrot.lane.b32.xlu1 %v513_v28, %s3906_s3 }
 0x1da   :  { %v539_v63 = vpop.f32.mrf.mxu2  ;;  %3174 = vmatpush.xpose.msk.msra.mxu3 %vm544_vm9, %v506_v16 }
 0x1db   :  { %v540_v41 = vadd.f32 %v539_v63, %v325_v39 }
 0x1dc   :  { %v483_v5 = vpop.f32.mrf.mxu0 }
 0x1dd   :  { %v484_v42 = vadd.f32 %v483_v5, %v4417_v29 }
 0x1de   :  { %1326 = vrot.lane.b32.xlu0 %v4426_v11, %s3907_s25  ;;  %3175 = vmatpush.xpose.msk.msra.mxu3 %vm544_vm9, %v503_v10 }
 0x1df   :  { %1084 = vrot.lane.b32.xlu2 %v508_v24, %s3905_s30  ;;  %1328 = vrot.lane.b32.xlu1 %v4436_v20, %s3907_s25 }
 0x1e2   :  { %v541_v40 = vpop.f32.mrf.mxu2  ;;  %3176 = vmatpush.xpose.msk.msra.mxu3 %vm544_vm9, %v4410_v3 }
 0x1e3   :  { %v542_v8 = vadd.f32 %v541_v40, %v325_v39 }
 0x1e4   :  { %v495_v44 = vpop.f32.mrf.mxu0 }
 0x1e5   :  { %v4477_v47 = vpack.c.bf16 %v542_v8, %v540_v41  ;;  %v496_v60 = vadd.f32 %v495_v44, %v4407_v45 }
 0x1e6   :  { %794 = vrot.lane.b32.xlu0 %v474_v17, %s3906_s3 }
 0x1e7   :  { %763 = vmatpush.bf16.msra.mxu0 %v4477_v47  ;;  %1088 = vrot.lane.b32.xlu1 %v513_v28, %s3905_s30 }
 0x1e8   :  { %816 = vrot.lane.b32.xlu2 %v511_v32, %s3906_s3 }
 0x1eb   :  { %764 = vmatpush.bf16.msra.mxu0 %v4483_v48 }
 0x1ec   :  { %v497_v37 = vpop.f32.mrf.mxu0 }
 0x1ed   :  { %v498_v55 = vadd.f32 %v497_v37, %v4407_v45 }
 0x1ee   :  { %1064 = vrot.lane.b32.xlu0 %v474_v17, %s3905_s30 }
 0x1ef   :  { %765 = vmatpush.bf16.msra.mxu0 %v4487_v18  ;;  %3177 = vmatpush.xpose.msk.msra.mxu3 %vm544_vm9, %v498_v55 }
 0x1f0   :  { %796 = vrot.lane.b32.xlu2 %v477_v56, %s3906_s3  ;;  %800 = vrot.lane.b32.xlu1 %v482_v57, %s3906_s3 }
 0x1f3   :  { %3178 = vmatpush.xpose.msk.msra.mxu3 %vm544_vm9, %v496_v60  ;;  %766 = vmatpush.bf16.msra.mxu0 %v4498_v59 }
 0x1f6   :  { %3179 = vmatmul.msk.f32.vlgmr.msra.gmra.mxu3 %vm544_vm9, %v4422_v7  ;;  %1354 = vrot.lane.b32.xlu0 %v513_v28, %s3907_s25 }
 0x1f8   :  { %1086 = vrot.lane.b32.xlu2 %v511_v32, %s3905_s30  ;;  %804 = vrot.lane.b32.xlu1 %v496_v60, %s3906_s3 }
 0x1fe   :  { %3180 = vmatmul.msk.f32.gmra.mxu3 %vm544_vm9, %v4426_v11  ;;  %798 = vrot.lane.b32.xlu0 %v479_v0, %s3906_s3 }
 0x200   :  { %1330 = vrot.lane.b32.xlu2 %v474_v17, %s3907_s25  ;;  %1066 = vrot.lane.b32.xlu1 %v477_v56, %s3905_s30 }
 0x206   :  { %3181 = vmatmul.msk.f32.gmra.mxu3 %vm544_vm9, %v4436_v20  ;;  %1332 = vrot.lane.b32.xlu0 %v477_v56, %s3907_s25 }
 0x208   :  { %802 = vrot.lane.b32.xlu2 %v484_v42, %s3906_s3  ;;  %1334 = vrot.lane.b32.xlu1 %v479_v0, %s3907_s25 }
 0x209   :  { %v4520_v45 = vpop.permute.xlu2 %790 }
 0x20e   :  { %3182 = vmatmul.msk.f32.gmra.mxu3 %vm544_vm9, %v474_v17  ;;  %1070 = vrot.lane.b32.xlu0 %v482_v57, %s3905_s30 }
 0x210   :  { %1068 = vrot.lane.b32.xlu2 %v479_v0, %s3905_s30  ;;  %1072 = vrot.lane.b32.xlu1 %v484_v42, %s3905_s30 }
 0x211   :  { %v4526_v1 = vpop.permute.xlu2 %1346 }
 0x216   :  { %3183 = vmatmul.msk.f32.gmra.mxu3 %vm544_vm9, %v477_v56  ;;  %1342 = vrot.lane.b32.xlu0 %v498_v55, %s3907_s25 }
 0x218   :  { %1336 = vrot.lane.b32.xlu2 %v482_v57, %s3907_s25  ;;  %1340 = vrot.lane.b32.xlu1 %v496_v60, %s3907_s25  ;;  %v1079_v2 = vpop.permute.xlu1 %1078  ;;  %v809_v3 = vpop.permute.xlu0 %808 }
 0x219   :  { %v813_v29 = vpop.permute.xlu2 %812 }
 0x21e   :  { %3184 = vmatmul.msk.f32.gmra.mxu3 %vm544_vm9, %v479_v0  ;;  %1338 = vrot.lane.b32.xlu0 %v484_v42, %s3907_s25 }
 0x220   :  { %1074 = vrot.lane.b32.xlu2 %v496_v60, %s3905_s30  ;;  %1076 = vrot.lane.b32.xlu1 %v498_v55, %s3905_s30  ;;  %v811_v4 = vpop.permute.xlu1 %810  ;;  %v4536_v6 = vpop.permute.xlu0 %788  ;;  %v4620_v60 = vld [vmem:[%s5756_s1 + $0x8] sm:$0xff] }
 0x221   :  { %v4538_v7 = vpop.permute.xlu2 %1348 }
 0x226   :  { %3185 = vmatmul.msk.f32.gmra.mxu3 %vm544_vm9, %v482_v57  ;;  %1011 = vrot.lane.b32.xlu0 %v4477_v47, %s3906_s3 }
 0x228   :  { %806 = vrot.lane.b32.xlu2 %v498_v55, %s3906_s3  ;;  %1007 = vrot.lane.b32.xlu1 %v4487_v18, %s3906_s3  ;;  %v1081_v9 = vpop.permute.xlu0 %1080 }
 0x229   :  { %v4546_v10 = vpop.permute.xlu1 %792  ;;  %v4548_v11 = vpop.permute.xlu2 %1324 }
 0x22e   :  { %3186 = vmatmul.msk.f32.gmra.mxu3 %vm544_vm9, %v484_v42 }
 0x230   :  { %1009 = vrot.lane.b32.xlu2 %v4483_v48, %s3906_s3  ;;  %v1083_v12 = vpop.permute.xlu0 %1082 }
 0x231   :  { %v4553_v21 = vpop.permute.xlu1 %1060  ;;  %v4555_v13 = vpop.permute.xlu2 %1062 }
 0x238   :  { %1005 = vrot.lane.b32.xlu2 %v4498_v59, %s3906_s3  ;;  %v815_v20 = vpop.permute.xlu0 %814 }
 0x239   :  { %v4559_v43 = vpop.permute.xlu1 %1350  ;;  %v1085_v15 = vpop.permute.xlu2 %1084 }
 0x240   :  { %v4561_v16 = vpop.permute.xlu0 %1344 }
 0x241   :  { %v1353_v19 = vpop.permute.xlu1 %1352 }
 0x242   :  { %v817_v22 = vpop.permute.xlu2 %816 }
 0x248   :  { %v4563_v23 = vpop.permute.xlu0 %1058 }
 0x249   :  { %v819_v24 = vpop.permute.xlu1 %818 }
 0x24a   :  { %v4565_v54 = vpop.permute.xlu2 %796  ;;  %3191 = vmatpush.xpose.msk.msrb.mxu1 %vm544_vm9, %v819_v24 }
 0x24e   :  { %3192 = vmatpush.xpose.msk.msrb.mxu1 %vm544_vm9, %v817_v22 }
 0x250   :  { %v4569_v25 = vpop.permute.xlu0 %1326 }
 0x251   :  { %v4571_v31 = vpop.permute.xlu1 %1328 }
 0x252   :  { %v1087_v27 = vpop.permute.xlu2 %1086  ;;  %3193 = vmatpush.xpose.msk.msrb.mxu1 %vm544_vm9, %v815_v20 }
 0x256   :  { %3194 = vmatpush.xpose.msk.msrb.mxu1 %vm544_vm9, %v813_v29 }
 0x258   :  { %v4575_v28 = vpop.permute.xlu0 %794 }
 0x259   :  { %v1089_v32 = vpop.permute.xlu1 %1088 }
 0x25a   :  { %v4577_v35 = vpop.permute.xlu2 %1330  ;;  %3195 = vmatpush.xpose.msk.msrb.mxu1 %vm544_vm9, %v811_v4  ;;  %3211 = vmatpush.xpose.msk.msrb.mxu3 %vm544_vm9, %v1089_v32 }
 0x25e   :  { %3196 = vmatpush.xpose.msk.msrb.mxu1 %vm544_vm9, %v809_v3  ;;  %3212 = vmatpush.xpose.msk.msrb.mxu3 %vm544_vm9, %v1087_v27 }
 0x260   :  { %v4583_v36 = vpop.permute.xlu0 %1064 }
 0x262   :  { %v4585_v63 = vpop.permute.xlu2 %802  ;;  %v4587_v5 = vpop.permute.xlu1 %800  ;;  %3213 = vmatpush.xpose.msk.msrb.mxu3 %vm544_vm9, %v1085_v15 }
 0x266   :  { %3214 = vmatpush.xpose.msk.msrb.mxu3 %vm544_vm9, %v1083_v12  ;;  %v4635_v12 = vld [vmem:[%s5756_s1 + $0x10] sm:$0xff] }
 0x268   :  { %v1355_v39 = vpop.permute.xlu0 %1354 }
 0x26a   :  { %v4591_v40 = vpop.permute.xlu2 %1068  ;;  %v805_v41 = vpop.permute.xlu1 %804  ;;  %3215 = vmatpush.xpose.msk.msrb.mxu3 %vm544_vm9, %v1081_v9 }
 0x26e   :  { %3216 = vmatpush.xpose.msk.msrb.mxu3 %vm544_vm9, %v1079_v2 }
 0x270   :  { %v4595_v8 = vpop.permute.xlu0 %798 }
 0x272   :  { %v4597_v17 = vpop.permute.xlu2 %1336  ;;  %v4599_v44 = vpop.permute.xlu1 %1066 }
 0x278   :  { %v4601_v46 = vpop.permute.xlu0 %1332 }
 0x279   :  { %v610_v49 = vpop.f32.mrf.mxu3 }
 0x27a   :  { %v634_v51 = vmul.f32 0.17677669, %v610_v49  ;;  %v1075_v37 = vpop.permute.xlu2 %1074  ;;  %v4608_v52 = vpop.permute.xlu1 %1334 }
 0x27c   :  { %v4611_v55 = vadd.f32 %v634_v51, %v4606_v50 }
 0x27e   :  { %v651_v56 = vsel %vm650_vm10, %v4611_v55, -inf }
 0x27f   :  { %652 = vmax.xlane.f32.xlu0 %v651_v56 }
 0x280   :  { %v4615_v57 = vpop.permute.xlu0 %1070 }
 0x281   :  { %v613_v53 = vpop.f32.mrf.mxu3 }
 0x282   :  { %v635_v0 = vmul.f32 0.17677669, %v613_v53  ;;  %v807_v42 = vpop.permute.xlu2 %806  ;;  %v4622_v2 = vpop.permute.xlu1 %1072 }
 0x283   :  { %3197 = vmatpush.xpose.msk.msrb.mxu1 %vm544_vm9, %v807_v42 }
 0x284   :  { %v4626_v3 = vadd.f32 %v635_v0, %v4620_v60 }
 0x286   :  { %v654_v29 = vsel %vm650_vm10, %v4626_v3, -inf }
 0x287   :  { %3198 = vmatpush.xpose.msk.msrb.mxu1 %vm544_vm9, %v805_v41  ;;  %655 = vmax.xlane.f32.xlu2 %v654_v29 }
 0x288   :  { %v1343_v4 = vpop.permute.xlu0 %1342 }
 0x289   :  { %v616_v9 = vpop.f32.mrf.mxu3 }
 0x28a   :  { %v636_v20 = vmul.f32 0.17677669, %v616_v9  ;;  %v1341_v15 = vpop.permute.xlu1 %1340  ;;  %3199 = vmatmul.msk.f32.vlgmr.msrb.gmra.mxu1 %vm544_vm9, %v4536_v6  ;;  %v4702_v9 = vld [vmem:[%s5756_s1 + $0x30] sm:$0xff] }
 0x28b   :  { %3231 = vmatpush.xpose.msk.msra.mxu1 %vm544_vm9, %v1355_v39  ;;  %v4652_v39 = vld [vmem:[%s5756_s1 + $0x18] sm:$0xff] }
 0x28c   :  { %v4641_v22 = vadd.f32 %v636_v20, %v4635_v12 }
 0x28e   :  { %v657_v24 = vsel %vm650_vm10, %v4641_v22, -inf }
 0x28f   :  { %3232 = vmatpush.xpose.msk.msra.mxu1 %vm544_vm9, %v1353_v19  ;;  %658 = vmax.xlane.f32.xlu2 %v657_v24  ;;  %v4716_v24 = vld [vmem:[%s5756_s1 + $0x38] sm:$0xff] }
 0x290   :  { %v4647_v27 = vpop.permute.xlu0 %1338 }
 0x291   :  { %v619_v32 = vpop.f32.mrf.mxu3 }
 0x292   :  { %v637_v6 = vmul.f32 0.17677669, %v619_v32  ;;  %v1077_v19 = vpop.permute.xlu1 %1076  ;;  %3200 = vmatmul.msk.f32.gmra.mxu1 %vm544_vm9, %v4520_v45  ;;  %v4670_v45 = vld [vmem:[%s5756_s1 + $0x20] sm:$0xff] }
 0x293   :  { %3233 = vmatpush.xpose.msk.msra.mxu1 %vm544_vm9, %v4559_v43  ;;  %3217 = vmatpush.xpose.msk.msrb.mxu3 %vm544_vm9, %v1077_v19 }
 0x294   :  { %v4660_v43 = vadd.f32 %v637_v6, %v4652_v39 }
 0x296   :  { %v660_v41 = vsel %vm650_vm10, %v4660_v43, -inf }
 0x297   :  { %3234 = vmatpush.xpose.msk.msra.mxu1 %vm544_vm9, %v4538_v7  ;;  %3218 = vmatpush.xpose.msk.msrb.mxu3 %vm544_vm9, %v1075_v37  ;;  %v1010_v7 = vpop.permute.xlu2 %1009 }
 0x298   :  { %661 = vmax.xlane.f32.xlu1 %v660_v41  ;;  %v1012_v49 = vpop.permute.xlu0 %1011 }
 0x299   :  { %v622_v51 = vpop.f32.mrf.mxu3  ;;  %1033 = vmatpush.bf16.msrb.mxu2 %v1012_v49 }
 0x29a   :  { %v638_v56 = vmul.f32 0.17677669, %v622_v51  ;;  %3201 = vmatmul.msk.f32.gmra.mxu1 %vm544_vm9, %v4546_v10  ;;  %3219 = vmatmul.msk.f32.vlgmr.msrb.gmra.mxu3 %vm544_vm9, %v4563_v23  ;;  %v1008_v53 = vpop.permute.xlu1 %1007  ;;  %v4687_v10 = vld [vmem:[%s5756_s1 + $0x28] sm:$0xff] }
 0x29b   :  { %3235 = vmatpush.xpose.msk.msra.mxu1 %vm544_vm9, %v4526_v1 }
 0x29c   :  { %v4679_v1 = vadd.f32 %v638_v56, %v4670_v45 }
 0x29d   :  { %1034 = vmatpush.bf16.msrb.mxu2 %v1010_v7 }
 0x29e   :  { %v663_v37 = vsel %vm650_vm10, %v4679_v1, -inf }
 0x29f   :  { %3236 = vmatpush.xpose.msk.msra.mxu1 %vm544_vm9, %v4561_v16  ;;  %v1006_v16 = vpop.permute.xlu2 %1005 }
 0x2a0   :  { %664 = vmax.xlane.f32.xlu1 %v663_v37 }
 0x2a1   :  { %v625_v0 = vpop.f32.mrf.mxu3  ;;  %1035 = vmatpush.bf16.msrb.mxu2 %v1008_v53 }
 0x2a2   :  { %v639_v23 = vmul.f32 0.17677669, %v625_v0  ;;  %3202 = vmatmul.msk.f32.gmra.mxu1 %vm544_vm9, %v4575_v28  ;;  %3220 = vmatmul.msk.f32.gmra.mxu3 %vm544_vm9, %v4553_v21 }
 0x2a3   :  { %3237 = vmatpush.xpose.msk.msra.mxu1 %vm544_vm9, %v1343_v4 }
 0x2a4   :  { %v4695_v42 = vadd.f32 %v639_v23, %v4687_v10 }
 0x2a5   :  { %1036 = vmatpush.bf16.msrb.mxu2 %v1006_v16 }
 0x2a6   :  { %v666_v29 = vsel %vm650_vm10, %v4695_v42, -inf }
 0x2a7   :  { %3238 = vmatpush.xpose.msk.msra.mxu1 %vm544_vm9, %v1341_v15  ;;  %667 = vmax.xlane.f32.xlu0 %v666_v29 }
 0x2a9   :  { %v628_v4 = vpop.f32.mrf.mxu3 }
 0x2aa   :  { %v640_v28 = vmul.f32 0.17677669, %v628_v4  ;;  %3203 = vmatmul.msk.f32.gmra.mxu1 %vm544_vm9, %v4565_v54  ;;  %3221 = vmatmul.msk.f32.gmra.mxu3 %vm544_vm9, %v4555_v13 }
 0x2ac   :  { %v4709_v21 = vadd.f32 %v640_v28, %v4702_v9 }
 0x2ae   :  { %v669_v20 = vsel %vm650_vm10, %v4709_v21, -inf }
 0x2af   :  { %670 = vmax.xlane.f32.xlu2 %v669_v20 }
 0x2b1   :  { %v631_v15 = vpop.f32.mrf.mxu3 }
 0x2b2   :  { %v641_v32 = vmul.f32 0.17677669, %v631_v15  ;;  %3204 = vmatmul.msk.f32.gmra.mxu1 %vm544_vm9, %v4595_v8  ;;  %3222 = vmatmul.msk.f32.gmra.mxu3 %vm544_vm9, %v4583_v36 }
 0x2b4   :  { %v4723_v13 = vadd.f32 %v641_v32, %v4716_v24 }
 0x2b6   :  { %v672_v54 = vsel %vm650_vm10, %v4723_v13, -inf }
 0x2b7   :  { %673 = vmax.xlane.f32.xlu1 %v672_v54 }
 0x2ba   :  { %3205 = vmatmul.msk.f32.gmra.mxu1 %vm544_vm9, %v4587_v5  ;;  %3223 = vmatmul.msk.f32.gmra.mxu3 %vm544_vm9, %v4599_v44 }
 0x2c2   :  { %3206 = vmatmul.msk.f32.gmra.mxu1 %vm544_vm9, %v4585_v63  ;;  %3224 = vmatmul.msk.f32.gmra.mxu3 %vm544_vm9, %v4591_v40 }
 0x2ca   :  { %3225 = vmatmul.msk.f32.gmra.mxu3 %vm544_vm9, %v4615_v57  ;;  %3239 = vmatmul.msk.f32.vlgmr.msra.gmra.mxu1 %vm544_vm9, %v4548_v11 }
 0x2d2   :  { %3226 = vmatmul.msk.f32.gmra.mxu3 %vm544_vm9, %v4622_v2  ;;  %3240 = vmatmul.msk.f32.gmra.mxu1 %vm544_vm9, %v4569_v25 }
 0x2da   :  { %3241 = vmatmul.msk.f32.gmra.mxu1 %vm544_vm9, %v4571_v31 }
 0x2e2   :  { %3242 = vmatmul.msk.f32.gmra.mxu1 %vm544_vm9, %v4577_v35 }
 0x2ea   :  { %3243 = vmatmul.msk.f32.gmra.mxu1 %vm544_vm9, %v4601_v46 }
 0x2f2   :  { %3244 = vmatmul.msk.f32.gmra.mxu1 %vm544_vm9, %v4608_v52  ;;  %v653_v6 = vpop.xlane.xlu0 %652 }
 0x2f3   :  { %v675_v51 = vsub.f32 %v4611_v55, %v653_v6 }
 0x2f5   :  { %v683_v37 = vmul.f32 1.442695, %v675_v51 }
 0x2fa   :  { %3245 = vmatmul.msk.f32.gmra.mxu1 %vm544_vm9, %v4597_v17  ;;  %v656_v63 = vpop.xlane.xlu2 %655 }
 0x2fb   :  { %v676_v8 = vsub.f32 %v4626_v3, %v656_v63 }
 0x2fd   :  { %v685_v44 = vmul.f32 1.442695, %v676_v8 }
 0x2ff   :  { %3670 = vpow2.f32 %v685_v44 }
 0x300   :  { %3672 = vpow2.f32 %v683_v37 }
 0x302   :  { %3246 = vmatmul.msk.f32.gmra.mxu1 %vm544_vm9, %v4647_v27  ;;  %v659_v0 = vpop.xlane.xlu2 %658 }
 0x303   :  { %v677_v4 = vsub.f32 %v4641_v22, %v659_v0 }
 0x305   :  { %v4774_v49 = vpop.eup %3670  ;;  %v687_v20 = vmul.f32 1.442695, %v677_v4 }
 0x306   :  { %v702_v56 = vsel %vm650_vm10, %v4774_v49, 0.0  ;;  %v4787_v54 = vpop.eup %3672 }
 0x307   :  { %v869_v11 = vpop.f32.mrf.mxu1  ;;  %3674 = vpow2.f32 %v687_v20  ;;  %v699_v22 = vsel %vm650_vm10, %v4787_v54, 0.0 }
 0x308   :  { %v893_v25 = vmul.f32 0.17677669, %v869_v11 }
 0x30a   :  { %v4756_v36 = vadd.f32 %v893_v25, %v4606_v50 }
 0x30b   :  { %v662_v28 = vpop.xlane.xlu1 %661 }
 0x30c   :  { %v909_v31 = vsel %vm650_vm10, %v4756_v36, -inf }
 0x30d   :  { %910 = vmax.xlane.f32.xlu2 %v909_v31 }
 0x30f   :  { %v872_v35 = vpop.f32.mrf.mxu1 }
 0x310   :  { %v894_v5 = vmul.f32 0.17677669, %v872_v35 }
 0x312   :  { %v4761_v40 = vadd.f32 %v894_v5, %v4620_v60 }
 0x313   :  { %v665_v63 = vpop.xlane.xlu1 %664 }
 0x314   :  { %v912_v17 = vsel %vm650_vm10, %v4761_v40, -inf }
 0x315   :  { %913 = vmax.xlane.f32.xlu1 %v912_v17  ;;  %v4799_v17 = vpop.eup %3674 }
 0x317   :  { %v875_v46 = vpop.f32.mrf.mxu1 }
 0x318   :  { %v895_v52 = vmul.f32 0.17677669, %v875_v46  ;;  %v679_v46 = vsub.f32 %v4679_v1, %v665_v63 }
 0x31a   :  { %v4767_v57 = vadd.f32 %v895_v52, %v4635_v12 }
 0x31c   :  { %v915_v2 = vsel %vm650_vm10, %v4767_v57, -inf }
 0x31d   :  { %916 = vmax.xlane.f32.xlu1 %v915_v2  ;;  %v1139_v27 = vpop.f32.mrf.mxu3  ;;  %v705_v2 = vsel %vm650_vm10, %v4799_v17, 0.0 }
 0x31e   :  { %v1163_v19 = vmul.f32 0.17677669, %v1139_v27 }
 0x31f   :  { %v878_v41 = vpop.f32.mrf.mxu1 }
 0x320   :  { %v4772_v3 = vadd.f32 %v1163_v19, %v4606_v50  ;;  %v896_v31 = vmul.f32 0.17677669, %v878_v41  ;;  %v691_v19 = vmul.f32 1.442695, %v679_v46 }
 0x322   :  { %v1179_v7 = vsel %vm650_vm10, %v4772_v3, -inf  ;;  %v4797_v8 = vadd.f32 %v896_v31, %v4652_v39  ;;  %3676 = vpow2.f32 %v691_v19 }
 0x323   :  { %1180 = vmax.xlane.f32.xlu0 %v1179_v7 }
 0x324   :  { %v918_v27 = vsel %vm650_vm10, %v4797_v8, -inf }
 0x325   :  { %703 = vadd.xlane.f32.xlu1 %v702_v56  ;;  %v1142_v53 = vpop.f32.mrf.mxu3 }
 0x326   :  { %v1164_v23 = vmul.f32 0.17677669, %v1142_v53  ;;  %v678_v53 = vsub.f32 %v4660_v43, %v662_v28  ;;  %v671_v43 = vpop.xlane.xlu2 %670 }
 0x327   :  { %v881_v16 = vpop.f32.mrf.mxu1 }
 0x328   :  { %v4782_v29 = vadd.f32 %v1164_v23, %v4620_v60  ;;  %v897_v4 = vmul.f32 0.17677669, %v881_v16  ;;  %v689_v20 = vmul.f32 1.442695, %v678_v53 }
 0x32a   :  { %v1182_v55 = vsel %vm650_vm10, %v4782_v29, -inf  ;;  %3678 = vpow2.f32 %v689_v20 }
 0x32b   :  { %1183 = vmax.xlane.f32.xlu0 %v1182_v55 }
 0x32d   :  { %v1145_v15 = vpop.f32.mrf.mxu3 }
 0x32e   :  { %v1165_v32 = vmul.f32 0.17677669, %v1145_v15 }
 0x32f   :  { %v884_v11 = vpop.f32.mrf.mxu1 }
 0x330   :  { %v4790_v25 = vadd.f32 %v1165_v32, %v4635_v12  ;;  %v898_v52 = vmul.f32 0.17677669, %v884_v11  ;;  %v4822_v32 = vpop.eup %3676  ;;  %v668_v11 = vpop.xlane.xlu0 %667 }
 0x331   :  { %v680_v16 = vsub.f32 %v4695_v42, %v668_v11  ;;  %v711_v63 = vsel %vm650_vm10, %v4822_v32, 0.0 }
 0x332   :  { %v1185_v35 = vsel %vm650_vm10, %v4790_v25, -inf  ;;  %v4807_v7 = vadd.f32 %v898_v52, %v4687_v10 }
 0x333   :  { %1186 = vmax.xlane.f32.xlu2 %v1185_v35  ;;  %700 = vadd.xlane.f32.xlu0 %v699_v22  ;;  %v4825_v35 = vadd.f32 %v897_v4, %v4670_v45 }
 0x334   :  { %v924_v23 = vsel %vm650_vm10, %v4807_v7, -inf }
 0x335   :  { %v1148_v5 = vpop.f32.mrf.mxu3 }
 0x336   :  { %v1166_v6 = vmul.f32 0.17677669, %v1148_v5  ;;  %v681_v5 = vsub.f32 %v4709_v21, %v671_v43  ;;  %v4844_v21 = vpop.eup %3678 }
 0x337   :  { %v887_v44 = vpop.f32.mrf.mxu1  ;;  %v708_v4 = vsel %vm650_vm10, %v4844_v21, 0.0 }
 0x338   :  { %v4810_v37 = vadd.f32 %v1166_v6, %v4652_v39  ;;  %v899_v46 = vmul.f32 0.17677669, %v887_v44  ;;  %v693_v6 = vmul.f32 1.442695, %v680_v16  ;;  %v695_v19 = vmul.f32 1.442695, %v681_v5 }
 0x33a   :  { %v1188_v55 = vsel %vm650_vm10, %v4810_v37, -inf  ;;  %v4839_v42 = vadd.f32 %v899_v46, %v4702_v9  ;;  %3680 = vpow2.f32 %v693_v6 }
 0x33b   :  { %706 = vadd.xlane.f32.xlu2 %v705_v2  ;;  %919 = vmax.xlane.f32.xlu0 %v918_v27  ;;  %v921_v27 = vsel %vm650_vm10, %v4825_v35, -inf  ;;  %3682 = vpow2.f32 %v695_v19 }
 0x33d   :  { %v1151_v41 = vpop.f32.mrf.mxu3 }
 0x33e   :  { %v1167_v51 = vmul.f32 0.17677669, %v1151_v41  ;;  %v674_v41 = vpop.xlane.xlu1 %673 }
 0x33f   :  { %v890_v56 = vpop.f32.mrf.mxu1 }
 0x340   :  { %v4813_v1 = vadd.f32 %v1167_v51, %v4670_v45  ;;  %v900_v52 = vmul.f32 0.17677669, %v890_v56  ;;  %v682_v56 = vsub.f32 %v4723_v13, %v674_v41 }
 0x342   :  { %v1191_v0 = vsel %vm650_vm10, %v4813_v1, -inf  ;;  %v4842_v51 = vadd.f32 %v900_v52, %v4716_v24 }
 0x343   :  { %1192 = vmax.xlane.f32.xlu1 %v1191_v0  ;;  %925 = vmax.xlane.f32.xlu2 %v924_v23  ;;  %v927_v0 = vsel %vm650_vm10, %v4839_v42, -inf }
 0x344   :  { %1189 = vmax.xlane.f32.xlu0 %v1188_v55  ;;  %v930_v23 = vsel %vm650_vm10, %v4842_v51, -inf  ;;  %v697_v55 = vmul.f32 1.442695, %v682_v56 }
 0x345   :  { %v1154_v15 = vpop.f32.mrf.mxu3 }
 0x346   :  { %v1168_v31 = vmul.f32 0.17677669, %v1154_v15  ;;  %v4856_v15 = vpop.eup %3680  ;;  %3684 = vpow2.f32 %v697_v55 }
 0x347   :  { %v1405_v28 = vpop.f32.mrf.mxu1  ;;  %v4858_v11 = vpop.eup %3682  ;;  %v714_v16 = vsel %vm650_vm10, %v4856_v15, 0.0 }
 0x348   :  { %v4828_v22 = vadd.f32 %v1168_v31, %v4687_v10  ;;  %v1429_v31 = vmul.f32 0.17677669, %v1405_v28 }
 0x34a   :  { %v1194_v2 = vsel %vm650_vm10, %v4828_v22, -inf }
 0x34b   :  { %712 = vadd.xlane.f32.xlu1 %v711_v63  ;;  %1195 = vmax.xlane.f32.xlu2 %v1194_v2  ;;  %v717_v63 = vsel %vm650_vm10, %v4858_v11, 0.0 }
 0x34c   :  { %922 = vmax.xlane.f32.xlu0 %v921_v27  ;;  %v4869_v5 = vpop.eup %3684 }
 0x34d   :  { %v720_v2 = vsel %vm650_vm10, %v4869_v5, 0.0  ;;  %v1157_v55 = vpop.f32.mrf.mxu3 }
 0x34f   :  { %v1408_v44 = vpop.f32.mrf.mxu1 }
 0x350   :  { %v1430_v53 = vmul.f32 0.17677669, %v1408_v44 }
 0x352   :  { %v4854_v20 = vadd.f32 %v1430_v53, %v4620_v60  ;;  %v4867_v60 = vadd.f32 %v1429_v31, %v4606_v50 }
 0x353   :  { %928 = vmax.xlane.f32.xlu2 %v927_v0  ;;  %931 = vmax.xlane.f32.xlu1 %v930_v23 }
 0x354   :  { %709 = vadd.xlane.f32.xlu0 %v708_v4  ;;  %v1448_v43 = vsel %vm650_vm10, %v4854_v20, -inf  ;;  %v1445_v27 = vsel %vm650_vm10, %v4867_v60, -inf }
 0x357   :  { %v1411_v13 = vpop.f32.mrf.mxu1 }
 0x358   :  { %v1431_v52 = vmul.f32 0.17677669, %v1411_v13 }
 0x35a   :  { %v4876_v6 = vadd.f32 %v1431_v52, %v4635_v12  ;;  %v1160_v52 = vpop.f32.mrf.mxu3 }
 0x35b   :  { %1449 = vmax.xlane.f32.xlu1 %v1448_v43  ;;  %715 = vadd.xlane.f32.xlu2 %v714_v16 }
 0x35c   :  { %718 = vadd.xlane.f32.xlu0 %v717_v63  ;;  %v1451_v44 = vsel %vm650_vm10, %v4876_v6, -inf }
 0x35f   :  { %v1414_v46 = vpop.f32.mrf.mxu1 }
 0x360   :  { %v1432_v28 = vmul.f32 0.17677669, %v1414_v46 }
 0x362   :  { %v4879_v19 = vadd.f32 %v1432_v28, %v4652_v39 }
 0x363   :  { %721 = vadd.xlane.f32.xlu1 %v720_v2  ;;  %1446 = vmax.xlane.f32.xlu2 %v1445_v27  ;;  %v1170_v27 = vmul.f32 0.17677669, %v1160_v52 }
 0x364   :  { %v1454_v56 = vsel %vm650_vm10, %v4879_v19, -inf }
 0x367   :  { %v1417_v50 = vpop.f32.mrf.mxu1 }
 0x368   :  { %v1433_v41 = vmul.f32 0.17677669, %v1417_v50 }
 0x36a   :  { %v4886_v53 = vadd.f32 %v1433_v41, %v4670_v45 }
 0x36b   :  { %1452 = vmax.xlane.f32.xlu1 %v1451_v44  ;;  %1455 = vmax.xlane.f32.xlu2 %v1454_v56  ;;  %v4907_v44 = vadd.f32 %v1170_v27, %v4716_v24 }
 0x36c   :  { %v1457_v12 = vsel %vm650_vm10, %v4886_v53, -inf }
 0x36d   :  { %1458 = vmax.xlane.f32.xlu0 %v1457_v12 }
 0x36f   :  { %v1420_v0 = vpop.f32.mrf.mxu1 }
 0x370   :  { %v1434_v39 = vmul.f32 0.17677669, %v1420_v0 }
 0x372   :  { %v4891_v23 = vadd.f32 %v1434_v39, %v4687_v10  ;;  %v1200_v39 = vsel %vm650_vm10, %v4907_v44, -inf }
 0x374   :  { %v1460_v4 = vsel %vm650_vm10, %v4891_v23, -inf }
 0x375   :  { %1461 = vmax.xlane.f32.xlu1 %v1460_v4 }
 0x377   :  { %v1423_v13 = vpop.f32.mrf.mxu1 }
 0x378   :  { %v1435_v31 = vmul.f32 0.17677669, %v1423_v13 }
 0x37a   :  { %v4896_v45 = vadd.f32 %v1435_v31, %v4702_v9 }
 0x37c   :  { %v1463_v43 = vsel %vm650_vm10, %v4896_v45, -inf }
 0x37d   :  { %1464 = vmax.xlane.f32.xlu2 %v1463_v43 }
 0x37f   :  { %v1426_v16 = vpop.f32.mrf.mxu1 }
 0x380   :  { %v1436_v63 = vmul.f32 0.17677669, %v1426_v16  ;;  %v911_v46 = vpop.xlane.xlu2 %910 }
 0x381   :  { %v933_v10 = vsub.f32 %v4756_v36, %v911_v46  ;;  %v1169_v36 = vmul.f32 0.17677669, %v1157_v55 }
 0x382   :  { %v4902_v28 = vadd.f32 %v1436_v63, %v4716_v24 }
 0x383   :  { %v941_v2 = vmul.f32 1.442695, %v933_v10  ;;  %v4917_v31 = vadd.f32 %v1169_v36, %v4702_v9 }
 0x384   :  { %v1466_v50 = vsel %vm650_vm10, %v4902_v28, -inf }
 0x385   :  { %3686 = vpow2.f32 %v941_v2  ;;  %1467 = vmax.xlane.f32.xlu0 %v1466_v50  ;;  %v1197_v16 = vsel %vm650_vm10, %v4917_v31, -inf }
 0x388   :  { %v914_v41 = vpop.xlane.xlu1 %913 }
 0x389   :  { %v934_v56 = vsub.f32 %v4761_v40, %v914_v41 }
 0x38b   :  { %v4910_v12 = vpop.eup %3686  ;;  %v943_v0 = vmul.f32 1.442695, %v934_v56 }
 0x38c   :  { %v957_v4 = vsel %vm650_vm10, %v4910_v12, 0.0 }
 0x38d   :  { %3688 = vpow2.f32 %v943_v0  ;;  %1201 = vmax.xlane.f32.xlu0 %v1200_v39  ;;  %958 = vadd.xlane.f32.xlu2 %v957_v4 }
 0x390   :  { %v917_v13 = vpop.xlane.xlu1 %916 }
 0x391   :  { %v935_v24 = vsub.f32 %v4767_v57, %v917_v13 }
 0x393   :  { %v4920_v40 = vpop.eup %3688  ;;  %v945_v43 = vmul.f32 1.442695, %v935_v24 }
 0x394   :  { %v960_v55 = vsel %vm650_vm10, %v4920_v40, 0.0 }
 0x395   :  { %3690 = vpow2.f32 %v945_v43  ;;  %961 = vadd.xlane.f32.xlu1 %v960_v55  ;;  %1198 = vmax.xlane.f32.xlu2 %v1197_v16 }
 0x396   :  { %v1181_v63 = vpop.xlane.xlu0 %1180 }
 0x398   :  { %v704_v52 = vpop.xlane.xlu1 %703 }
 0x399   :  { %3692 = vrcp.f32 %v704_v52 }
 0x39b   :  { %v4926_v46 = vpop.eup %3690 }
 0x39c   :  { %v963_v9 = vsel %vm650_vm10, %v4926_v46, 0.0 }
 0x39d   :  { %964 = vadd.xlane.f32.xlu0 %v963_v9 }
 0x39e   :  { %v4930_v57 = vpop.xlane.xlu0 %1183 }
 0x39f   :  { %v3693_v27 = vpop.eup %3692 }
 0x3a0   :  { %v732_v41 = vmul.f32 %v3693_v27, %v4774_v49  ;;  %v1203_v27 = vsub.f32 %v4772_v3, %v1181_v63 }
 0x3a6   :  { %v4932_v10 = vpop.xlane.xlu2 %1186  ;;  %v701_v2 = vpop.xlane.xlu0 %700 }
 0x3a7   :  { %3694 = vrcp.f32 %v701_v2 }
 0x3ad   :  { %v3695_v50 = vpop.eup %3694  ;;  %1541 = vrot.lane.b32.xlu2 %v4483_v48, %s3907_s25 }
 0x3ae   :  { %v731_v56 = vmul.f32 %v3695_v50, %v4787_v54  ;;  %v707_v0 = vpop.xlane.xlu2 %706  ;;  %1543 = vrot.lane.b32.xlu1 %v4477_v47, %s3907_s25  ;;  %v920_v36 = vpop.xlane.xlu0 %919 }
 0x3af   :  { %v936_v39 = vsub.f32 %v4797_v8, %v920_v36 }
 0x3b0   :  { %v739_v4 = vpack.c.bf16 %v732_v41, %v731_v56 }
 0x3b1   :  { %v947_v13 = vmul.f32 1.442695, %v936_v39 }
 0x3b2   :  { %3187 = vmatmul.msk.bf16.vlgmr.msra.gmra.mxu0 %vm650_vm10, %v739_v4  ;;  %v1211_v4 = vmul.f32 1.442695, %v1203_v27 }
 0x3b3   :  { %3696 = vpow2.f32 %v947_v13 }
 0x3b6   :  { %v926_v24 = vpop.xlane.xlu2 %925  ;;  %v4946_v49 = vpop.xlane.xlu1 %1192 }
 0x3b7   :  { %v4942_v43 = vpop.xlane.xlu0 %1189 }
 0x3b9   :  { %v4944_v55 = vpop.eup %3696 }
 0x3ba   :  { %v966_v54 = vsel %vm650_vm10, %v4944_v55, 0.0 }
 0x3bb   :  { %967 = vadd.xlane.f32.xlu0 %v966_v54 }
 0x3be   :  { %v4950_v16 = vpop.xlane.xlu2 %1195  ;;  %v713_v2 = vpop.xlane.xlu1 %712 }
 0x3bf   :  { %v923_v9 = vpop.xlane.xlu0 %922 }
 0x3c0   :  { %v937_v8 = vsub.f32 %v4825_v35, %v923_v9  ;;  %v938_v35 = vsub.f32 %v4807_v7, %v926_v24 }
 0x3c2   :  { %v949_v52 = vmul.f32 1.442695, %v937_v8 }
 0x3c4   :  { %3698 = vpow2.f32 %v949_v52 }
 0x3c5   :  { %3700 = vrcp.f32 %v707_v0  ;;  %v951_v0 = vmul.f32 1.442695, %v938_v35 }
 0x3c6   :  { %v929_v50 = vpop.xlane.xlu2 %928  ;;  %v932_v9 = vpop.xlane.xlu1 %931 }
 0x3c7   :  { %v939_v41 = vsub.f32 %v4839_v42, %v929_v50  ;;  %v710_v56 = vpop.xlane.xlu0 %709 }
 0x3c8   :  { %3702 = vrcp.f32 %v710_v56 }
 0x3c9   :  { %v953_v36 = vmul.f32 1.442695, %v939_v41 }
 0x3ca   :  { %v4955_v39 = vpop.eup %3698 }
 0x3cb   :  { %v969_v13 = vsel %vm650_vm10, %v4955_v39, 0.0  ;;  %v3701_v54 = vpop.eup %3700  ;;  %3704 = vpow2.f32 %v953_v36 }
 0x3cc   :  { %970 = vadd.xlane.f32.xlu0 %v969_v13  ;;  %3706 = vpow2.f32 %v1211_v4  ;;  %v733_v63 = vmul.f32 %v3701_v54, %v4799_v17 }
 0x3ce   :  { %v3703_v3 = vpop.eup %3702  ;;  %v716_v8 = vpop.xlane.xlu2 %715 }
 0x3cf   :  { %v734_v42 = vmul.f32 %v3703_v3, %v4844_v21  ;;  %3708 = vrcp.f32 %v716_v8  ;;  %v1450_v24 = vpop.xlane.xlu1 %1449  ;;  %v719_v35 = vpop.xlane.xlu0 %718  ;;  %v940_v8 = vsub.f32 %v4842_v51, %v932_v9 }
 0x3d0   :  { %3710 = vpow2.f32 %v951_v0  ;;  %v1470_v51 = vsub.f32 %v4854_v20, %v1450_v24  ;;  %v1206_v24 = vsub.f32 %v4810_v37, %v4942_v43 }
 0x3d1   :  { %v740_v52 = vpack.c.bf16 %v734_v42, %v733_v63  ;;  %v4962_v50 = vpop.eup %3704  ;;  %3712 = vrcp.f32 %v713_v2 }
 0x3d2   :  { %v4965_v27 = vpop.eup %3706  ;;  %v975_v7 = vsel %vm650_vm10, %v4962_v50, 0.0 }
 0x3d3   :  { %3188 = vmatmul.msk.bf16.gmra.mxu0 %vm650_vm10, %v740_v52  ;;  %v1227_v17 = vsel %vm650_vm10, %v4965_v27, 0.0 }
 0x3d5   :  { %v3709_v21 = vpop.eup %3708 }
 0x3d6   :  { %976 = vadd.xlane.f32.xlu2 %v975_v7  ;;  %v4971_v41 = vpop.eup %3710  ;;  %v736_v36 = vmul.f32 %v3709_v21, %v4856_v15  ;;  %v1447_v63 = vpop.xlane.xlu2 %1446 }
 0x3d7   :  { %v3713_v56 = vpop.eup %3712  ;;  %v972_v4 = vsel %vm650_vm10, %v4971_v41, 0.0  ;;  %v722_v2 = vpop.xlane.xlu1 %721 }
 0x3d8   :  { %1228 = vadd.xlane.f32.xlu1 %v1227_v17  ;;  %v735_v13 = vmul.f32 %v3713_v56, %v4822_v32  ;;  %3714 = vrcp.f32 %v722_v2  ;;  %v1205_v2 = vsub.f32 %v4790_v25, %v4932_v10  ;;  %v1469_v25 = vsub.f32 %v4867_v60, %v1447_v63 }
 0x3d9   :  { %3716 = vrcp.f32 %v719_v35 }
 0x3da   :  { %v741_v54 = vpack.c.bf16 %v736_v36, %v735_v13  ;;  %v1479_v36 = vmul.f32 1.442695, %v1470_v51  ;;  %v1477_v37 = vmul.f32 1.442695, %v1469_v25 }
 0x3de   :  { %v3715_v3 = vpop.eup %3714 }
 0x3df   :  { %v3717_v42 = vpop.eup %3716  ;;  %v738_v15 = vmul.f32 %v3715_v3, %v4869_v5  ;;  %v4988_v52 = vpop.xlane.xlu1 %1452  ;;  %v955_v5 = vmul.f32 1.442695, %v940_v8 }
 0x3e0   :  { %1277 = vrot.lane.b32.xlu0 %v4477_v47, %s3905_s30  ;;  %973 = vadd.xlane.f32.xlu1 %v972_v4  ;;  %v737_v32 = vmul.f32 %v3717_v42, %v4858_v11  ;;  %v1456_v47 = vpop.xlane.xlu2 %1455  ;;  %v1204_v11 = vsub.f32 %v4782_v29, %v4930_v57  ;;  %v1459_v4 = vpop.xlane.xlu0 %1458  ;;  %v1215_v42 = vmul.f32 1.442695, %v1205_v2 }
 0x3e1   :  { %3718 = vpow2.f32 %v955_v5  ;;  %v1473_v60 = vsub.f32 %v4886_v53, %v1459_v4 }
 0x3e2   :  { %v742_v0 = vpack.c.bf16 %v738_v15, %v737_v32  ;;  %v1213_v21 = vmul.f32 1.442695, %v1204_v11  ;;  %v1217_v32 = vmul.f32 1.442695, %v1206_v24 }
 0x3e3   :  { %3189 = vmatmul.msk.bf16.gmra.mxu0 %vm650_vm10, %v741_v54 }
 0x3e7   :  { %v4998_v56 = vpop.eup %3718 }
 0x3e8   :  { %v1462_v17 = vpop.xlane.xlu1 %1461  ;;  %v978_v9 = vsel %vm650_vm10, %v4998_v56, 0.0 }
 0x3ee   :  { %1539 = vrot.lane.b32.xlu2 %v4487_v18, %s3907_s25 }
 0x3f0   :  { %v4992_v7 = vpop.xlane.xlu2 %1464 }
 0x3f3   :  { %3190 = vmatmul.msk.bf16.gmra.mxu0 %vm650_vm10, %v742_v0 }
 0x3f6   :  { %1275 = vrot.lane.b32.xlu2 %v4483_v48, %s3905_s30 }
 0x3f8   :  { %v5013_v15 = vpop.xlane.xlu0 %1467 }
 0x3f9   :  { %1273 = vrot.lane.b32.xlu1 %v4487_v18, %s3905_s30 }
 0x3fe   :  { %1537 = vrot.lane.b32.xlu2 %v4498_v59, %s3907_s25 }
 0x400   :  { %v959_v48 = vpop.xlane.xlu2 %958  ;;  %v5024_v5 = vpop.xlane.xlu0 %1201 }
 0x401   :  { %3720 = vrcp.f32 %v959_v48  ;;  %v1485_v48 = vmul.f32 1.442695, %v1473_v60 }
 0x402   :  { %3722 = vpow2.f32 %v1213_v21 }
 0x407   :  { %v3721_v13 = vpop.eup %3720 }
 0x408   :  { %v962_v18 = vpop.xlane.xlu1 %961  ;;  %v5003_v29 = vpop.eup %3722  ;;  %v989_v54 = vmul.f32 %v3721_v13, %v4910_v12  ;;  %v1472_v12 = vsub.f32 %v4879_v19, %v1456_v47 }
 0x409   :  { %3724 = vrcp.f32 %v962_v18  ;;  %v1230_v35 = vsel %vm650_vm10, %v5003_v29, 0.0  ;;  %v1199_v43 = vpop.xlane.xlu2 %1198 }
 0x40a   :  { %979 = vadd.xlane.f32.xlu0 %v978_v9  ;;  %3726 = vpow2.f32 %v1479_v36  ;;  %v1483_v0 = vmul.f32 1.442695, %v1472_v12  ;;  %v1474_v36 = vsub.f32 %v4891_v23, %v1462_v17 }
 0x40b   :  { %3728 = vpow2.f32 %v1215_v42 }
 0x40c   :  { %3730 = vpow2.f32 %v1217_v32  ;;  %v1487_v13 = vmul.f32 1.442695, %v1474_v36  ;;  %v1475_v32 = vsub.f32 %v4896_v45, %v4992_v7 }
 0x40d   :  { %3732 = vpow2.f32 %v1477_v37 }
 0x40e   :  { %3734 = vpow2.f32 %v1483_v0 }
 0x40f   :  { %v3725_v57 = vpop.eup %3724  ;;  %3736 = vpow2.f32 %v1485_v48 }
 0x410   :  { %v990_v20 = vmul.f32 %v3725_v57, %v4920_v40  ;;  %v5017_v10 = vpop.eup %3726  ;;  %v965_v9 = vpop.xlane.xlu0 %964 }
 0x411   :  { %v1496_v40 = vsel %vm650_vm10, %v5017_v10, 0.0  ;;  %v5022_v8 = vpop.eup %3728  ;;  %v1542_v51 = vpop.permute.xlu2 %1541  ;;  %3738 = vrcp.f32 %v965_v9 }
 0x412   :  { %1231 = vadd.xlane.f32.xlu0 %v1230_v35  ;;  %v997_v3 = vpack.c.bf16 %v990_v20, %v989_v54  ;;  %v5026_v11 = vpop.eup %3730  ;;  %v1233_v19 = vsel %vm650_vm10, %v5022_v8, 0.0  ;;  %v1207_v54 = vsub.f32 %v4813_v1, %v4946_v49  ;;  %v1489_v49 = vmul.f32 1.442695, %v1475_v32 }
 0x413   :  { %v1236_v47 = vsel %vm650_vm10, %v5026_v11, 0.0  ;;  %v5033_v21 = vpop.eup %3732 }
 0x414   :  { %3207 = vmatmul.msk.bf16.vlgmr.msrb.gmra.mxu2 %vm650_vm10, %v997_v3  ;;  %v5035_v18 = vpop.eup %3734  ;;  %v1493_v53 = vsel %vm650_vm10, %v5033_v21, 0.0  ;;  %v1219_v23 = vmul.f32 1.442695, %v1207_v54 }
 0x415   :  { %v1502_v4 = vsel %vm650_vm10, %v5035_v18, 0.0  ;;  %v5042_v57 = vpop.eup %3736 }
 0x416   :  { %v1505_v20 = vsel %vm650_vm10, %v5042_v57, 0.0 }
 0x417   :  { %v3739_v24 = vpop.eup %3738 }
 0x418   :  { %v991_v3 = vmul.f32 %v3739_v24, %v4926_v46  ;;  %v1209_v46 = vsub.f32 %v4917_v31, %v1199_v43 }
 0x41a   :  { %1497 = vadd.xlane.f32.xlu0 %v1496_v40  ;;  %v1223_v45 = vmul.f32 1.442695, %v1209_v46 }
 0x420   :  { %v1544_v63 = vpop.permute.xlu1 %1543 }
 0x421   :  { %1565 = vmatpush.bf16.msra.mxu2 %v1544_v63 }
 0x422   :  { %1234 = vadd.xlane.f32.xlu0 %v1233_v19 }
 0x423   :  { %1237 = vadd.xlane.f32.xlu1 %v1236_v47  ;;  %v1471_v47 = vsub.f32 %v4876_v6, %v4988_v52  ;;  %v1476_v52 = vsub.f32 %v4902_v28, %v5013_v15 }
 0x425   :  { %1566 = vmatpush.bf16.msra.mxu2 %v1542_v51 }
 0x427   :  { %1494 = vadd.xlane.f32.xlu2 %v1493_v53  ;;  %v1481_v53 = vmul.f32 1.442695, %v1471_v47 }
 0x42a   :  { %1503 = vadd.xlane.f32.xlu0 %v1502_v4 }
 0x42e   :  { %v968_v2 = vpop.xlane.xlu0 %967 }
 0x42f   :  { %3740 = vrcp.f32 %v968_v2  ;;  %v1208_v2 = vsub.f32 %v4828_v22, %v4950_v16  ;;  %v1210_v22 = vsub.f32 %v4907_v44, %v5024_v5 }
 0x430   :  { %3742 = vpow2.f32 %v1487_v13 }
 0x431   :  { %3744 = vpow2.f32 %v1219_v23 }
 0x432   :  { %1506 = vadd.xlane.f32.xlu0 %v1505_v20  ;;  %3746 = vpow2.f32 %v1489_v49  ;;  %v1221_v20 = vmul.f32 1.442695, %v1208_v2 }
 0x433   :  { %3748 = vpow2.f32 %v1223_v45 }
 0x435   :  { %v3741_v17 = vpop.eup %3740 }
 0x436   :  { %v5048_v35 = vpop.eup %3742  ;;  %v992_v42 = vmul.f32 %v3741_v17, %v4944_v55  ;;  %v1225_v17 = vmul.f32 1.442695, %v1210_v22 }
 0x437   :  { %v1508_v1 = vsel %vm650_vm10, %v5048_v35, 0.0  ;;  %v5057_v12 = vpop.eup %3744 }
 0x438   :  { %v998_v25 = vpack.c.bf16 %v992_v42, %v991_v3  ;;  %v1239_v55 = vsel %vm650_vm10, %v5057_v12, 0.0  ;;  %v5064_v7 = vpop.eup %3746 }
 0x439   :  { %v1511_v40 = vsel %vm650_vm10, %v5064_v7, 0.0  ;;  %v5068_v63 = vpop.eup %3748 }
 0x43a   :  { %1509 = vadd.xlane.f32.xlu0 %v1508_v1  ;;  %3208 = vmatmul.msk.bf16.gmra.mxu2 %vm650_vm10, %v998_v25  ;;  %v1245_v31 = vsel %vm650_vm10, %v5068_v63, 0.0 }
 0x43f   :  { %1271 = vrot.lane.b32.xlu2 %v4498_v59, %s3905_s30  ;;  %v971_v0 = vpop.xlane.xlu0 %970 }
 0x440   :  { %3750 = vrcp.f32 %v971_v0 }
 0x442   :  { %1240 = vadd.xlane.f32.xlu0 %v1239_v55 }
 0x446   :  { %v3751_v48 = vpop.eup %3750 }
 0x447   :  { %v993_v36 = vmul.f32 %v3751_v48, %v4955_v39 }
 0x449   :  { %v977_v37 = vpop.xlane.xlu2 %976 }
 0x44a   :  { %1512 = vadd.xlane.f32.xlu0 %v1511_v40 }
 0x44b   :  { %v1229_v60 = vpop.xlane.xlu1 %1228 }
 0x451   :  { %v1540_v59 = vpop.permute.xlu2 %1539 }
 0x452   :  { %1246 = vadd.xlane.f32.xlu0 %v1245_v31  ;;  %v1278_v43 = vpop.permute.xlu0 %1277  ;;  %1567 = vmatpush.bf16.msra.mxu2 %v1540_v59 }
 0x453   :  { %1299 = vmatpush.bf16.msrb.mxu0 %v1278_v43  ;;  %v974_v19 = vpop.xlane.xlu1 %973 }
 0x454   :  { %3752 = vrcp.f32 %v974_v19 }
 0x455   :  { %3754 = vpow2.f32 %v1481_v53 }
 0x456   :  { %3756 = vpow2.f32 %v1221_v20 }
 0x459   :  { %v1276_v51 = vpop.permute.xlu2 %1275 }
 0x45a   :  { %v3753_v9 = vpop.eup %3752  ;;  %1300 = vmatpush.bf16.msrb.mxu0 %v1276_v51 }
 0x45b   :  { %v994_v4 = vmul.f32 %v3753_v9, %v4971_v41  ;;  %v5079_v6 = vpop.eup %3754  ;;  %v1491_v41 = vmul.f32 1.442695, %v1476_v52 }
 0x45c   :  { %v1499_v39 = vsel %vm650_vm10, %v5079_v6, 0.0  ;;  %v5085_v23 = vpop.eup %3756 }
 0x45d   :  { %v999_v13 = vpack.c.bf16 %v994_v4, %v993_v36  ;;  %3758 = vpow2.f32 %v1491_v41  ;;  %v1242_v16 = vsel %vm650_vm10, %v5085_v23, 0.0  ;;  %v5113_v41 = vpop.f32.mrf.mxu0 }
 0x45e   :  { %3760 = vpow2.f32 %v1225_v17 }
 0x45f   :  { %3209 = vmatmul.msk.bf16.gmra.mxu2 %vm650_vm10, %v999_v13  ;;  %3762 = vrcp.f32 %v977_v37 }
 0x461   :  { %v1538_v54 = vpop.permute.xlu2 %1537 }
 0x462   :  { %1568 = vmatpush.bf16.msra.mxu2 %v1538_v54 }
 0x463   :  { %v5091_v3 = vpop.eup %3758 }
 0x464   :  { %v1514_v28 = vsel %vm650_vm10, %v5091_v3, 0.0  ;;  %v5095_v15 = vpop.eup %3760 }
 0x465   :  { %v1248_v44 = vsel %vm650_vm10, %v5095_v15, 0.0  ;;  %v3763_v5 = vpop.eup %3762 }
 0x466   :  { %v995_v25 = vmul.f32 %v3763_v5, %v4962_v50 }
 0x468   :  { %1500 = vadd.xlane.f32.xlu2 %v1499_v39 }
 0x46b   :  { %v1274_v24 = vpop.permute.xlu1 %1273 }
 0x46c   :  { %1301 = vmatpush.bf16.msrb.mxu0 %v1274_v24 }
 0x470   :  { %1243 = vadd.xlane.f32.xlu2 %v1242_v16  ;;  %v5115_v16 = vpop.f32.mrf.mxu0 }
 0x478   :  { %1515 = vadd.xlane.f32.xlu2 %v1514_v28 }
 0x47d   :  { %v980_v42 = vpop.xlane.xlu0 %979 }
 0x47e   :  { %3764 = vrcp.f32 %v980_v42 }
 0x480   :  { %1249 = vadd.xlane.f32.xlu2 %v1248_v44 }
 0x484   :  { %v3765_v32 = vpop.eup %3764 }
 0x485   :  { %v996_v1 = vmul.f32 %v3765_v32, %v4998_v56  ;;  %v1232_v46 = vpop.xlane.xlu0 %1231 }
 0x486   :  { %3766 = vrcp.f32 %v1232_v46 }
 0x487   :  { %v1000_v49 = vpack.c.bf16 %v996_v1, %v995_v25  ;;  %3768 = vrcp.f32 %v1229_v60  ;;  %v5120_v1 = vpop.f32.mrf.mxu0 }
 0x489   :  { %3210 = vmatmul.msk.bf16.gmra.mxu2 %vm650_vm10, %v1000_v49 }
 0x48c   :  { %v3767_v40 = vpop.eup %3766 }
 0x48d   :  { %v1498_v55 = vpop.xlane.xlu0 %1497  ;;  %v3769_v0 = vpop.eup %3768  ;;  %v1260_v43 = vmul.f32 %v3767_v40, %v5003_v29 }
 0x48e   :  { %3770 = vrcp.f32 %v1498_v55  ;;  %v1259_v56 = vmul.f32 %v3769_v0, %v4965_v27 }
 0x490   :  { %v1267_v60 = vpack.c.bf16 %v1260_v43, %v1259_v56  ;;  %v5127_v43 = vpop.f32.mrf.mxu0 }
 0x494   :  { %v3771_v59 = vpop.eup %3770 }
 0x495   :  { %v1526_v47 = vmul.f32 %v3771_v59, %v5017_v10  ;;  %v1235_v36 = vpop.xlane.xlu0 %1234 }
 0x496   :  { %v1238_v9 = vpop.xlane.xlu1 %1237 }
 0x497   :  { %v1038_v45 = vpop.f32.mrf.mxu2 }
 0x49a   :  { %v1495_v37 = vpop.xlane.xlu2 %1494 }
 0x49b   :  { %3772 = vrcp.f32 %v1495_v37 }
 0x49c   :  { %3774 = vrcp.f32 %v1238_v9 }
 0x49d   :  { %3776 = vrcp.f32 %v1235_v36  ;;  %v1504_v13 = vpop.xlane.xlu0 %1503 }
 0x49e   :  { %3778 = vrcp.f32 %v1504_v13 }
 0x49f   :  { %v1040_v31 = vpop.f32.mrf.mxu2 }
 0x4a0   :  { %v3582_v50 = vpack.i.bf16 %v1040_v31, %v1038_v45 }
 0x4a1   :  { %v3773_v19 = vpop.eup %3772 }
 0x4a2   :  { %v1525_v48 = vmul.f32 %v3773_v19, %v5033_v21  ;;  %v1272_v51 = vpop.permute.xlu2 %1271  ;;  %3583 = vrot.lane.b32.xlu1 %v3582_v50, %s3907_s25  ;;  %v3775_v29 = vpop.eup %3774 }
 0x4a3   :  { %1302 = vmatpush.bf16.msrb.mxu0 %v1272_v51  ;;  %v3777_v27 = vpop.eup %3776  ;;  %v1262_v10 = vmul.f32 %v3775_v29, %v5026_v11  ;;  %v5133_v51 = vpop.f32.mrf.mxu0 }
 0x4a4   :  { %v1533_v53 = vpack.c.bf16 %v1526_v47, %v1525_v48  ;;  %v1261_v21 = vmul.f32 %v3777_v27, %v5022_v8  ;;  %v3779_v11 = vpop.eup %3778 }
 0x4a5   :  { %v1507_v52 = vpop.xlane.xlu0 %1506  ;;  %v1528_v44 = vmul.f32 %v3779_v11, %v5035_v18 }
 0x4a6   :  { %3227 = vmatmul.msk.bf16.vlgmr.msrb.gmra.mxu0 %vm650_vm10, %v1267_v60  ;;  %3247 = vmatmul.msk.bf16.vlgmr.msra.gmra.mxu2 %vm650_vm10, %v1533_v53  ;;  %v1268_v4 = vpack.c.bf16 %v1262_v10, %v1261_v21 }
 0x4ab   :  { %v5138_v29 = vpop.f32.mrf.mxu0 }
 0x4ad   :  { %v1510_v39 = vpop.xlane.xlu0 %1509 }
 0x4b5   :  { %v1241_v24 = vpop.xlane.xlu0 %1240 }
 0x4b6   :  { %3228 = vmatmul.msk.bf16.gmra.mxu0 %vm650_vm10, %v1268_v4 }
 0x4bd   :  { %v1043_v2 = vpop.f32.mrf.mxu2  ;;  %v1513_v5 = vpop.xlane.xlu0 %1512 }
 0x4c5   :  { %v1045_v54 = vpop.f32.mrf.mxu2  ;;  %v1247_v0 = vpop.xlane.xlu0 %1246 }
 0x4c6   :  { %v3597_v20 = vpack.i.bf16 %v1045_v54, %v1043_v2 }
 0x4c8   :  { %3598 = vrot.lane.b32.xlu1 %v3597_v20, %s3907_s25 }
 0x4db   :  { %v1501_v22 = vpop.xlane.xlu2 %1500 }
 0x4dc   :  { %3780 = vrcp.f32 %v1501_v22 }
 0x4dd   :  { %3782 = vrcp.f32 %v1241_v24  ;;  %v3514_v24 = vld [vmem:[%s5719_s9 + $0x38] sm:$0xff] }
 0x4de   :  { %1783 = vmatpush.bf16.msra.mxu3 %v3514_v24 }
 0x4e2   :  { %v3781_v8 = vpop.eup %3780  ;;  %v1048_v17 = vpop.f32.mrf.mxu2 }
 0x4e3   :  { %v1244_v28 = vpop.xlane.xlu2 %1243  ;;  %v1527_v42 = vmul.f32 %v3781_v8, %v5079_v6  ;;  %v3783_v25 = vpop.eup %3782  ;;  %v3513_v8 = vld [vmem:[%s5719_s9 + $0x30] sm:$0xff] }
 0x4e4   :  { %3784 = vrcp.f32 %v1244_v28  ;;  %v1263_v37 = vmul.f32 %v3783_v25, %v5057_v12  ;;  %1784 = vmatpush.bf16.msra.mxu3 %v3513_v8  ;;  %v3510_v25 = vld [vmem:[%s5719_s9 + $0x18] sm:$0xff] }
 0x4e5   :  { %v1534_v32 = vpack.c.bf16 %v1528_v44, %v1527_v42  ;;  %3786 = vrcp.f32 %v1510_v39  ;;  %v3511_v44 = vld [vmem:[%s5719_s9 + $0x20] sm:$0xff] }
 0x4e6   :  { %3788 = vrcp.f32 %v1507_v52 }
 0x4e7   :  { %3248 = vmatmul.msk.bf16.gmra.mxu2 %vm650_vm10, %v1534_v32  ;;  %3790 = vrcp.f32 %v1247_v0 }
 0x4ea   :  { %v3785_v49 = vpop.eup %3784  ;;  %v1050_v46 = vpop.f32.mrf.mxu2 }
 0x4eb   :  { %v3612_v55 = vpack.i.bf16 %v1050_v46, %v1048_v17  ;;  %v1516_v45 = vpop.xlane.xlu2 %1515  ;;  %v1264_v6 = vmul.f32 %v3785_v49, %v5085_v23  ;;  %v3787_v40 = vpop.eup %3786  ;;  %v3512_v17 = vld [vmem:[%s5719_s9 + $0x28] sm:$0xff]  ;;  %v3509_v46 = vld [vmem:[%s5719_s9 + $0x10] sm:$0xff] }
 0x4ec   :  { %v3789_v59 = vpop.eup %3788  ;;  %v1530_v31 = vmul.f32 %v3787_v40, %v5048_v35  ;;  %1785 = vmatpush.bf16.msra.mxu3 %v3512_v17 }
 0x4ed   :  { %3613 = vrot.lane.b32.xlu1 %v3612_v55, %s3907_s25  ;;  %v1269_v18 = vpack.c.bf16 %v1264_v6, %v1263_v37  ;;  %v1529_v19 = vmul.f32 %v3789_v59, %v5042_v57  ;;  %v3791_v23 = vpop.eup %3790 }
 0x4ee   :  { %v1265_v47 = vmul.f32 %v3791_v23, %v5068_v63  ;;  %v5141_v63 = vpop.f32.mrf.mxu0 }
 0x4ef   :  { %3229 = vmatmul.msk.bf16.gmra.mxu0 %vm650_vm10, %v1269_v18  ;;  %v1535_v12 = vpack.c.bf16 %v1530_v31, %v1529_v19  ;;  %v3507_v18 = vld [vmem:[%s5719_s9] sm:$0xff] }
 0x4f0   :  { %1786 = vmatpush.bf16.msra.mxu3 %v3511_v44 }
 0x4f3   :  { %v1250_v50 = vpop.xlane.xlu2 %1249 }
 0x4f4   :  { %3792 = vrcp.f32 %v1250_v50  ;;  %1787 = vmatpush.bf16.msra.mxu3 %v3510_v25 }
 0x4f5   :  { %3794 = vrcp.f32 %v1516_v45  ;;  %v3508_v45 = vld [vmem:[%s5719_s9 + $0x8] sm:$0xff] }
 0x4f6   :  { %3796 = vrcp.f32 %v1513_v5  ;;  %v5144_v21 = vpop.f32.mrf.mxu0 }
 0x4f7   :  { %3249 = vmatmul.msk.bf16.gmra.mxu2 %vm650_vm10, %v1535_v12 }
 0x4f8   :  { %1788 = vmatpush.bf16.msra.mxu3 %v3509_v46 }
 0x4fa   :  { %v3793_v56 = vpop.eup %3792 }
 0x4fb   :  { %v1266_v48 = vmul.f32 %v3793_v56, %v5095_v15  ;;  %v3795_v60 = vpop.eup %3794 }
 0x4fc   :  { %v3797_v9 = vpop.eup %3796  ;;  %v1532_v57 = vmul.f32 %v3795_v60, %v5091_v3  ;;  %1789 = vmatpush.bf16.msra.mxu3 %v3508_v45 }
 0x4fd   :  { %v1270_v35 = vpack.c.bf16 %v1266_v48, %v1265_v47  ;;  %v1531_v53 = vmul.f32 %v3797_v9, %v5064_v7 }
 0x4ff   :  { %3230 = vmatmul.msk.bf16.gmra.mxu0 %vm650_vm10, %v1270_v35  ;;  %v1536_v36 = vpack.c.bf16 %v1532_v57, %v1531_v53 }
 0x500   :  { %1790 = vmatpush.bf16.msra.mxu3 %v3507_v18 }
 0x507   :  { %3250 = vmatmul.msk.bf16.gmra.mxu2 %vm650_vm10, %v1536_v36 }
 0x50c   :  { %v1053_v27 = vpop.f32.mrf.mxu2 }
 0x514   :  { %v1055_v15 = vpop.f32.mrf.mxu2  ;;  %v3584_v19 = vpop.permute.xlu1 %3583 }
 0x515   :  { %v3627_v10 = vpack.i.bf16 %v1055_v15, %v1053_v27  ;;  %v3586_v12 = vunpack.i.h.bf16 %v3584_v19  ;;  %v3585_v23 = vunpack.i.l.bf16 %v3584_v19 }
 0x517   :  { %3628 = vrot.lane.b32.xlu1 %v3627_v10, %s3907_s25  ;;  %v1687_v60 = vsel %vm544_vm9, %v5115_v16, %v3586_v12  ;;  %v1686_v9 = vsel %vm544_vm9, %v5113_v41, %v3585_v23 }
 0x523   :  { %v1304_v4 = vpop.f32.mrf.mxu0 }
 0x529   :  { %v1570_v13 = vpop.f32.mrf.mxu2 }
 0x52b   :  { %v1306_v2 = vpop.f32.mrf.mxu0 }
 0x52c   :  { %v3587_v3 = vpack.i.bf16 %v1306_v2, %v1304_v4 }
 0x52e   :  { %3588 = vrot.lane.b32.xlu0 %v3587_v3, %s3905_s30 }
 0x531   :  { %v1572_v7 = vpop.f32.mrf.mxu2 }
 0x532   :  { %v3592_v54 = vpack.i.bf16 %v1572_v7, %v1570_v13 }
 0x533   :  { %v1309_v20 = vpop.f32.mrf.mxu0 }
 0x534   :  { %3593 = vrot.lane.b32.xlu2 %v3592_v54, %s3906_s3 }
 0x53a   :  { %v3599_v13 = vpop.permute.xlu1 %3598 }
 0x53b   :  { %v1311_v52 = vpop.f32.mrf.mxu0  ;;  %v3601_v3 = vunpack.i.h.bf16 %v3599_v13  ;;  %v3600_v7 = vunpack.i.l.bf16 %v3599_v13 }
 0x53c   :  { %v3602_v39 = vpack.i.bf16 %v1311_v52, %v1309_v20 }
 0x53d   :  { %v1689_v41 = vsel %vm544_vm9, %v5127_v43, %v3601_v3  ;;  %v1688_v52 = vsel %vm544_vm9, %v5120_v1, %v3600_v7 }
 0x53e   :  { %3603 = vrot.lane.b32.xlu0 %v3602_v39, %s3905_s30 }
 0x56a   :  { %v1575_v22 = vpop.f32.mrf.mxu2 }
 0x56c   :  { %v1314_v11 = vpop.f32.mrf.mxu0 }
 0x572   :  { %v1577_v28 = vpop.f32.mrf.mxu2 }
 0x573   :  { %v3607_v42 = vpack.i.bf16 %v1577_v28, %v1575_v22 }
 0x574   :  { %v1316_v5 = vpop.f32.mrf.mxu0 }
 0x575   :  { %v3617_v32 = vpack.i.bf16 %v1316_v5, %v1314_v11  ;;  %3608 = vrot.lane.b32.xlu2 %v3607_v42, %s3906_s3  ;;  %v3614_v42 = vpop.permute.xlu1 %3613 }
 0x576   :  { %v3616_v44 = vunpack.i.h.bf16 %v3614_v42  ;;  %v3615_v5 = vunpack.i.l.bf16 %v3614_v42 }
 0x577   :  { %3618 = vrot.lane.b32.xlu0 %v3617_v32, %s3905_s30 }
 0x578   :  { %v1691_v1 = vsel %vm544_vm9, %v5138_v29, %v3616_v44  ;;  %v1690_v46 = vsel %vm544_vm9, %v5133_v51, %v3615_v5 }
 0x57a   :  { %v1580_v49 = vpop.f32.mrf.mxu2 }
 0x57c   :  { %v1319_v55 = vpop.f32.mrf.mxu0 }
 0x582   :  { %v1582_v37 = vpop.f32.mrf.mxu2 }
 0x583   :  { %v3622_v6 = vpack.i.bf16 %v1582_v37, %v1580_v49 }
 0x584   :  { %v1321_v40 = vpop.f32.mrf.mxu0 }
 0x585   :  { %v3632_v0 = vpack.i.bf16 %v1321_v40, %v1319_v55  ;;  %3623 = vrot.lane.b32.xlu2 %v3622_v6, %s3906_s3 }
 0x587   :  { %3633 = vrot.lane.b32.xlu0 %v3632_v0, %s3905_s30 }
 0x58a   :  { %v1585_v59 = vpop.f32.mrf.mxu2 }
 0x58e   :  { %v3594_v56 = vpop.permute.xlu2 %3593 }
 0x58f   :  { %v3596_v57 = vunpack.i.h.bf16 %v3594_v56  ;;  %v3595_v53 = vunpack.i.l.bf16 %v3594_v56 }
 0x592   :  { %v1587_v31 = vpop.f32.mrf.mxu2 }
 0x593   :  { %v3637_v50 = vpack.i.bf16 %v1587_v31, %v1585_v59  ;;  %v3629_v59 = vpop.permute.xlu1 %3628 }
 0x594   :  { %v3631_v31 = vunpack.i.h.bf16 %v3629_v59 }
 0x595   :  { %3638 = vrot.lane.b32.xlu2 %v3637_v50, %s3906_s3  ;;  %v3630_v50 = vunpack.i.l.bf16 %v3629_v59 }
 0x596   :  { %v1693_v51 = vsel %vm544_vm9, %v5144_v21, %v3631_v31 }
 0x597   :  { %v1692_v56 = vsel %vm544_vm9, %v5141_v63, %v3630_v50 }
 0x5a0   :  { %v3589_v47 = vpop.permute.xlu0 %3588 }
 0x5a1   :  { %v3591_v48 = vunpack.i.h.bf16 %v3589_v47  ;;  %v3590_v35 = vunpack.i.l.bf16 %v3589_v47 }
 0x5a3   :  { %v1695_v36 = vsel %vm650_vm10, %v1687_v60, %v3591_v48  ;;  %v1694_v27 = vsel %vm650_vm10, %v1686_v9, %v3590_v35 }
 0x5a4   :  { %v1703_v15 = vsel %vm1702_vm11, %v1694_v27, %v3595_v53  ;;  %v1704_v10 = vsel %vm1702_vm11, %v1695_v36, %v3596_v57  ;;  %v3644_v36 = vld [vmem:[%s5720_s10] ss:$0 sm:$0xff] }
 0x5a5   :  { %v1711_v4 = vpack.c.bf16 %v1704_v10, %v1703_v15 }
 0x5a7   :  { %1791 = vmatmul.bf16.vlgmr.msra.gmra.mxu3 %v1711_v4 }
 0x5b0   :  { %v3604_v2 = vpop.permute.xlu0 %3603 }
 0x5b1   :  { %v3606_v16 = vunpack.i.h.bf16 %v3604_v2  ;;  %v3605_v54 = vunpack.i.l.bf16 %v3604_v2 }
 0x5b3   :  { %v1696_v22 = vsel %vm650_vm10, %v1688_v52, %v3605_v54  ;;  %v1697_v11 = vsel %vm650_vm10, %v1689_v41, %v3606_v16 }
 0x5cf   :  { %v3609_v20 = vpop.permute.xlu2 %3608 }
 0x5d0   :  { %v3611_v39 = vunpack.i.h.bf16 %v3609_v20  ;;  %v3610_v24 = vunpack.i.l.bf16 %v3609_v20 }
 0x5d2   :  { %v1705_v8 = vsel %vm1702_vm11, %v1696_v22, %v3610_v24  ;;  %v1706_v17 = vsel %vm1702_vm11, %v1697_v11, %v3611_v39 }
 0x5d3   :  { %v1712_v28 = vpack.c.bf16 %v1706_v17, %v1705_v8 }
 0x5d5   :  { %1796 = vmatmul.bf16.gmra.mxu3 %v1712_v28 }
 0x5df   :  { %v3624_v32 = vpop.permute.xlu2 %3623 }
 0x5e0   :  { %v3626_v55 = vunpack.i.h.bf16 %v3624_v32  ;;  %v3625_v45 = vunpack.i.l.bf16 %v3624_v32 }
 0x5e9   :  { %v3619_v43 = vpop.permute.xlu0 %3618 }
 0x5ea   :  { %v3621_v25 = vunpack.i.h.bf16 %v3619_v43  ;;  %v3620_v49 = vunpack.i.l.bf16 %v3619_v43 }
 0x5ec   :  { %v1698_v37 = vsel %vm650_vm10, %v1690_v46, %v3620_v49  ;;  %v1699_v6 = vsel %vm650_vm10, %v1691_v1, %v3621_v25 }
 0x5ed   :  { %v1707_v18 = vsel %vm1702_vm11, %v1698_v37, %v3625_v45  ;;  %v1708_v40 = vsel %vm1702_vm11, %v1699_v6, %v3626_v55 }
 0x5ee   :  { %v1713_v0 = vpack.c.bf16 %v1708_v40, %v1707_v18 }
 0x5ef   :  { %v3639_v19 = vpop.permute.xlu2 %3638 }
 0x5f0   :  { %1801 = vmatmul.bf16.gmra.mxu3 %v1713_v0  ;;  %v3641_v47 = vunpack.i.h.bf16 %v3639_v19  ;;  %v3640_v48 = vunpack.i.l.bf16 %v3639_v19 }
 0x5f9   :  { %v3634_v29 = vpop.permute.xlu0 %3633 }
 0x5fa   :  { %v3636_v12 = vunpack.i.h.bf16 %v3634_v29  ;;  %v3635_v23 = vunpack.i.l.bf16 %v3634_v29 }
 0x5fc   :  { %v1700_v35 = vsel %vm650_vm10, %v1692_v56, %v3635_v23  ;;  %v1701_v60 = vsel %vm650_vm10, %v1693_v51, %v3636_v12  ;;  %v3341_v23 = vld [vmem:[%s5723_s13 + $0x70] sm:$0xf]  ;;  %v3530_v51 = vld [vmem:[%s5723_s13 + $0x74] sm:$0xf0]  ;;  %v3529_v56 = vld [vmem:[%s5723_s13 + $0x74] sm:$0xf] }
 0x5fd   :  { %v1709_v9 = vsel %vm1702_vm11, %v1700_v35, %v3640_v48  ;;  %v1710_v57 = vsel %vm1702_vm11, %v1701_v60, %v3641_v47  ;;  %v3342_v47 = vor.u32 %v3530_v51, %v3341_v23  ;;  %v3343_v48 = vld [vmem:[%s5723_s13 + $0x78] sm:$0xf0]  ;;  %v3333_v60 = vld [vmem:[%s5723_s13 + $0x60] sm:$0xf] }
 0x5fe   :  { %v1714_v53 = vpack.c.bf16 %v1710_v57, %v1709_v9  ;;  %v3346_v35 = vor.u32 %v3529_v56, %v3343_v48  ;;  %v3528_v9 = vld [vmem:[%s5723_s13 + $0x64] sm:$0xf0]  ;;  %v3527_v57 = vld [vmem:[%s5723_s13 + $0x64] sm:$0xf] }
 0x5ff   :  { %2110 = vmatpush.bf16.msra.mxu0 %v3342_v47 }
 0x600   :  { %1806 = vmatmul.bf16.gmra.mxu3 %v1714_v53  ;;  %2139 = vmatpush.bf16.msrb.mxu1 %v3346_v35  ;;  %v3334_v53 = vor.u32 %v3528_v9, %v3333_v60 }
 0x603   :  { %2111 = vmatpush.bf16.msra.mxu0 %v3334_v53 }
 0x62a   :  { %v1792_v21 = vpop.f32.mrf.mxu3 }
 0x62b   :  { %v1793_v27 = vadd.f32 %v3644_v36, %v1792_v21 }
 0x62d   :  { %v1812_v63 = vadd.f32 %v1793_v27, %v4352_v26  ;;  %v3325_v27 = vld [vmem:[%s5723_s13 + $0x50] sm:$0xf] }
 0x62f   :  { %1822 = vadd.xlane.f32.xlu1 %v1812_v63 }
 0x632   :  { %v1794_v15 = vpop.f32.mrf.mxu3 }
 0x633   :  { %v1795_v10 = vadd.f32 %v3644_v36, %v1794_v15  ;;  %v3525_v15 = vld [vmem:[%s5723_s13 + $0x54] sm:$0xf] }
 0x635   :  { %v1813_v4 = vadd.f32 %v1795_v10, %v4363_v34 }
 0x637   :  { %1824 = vadd.xlane.f32.xlu0 %v1813_v4 }
 0x658   :  { %v1797_v13 = vpop.f32.mrf.mxu3 }
 0x659   :  { %v1798_v2 = vadd.f32 %v3644_v36, %v1797_v13 }
 0x65b   :  { %v1814_v3 = vadd.f32 %v1798_v2, %v4355_v58  ;;  %v3317_v2 = vld [vmem:[%s5723_s13 + $0x40] sm:$0xf] }
 0x65d   :  { %1826 = vadd.xlane.f32.xlu2 %v1814_v3 }
 0x660   :  { %v1799_v7 = vpop.f32.mrf.mxu3 }
 0x661   :  { %v1800_v16 = vadd.f32 %v3644_v36, %v1799_v7  ;;  %v3523_v7 = vld [vmem:[%s5723_s13 + $0x44] sm:$0xf] }
 0x663   :  { %v1815_v54 = vadd.f32 %v1800_v16, %v4358_v33 }
 0x665   :  { %1828 = vadd.xlane.f32.xlu1 %v1815_v54 }
 0x673   :  { %v1802_v20 = vpop.f32.mrf.mxu3 }
 0x674   :  { %v1803_v41 = vadd.f32 %v3644_v36, %v1802_v20 }
 0x676   :  { %v1816_v26 = vadd.f32 %v1803_v41, %v4381_v38  ;;  %v3309_v41 = vld [vmem:[%s5723_s13 + $0x30] sm:$0xf] }
 0x678   :  { %1830 = vadd.xlane.f32.xlu0 %v1816_v26 }
 0x67b   :  { %v1804_v52 = vpop.f32.mrf.mxu3 }
 0x67c   :  { %v1805_v39 = vadd.f32 %v3644_v36, %v1804_v52  ;;  %v3521_v52 = vld [vmem:[%s5723_s13 + $0x34] sm:$0xf] }
 0x67e   :  { %v1817_v34 = vadd.f32 %v1805_v39, %v4385_v30 }
 0x680   :  { %1832 = vadd.xlane.f32.xlu2 %v1817_v34 }
 0x683   :  { %v1807_v24 = vpop.f32.mrf.mxu3 }
 0x684   :  { %v1808_v22 = vadd.f32 %v3644_v36, %v1807_v24 }
 0x686   :  { %v1818_v58 = vadd.f32 %v1808_v22, %v4397_v62  ;;  %v3301_v22 = vld [vmem:[%s5723_s13 + $0x20] sm:$0xf] }
 0x688   :  { %1834 = vadd.xlane.f32.xlu2 %v1818_v58 }
 0x68b   :  { %v1809_v38 = vpop.f32.mrf.mxu3 }
 0x68c   :  { %v1810_v42 = vadd.f32 %v3644_v36, %v1809_v38  ;;  %v3335_v36 = vld [vmem:[%s5723_s13 + $0x68] sm:$0xf0] }
 0x68d   :  { %v3338_v21 = vor.u32 %v3527_v57, %v3335_v36 }
 0x68e   :  { %v5231_v5 = vadd.f32 %v1810_v42, %v4394_v61  ;;  %v3518_v42 = vld [vmem:[%s5723_s13 + $0x14] sm:$0xf0] }
 0x68f   :  { %2140 = vmatpush.bf16.msrb.mxu1 %v3338_v21 }
 0x6a2   :  { %v1823_v11 = vpop.xlane.xlu1 %1822 }
 0x6a3   :  { %v1838_v8 = vmul.f32 %v1823_v11, %v4061_v14  ;;  %v3519_v11 = vld [vmem:[%s5723_s13 + $0x24] sm:$0xf] }
 0x6a5   :  { %v5221_v33 = vsub.f32 %v1812_v63, %v1838_v8  ;;  %v3526_v63 = vld [vmem:[%s5723_s13 + $0x54] sm:$0xf0] }
 0x6a6   :  { %v3326_v10 = vor.u32 %v3526_v63, %v3325_v27 }
 0x6a7   :  { %v1854_v17 = vmul.f32 %v5221_v33, %v5221_v33 }
 0x6a8   :  { %2112 = vmatpush.bf16.msra.mxu0 %v3326_v10 }
 0x6a9   :  { %1862 = vadd.xlane.f32.xlu1 %v1854_v17  ;;  %v3303_v17 = vld [vmem:[%s5723_s13 + $0x28] sm:$0xf0] }
 0x6aa   :  { %v1825_v28 = vpop.xlane.xlu0 %1824  ;;  %v3306_v38 = vor.u32 %v3519_v11, %v3303_v17 }
 0x6ab   :  { %v1839_v30 = vmul.f32 %v1825_v28, %v4061_v14  ;;  %v3293_v28 = vld [vmem:[%s5723_s13 + $0x10] sm:$0xf] }
 0x6ad   :  { %v5226_v44 = vsub.f32 %v1813_v4, %v1839_v30  ;;  %v3327_v4 = vld [vmem:[%s5723_s13 + $0x58] sm:$0xf0]  ;;  %v3517_v30 = vld [vmem:[%s5723_s13 + $0x14] sm:$0xf] }
 0x6ae   :  { %v3330_v13 = vor.u32 %v3525_v15, %v3327_v4  ;;  %v5366_v15 = vld [vmem:[%s5721_s11] ss:$0 sm:$0xff] }
 0x6af   :  { %v1855_v62 = vmul.f32 %v5226_v44, %v5226_v44 }
 0x6b0   :  { %2141 = vmatpush.bf16.msrb.mxu1 %v3330_v13 }
 0x6b1   :  { %1864 = vadd.xlane.f32.xlu0 %v1855_v62  ;;  %1836 = vadd.xlane.f32.xlu1 %v5231_v5 }
 0x6d0   :  { %v1827_v32 = vpop.xlane.xlu2 %1826 }
 0x6d1   :  { %v1840_v43 = vmul.f32 %v1827_v32, %v4061_v14  ;;  %v3294_v32 = vor.u32 %v3518_v42, %v3293_v28 }
 0x6d3   :  { %v5235_v25 = vsub.f32 %v1814_v3, %v1840_v43  ;;  %v3524_v3 = vld [vmem:[%s5723_s13 + $0x44] sm:$0xf0]  ;;  %v3295_v43 = vld [vmem:[%s5723_s13 + $0x18] sm:$0xf0] }
 0x6d4   :  { %v3318_v16 = vor.u32 %v3524_v3, %v3317_v2  ;;  %v5372_v2 = vld [vmem:[%s5722_s12] ss:$0 sm:$0xff] }
 0x6d5   :  { %v1856_v49 = vmul.f32 %v5235_v25, %v5235_v25 }
 0x6d6   :  { %2113 = vmatpush.bf16.msra.mxu0 %v3318_v16 }
 0x6d7   :  { %1866 = vadd.xlane.f32.xlu0 %v1856_v49 }
 0x6d8   :  { %v1829_v1 = vpop.xlane.xlu1 %1828 }
 0x6d9   :  { %v1841_v46 = vmul.f32 %v1829_v1, %v4061_v14  ;;  %v3298_v1 = vor.u32 %v3517_v30, %v3295_v43 }
 0x6db   :  { %v5240_v55 = vsub.f32 %v1815_v54, %v1841_v46  ;;  %v3319_v54 = vld [vmem:[%s5723_s13 + $0x48] sm:$0xf0] }
 0x6dc   :  { %v3322_v20 = vor.u32 %v3523_v7, %v3319_v54 }
 0x6dd   :  { %v1857_v61 = vmul.f32 %v5240_v55, %v5240_v55 }
 0x6de   :  { %2142 = vmatpush.bf16.msrb.mxu1 %v3322_v20 }
 0x6df   :  { %1868 = vadd.xlane.f32.xlu2 %v1857_v61  ;;  %v3285_v61 = vld [vmem:[%s5723_s13] sm:$0xf] }
 0x6eb   :  { %v1831_v45 = vpop.xlane.xlu0 %1830 }
 0x6ec   :  { %v1842_v37 = vmul.f32 %v1831_v45, %v4061_v14  ;;  %v3516_v45 = vld [vmem:[%s5723_s13 + $0x4] sm:$0xf0] }
 0x6ee   :  { %v5245_v6 = vsub.f32 %v1816_v26, %v1842_v37  ;;  %v3522_v26 = vld [vmem:[%s5723_s13 + $0x34] sm:$0xf0]  ;;  %v3286_v37 = vor.u32 %v3516_v45, %v3285_v61 }
 0x6ef   :  { %v3310_v39 = vor.u32 %v3522_v26, %v3309_v41 }
 0x6f0   :  { %v1858_v18 = vmul.f32 %v5245_v6, %v5245_v6 }
 0x6f1   :  { %2114 = vmatpush.bf16.msra.mxu0 %v3310_v39 }
 0x6f2   :  { %1870 = vadd.xlane.f32.xlu1 %v1858_v18  ;;  %v3515_v18 = vld [vmem:[%s5723_s13 + $0x4] sm:$0xf] }
 0x6f3   :  { %v1833_v40 = vpop.xlane.xlu2 %1832 }
 0x6f4   :  { %v1843_v0 = vmul.f32 %v1833_v40, %v4061_v14  ;;  %v3287_v40 = vld [vmem:[%s5723_s13 + $0x8] sm:$0xf0] }
 0x6f6   :  { %v5250_v59 = vsub.f32 %v1817_v34, %v1843_v0  ;;  %v3311_v34 = vld [vmem:[%s5723_s13 + $0x38] sm:$0xf0]  ;;  %v3290_v0 = vor.u32 %v3515_v18, %v3287_v40 }
 0x6f7   :  { %v3314_v24 = vor.u32 %v3521_v52, %v3311_v34 }
 0x6f8   :  { %v1859_v31 = vmul.f32 %v5250_v59, %v5250_v59 }
 0x6f9   :  { %2143 = vmatpush.bf16.msrb.mxu1 %v3314_v24 }
 0x6fa   :  { %1872 = vadd.xlane.f32.xlu0 %v1859_v31 }
 0x6fb   :  { %v1835_v50 = vpop.xlane.xlu2 %1834 }
 0x6fc   :  { %v1844_v19 = vmul.f32 %v1835_v50, %v4061_v14 }
 0x6fd   :  { %2144 = vmatpush.bf16.msrb.mxu1 %v3306_v38 }
 0x6fe   :  { %v5255_v29 = vsub.f32 %v1818_v58, %v1844_v19  ;;  %v3520_v58 = vld [vmem:[%s5723_s13 + $0x24] sm:$0xf0] }
 0x6ff   :  { %v3302_v8 = vor.u32 %v3520_v58, %v3301_v22 }
 0x700   :  { %v1860_v12 = vmul.f32 %v5255_v29, %v5255_v29 }
 0x701   :  { %2115 = vmatpush.bf16.msra.mxu0 %v3302_v8  ;;  %2145 = vmatpush.bf16.msrb.mxu1 %v3298_v1 }
 0x702   :  { %1874 = vadd.xlane.f32.xlu2 %v1860_v12 }
 0x705   :  { %2116 = vmatpush.bf16.msra.mxu0 %v3294_v32  ;;  %2146 = vmatpush.bf16.msrb.mxu1 %v3290_v0 }
 0x709   :  { %2117 = vmatpush.bf16.msra.mxu0 %v3286_v37 }
 0x71c   :  { %v1863_v62 = vpop.xlane.xlu1 %1862 }
 0x71d   :  { %v1878_v49 = vmul.f32 %v1863_v62, %v4061_v14 }
 0x71f   :  { %v1886_v46 = vadd.f32 1e-12, %v1878_v49 }
 0x721   :  { %3798 = vrsqrt.f32 %v1886_v46  ;;  %vm1900_vm13 = vweird.f32 %v1886_v46 }
 0x724   :  { %v1865_v31 = vpop.xlane.xlu0 %1864  ;;  %v1837_v50 = vpop.xlane.xlu1 %1836 }
 0x725   :  { %v1879_v19 = vmul.f32 %v1865_v31, %v4061_v14  ;;  %v1845_v12 = vmul.f32 %v1837_v50, %v4061_v14 }
 0x727   :  { %v3799_v23 = vpop.eup %3798  ;;  %v1887_v51 = vadd.f32 1e-12, %v1879_v19  ;;  %v5359_v56 = vsub.f32 %v5231_v5, %v1845_v12 }
 0x728   :  { %v1895_v47 = vmul.f32 %v3799_v23, %v1886_v46  ;;  %vm1901_vm12 = vweird.f32 %v3799_v23 }
 0x729   :  { %3800 = vrsqrt.f32 %v1887_v51  ;;  %v1861_v48 = vmul.f32 %v5359_v56, %v5359_v56  ;;  %vm1902_vm14 = vmor %vm1900_vm13, %vm1901_vm12  ;;  %vm1910_vm0 = vweird.f32 %v1887_v51 }
 0x72a   :  { %v1896_v35 = vmul.f32 %v3799_v23, %v1895_v47 }
 0x72b   :  { %1876 = vadd.xlane.f32.xlu1 %v1861_v48 }
 0x72c   :  { %v1897_v60 = vmul.f32 0.5, %v1896_v35 }
 0x72e   :  { %v1898_v9 = vsub.f32 1.5, %v1897_v60 }
 0x72f   :  { %v3801_v57 = vpop.eup %3800 }
 0x730   :  { %v1899_v53 = vmul.f32 %v3799_v23, %v1898_v9  ;;  %v1905_v36 = vmul.f32 %v3801_v57, %v1887_v51  ;;  %vm1911_vm15 = vweird.f32 %v3801_v57 }
 0x731   :  { %vm1912_vm1 = vmor %vm1910_vm0, %vm1911_vm15 }
 0x732   :  { %v1906_v21 = vmul.f32 %v3801_v57, %v1905_v36  ;;  %v1903_v27 = vsel %vm1902_vm14, %v3799_v23, %v1899_v53 }
 0x733   :  { %v1974_v10 = vmul.f32 %v1903_v27, %v5221_v33 }
 0x734   :  { %v1907_v63 = vmul.f32 0.5, %v1906_v21 }
 0x735   :  { %v1985_v3 = vmul.f32 %v5366_v15, %v1974_v10 }
 0x736   :  { %v1908_v5 = vsub.f32 1.5, %v1907_v63 }
 0x737   :  { %v5378_v54 = vadd.f32 %v5372_v2, %v1985_v3 }
 0x738   :  { %v1909_v4 = vmul.f32 %v3801_v57, %v1908_v5 }
 0x73a   :  { %v1913_v13 = vsel %vm1912_vm1, %v3801_v57, %v1909_v4 }
 0x73b   :  { %v1975_v7 = vmul.f32 %v1913_v13, %v5226_v44 }
 0x73d   :  { %v1986_v16 = vmul.f32 %v5366_v15, %v1975_v7 }
 0x73f   :  { %v5381_v33 = vadd.f32 %v5372_v2, %v1986_v16 }
 0x741   :  { %v2004_v20 = vpack.c.bf16 %v5381_v33, %v5378_v54 }
 0x743   :  { %2118 = vmatmul.bf16.vlgmr.msra.gmra.mxu0 %v2004_v20  ;;  %2147 = vmatmul.bf16.vlgmr.msrb.gmra.mxu1 %v2004_v20 }
 0x74a   :  { %v1867_v41 = vpop.xlane.xlu0 %1866 }
 0x74b   :  { %v1880_v26 = vmul.f32 %v1867_v41, %v4061_v14 }
 0x74d   :  { %v1888_v52 = vadd.f32 1e-12, %v1880_v26 }
 0x74f   :  { %3802 = vrsqrt.f32 %v1888_v52  ;;  %vm1920_vm3 = vweird.f32 %v1888_v52 }
 0x752   :  { %v1869_v39 = vpop.xlane.xlu2 %1868 }
 0x753   :  { %v1881_v44 = vmul.f32 %v1869_v39, %v4061_v14 }
 0x755   :  { %v3803_v34 = vpop.eup %3802  ;;  %v1889_v24 = vadd.f32 1e-12, %v1881_v44 }
 0x756   :  { %v1915_v22 = vmul.f32 %v3803_v34, %v1888_v52  ;;  %vm1921_vm2 = vweird.f32 %v3803_v34 }
 0x757   :  { %3804 = vrsqrt.f32 %v1889_v24  ;;  %vm1922_vm4 = vmor %vm1920_vm3, %vm1921_vm2  ;;  %vm1930_vm6 = vweird.f32 %v1889_v24 }
 0x758   :  { %v1916_v58 = vmul.f32 %v3803_v34, %v1915_v22  ;;  %v3538_v22 = vld [vmem:[%s5725_s15 + $0x38] sm:$0xff] }
 0x759   :  { %2452 = vmatpush.bf16.msrb.mxu2 %v3538_v22 }
 0x75a   :  { %v1917_v11 = vmul.f32 0.5, %v1916_v58  ;;  %v3546_v58 = vld [vmem:[%s5725_s15 + $0x78] sm:$0xff] }
 0x75b   :  { %2481 = vmatpush.bf16.msrb.mxu3 %v3546_v58 }
 0x75c   :  { %v1918_v8 = vsub.f32 1.5, %v1917_v11 }
 0x75d   :  { %v3805_v17 = vpop.eup %3804 }
 0x75e   :  { %v1919_v38 = vmul.f32 %v3803_v34, %v1918_v8  ;;  %v1925_v28 = vmul.f32 %v3805_v17, %v1889_v24  ;;  %vm1931_vm5 = vweird.f32 %v3805_v17 }
 0x75f   :  { %vm1932_vm7 = vmor %vm1930_vm6, %vm1931_vm5 }
 0x760   :  { %v1926_v42 = vmul.f32 %v3805_v17, %v1925_v28  ;;  %v1923_v30 = vsel %vm1922_vm4, %v3803_v34, %v1919_v38  ;;  %v3545_v38 = vld [vmem:[%s5725_s15 + $0x70] sm:$0xff] }
 0x761   :  { %v1976_v43 = vmul.f32 %v1923_v30, %v5235_v25  ;;  %2482 = vmatpush.bf16.msrb.mxu3 %v3545_v38 }
 0x762   :  { %v1927_v62 = vmul.f32 0.5, %v1926_v42 }
 0x763   :  { %v1987_v18 = vmul.f32 %v5366_v15, %v1976_v43 }
 0x764   :  { %v1928_v32 = vsub.f32 1.5, %v1927_v62  ;;  %v3536_v62 = vld [vmem:[%s5725_s15 + $0x28] sm:$0xff] }
 0x765   :  { %v1871_v49 = vpop.xlane.xlu1 %1870  ;;  %v5393_v31 = vadd.f32 %v5372_v2, %v1987_v18 }
 0x766   :  { %v1929_v1 = vmul.f32 %v3805_v17, %v1928_v32  ;;  %v1882_v46 = vmul.f32 %v1871_v49, %v4061_v14  ;;  %v3544_v32 = vld [vmem:[%s5725_s15 + $0x68] sm:$0xff] }
 0x767   :  { %2483 = vmatpush.bf16.msrb.mxu3 %v3544_v32 }
 0x768   :  { %v1933_v61 = vsel %vm1932_vm7, %v3805_v17, %v1929_v1  ;;  %v1890_v45 = vadd.f32 1e-12, %v1882_v46  ;;  %v3537_v17 = vld [vmem:[%s5725_s15 + $0x30] sm:$0xff] }
 0x769   :  { %v1977_v37 = vmul.f32 %v1933_v61, %v5240_v55  ;;  %2453 = vmatpush.bf16.msrb.mxu2 %v3537_v17  ;;  %v3535_v61 = vld [vmem:[%s5725_s15 + $0x20] sm:$0xff] }
 0x76a   :  { %3806 = vrsqrt.f32 %v1890_v45  ;;  %vm1940_vm9 = vweird.f32 %v1890_v45 }
 0x76b   :  { %v1988_v40 = vmul.f32 %v5366_v15, %v1977_v37 }
 0x76d   :  { %v1873_v0 = vpop.xlane.xlu0 %1872  ;;  %v5396_v25 = vadd.f32 %v5372_v2, %v1988_v40  ;;  %2454 = vmatpush.bf16.msrb.mxu2 %v3536_v62 }
 0x76e   :  { %v1883_v50 = vmul.f32 %v1873_v0, %v4061_v14 }
 0x76f   :  { %v2005_v19 = vpack.c.bf16 %v5396_v25, %v5393_v31 }
 0x770   :  { %v3807_v12 = vpop.eup %3806  ;;  %v1891_v23 = vadd.f32 1e-12, %v1883_v50  ;;  %v3542_v50 = vld [vmem:[%s5725_s15 + $0x58] sm:$0xff] }
 0x771   :  { %v1935_v55 = vmul.f32 %v3807_v12, %v1890_v45  ;;  %2123 = vmatmul.bf16.gmra.mxu0 %v2005_v19  ;;  %2152 = vmatmul.bf16.gmra.mxu1 %v2005_v19  ;;  %vm1941_vm8 = vweird.f32 %v3807_v12  ;;  %v3543_v45 = vld [vmem:[%s5725_s15 + $0x60] sm:$0xff] }
 0x772   :  { %3808 = vrsqrt.f32 %v1891_v23  ;;  %vm1942_vm11 = vmor %vm1940_vm9, %vm1941_vm8  ;;  %vm1950_vm13 = vweird.f32 %v1891_v23  ;;  %2455 = vmatpush.bf16.msrb.mxu2 %v3535_v61  ;;  %2484 = vmatpush.bf16.msrb.mxu3 %v3543_v45 }
 0x773   :  { %v1936_v51 = vmul.f32 %v3807_v12, %v1935_v55  ;;  %v3541_v55 = vld [vmem:[%s5725_s15 + $0x50] sm:$0xff] }
 0x775   :  { %v1937_v47 = vmul.f32 0.5, %v1936_v51  ;;  %v1875_v13 = vpop.xlane.xlu2 %1874 }
 0x776   :  { %v1884_v20 = vmul.f32 %v1875_v13, %v4061_v14  ;;  %2485 = vmatpush.bf16.msrb.mxu3 %v3542_v50 }
 0x777   :  { %v1938_v48 = vsub.f32 1.5, %v1937_v47 }
 0x778   :  { %v3809_v35 = vpop.eup %3808  ;;  %v1892_v41 = vadd.f32 1e-12, %v1884_v20 }
 0x779   :  { %v1939_v60 = vmul.f32 %v3807_v12, %v1938_v48  ;;  %v1945_v9 = vmul.f32 %v3809_v35, %v1891_v23  ;;  %vm1951_vm12 = vweird.f32 %v3809_v35  ;;  %v3532_v48 = vld [vmem:[%s5725_s15 + $0x8] sm:$0xff] }
 0x77a   :  { %vm1952_vm14 = vmor %vm1950_vm13, %vm1951_vm12  ;;  %3810 = vrsqrt.f32 %v1892_v41  ;;  %vm1960_vm0 = vweird.f32 %v1892_v41  ;;  %2486 = vmatpush.bf16.msrb.mxu3 %v3541_v55 }
 0x77b   :  { %v1946_v57 = vmul.f32 %v3809_v35, %v1945_v9  ;;  %v1943_v53 = vsel %vm1942_vm11, %v3807_v12, %v1939_v60 }
 0x77c   :  { %v1978_v27 = vmul.f32 %v1943_v53, %v5245_v6 }
 0x77d   :  { %v1947_v36 = vmul.f32 0.5, %v1946_v57 }
 0x77e   :  { %v1989_v4 = vmul.f32 %v5366_v15, %v1978_v27 }
 0x77f   :  { %v1948_v21 = vsub.f32 1.5, %v1947_v36  ;;  %v3531_v36 = vld [vmem:[%s5725_s15] sm:$0xff] }
 0x780   :  { %v5406_v7 = vadd.f32 %v5372_v2, %v1989_v4 }
 0x781   :  { %v1949_v63 = vmul.f32 %v3809_v35, %v1948_v21  ;;  %v3539_v21 = vld [vmem:[%s5725_s15 + $0x40] sm:$0xff] }
 0x783   :  { %v1953_v5 = vsel %vm1952_vm14, %v3809_v35, %v1949_v63  ;;  %v3540_v35 = vld [vmem:[%s5725_s15 + $0x48] sm:$0xff] }
 0x784   :  { %v1979_v10 = vmul.f32 %v1953_v5, %v5250_v59  ;;  %v3811_v59 = vpop.eup %3810  ;;  %2487 = vmatpush.bf16.msrb.mxu3 %v3540_v35 }
 0x785   :  { %v1955_v26 = vmul.f32 %v3811_v59, %v1892_v41  ;;  %vm1961_vm15 = vweird.f32 %v3811_v59 }
 0x786   :  { %v1990_v3 = vmul.f32 %v5366_v15, %v1979_v10  ;;  %vm1962_vm1 = vmor %vm1960_vm0, %vm1961_vm15 }
 0x787   :  { %v1956_v52 = vmul.f32 %v3811_v59, %v1955_v26 }
 0x788   :  { %v5409_v16 = vadd.f32 %v5372_v2, %v1990_v3  ;;  %2488 = vmatpush.bf16.msrb.mxu3 %v3539_v21 }
 0x789   :  { %v1957_v24 = vmul.f32 0.5, %v1956_v52 }
 0x78a   :  { %v2006_v6 = vpack.c.bf16 %v5409_v16, %v5406_v7 }
 0x78b   :  { %v1958_v11 = vsub.f32 1.5, %v1957_v24 }
 0x78c   :  { %2128 = vmatmul.bf16.gmra.mxu0 %v2006_v6  ;;  %2157 = vmatmul.bf16.gmra.mxu1 %v2006_v6 }
 0x78d   :  { %v1959_v28 = vmul.f32 %v3811_v59, %v1958_v11 }
 0x78f   :  { %v1963_v43 = vsel %vm1962_vm1, %v3811_v59, %v1959_v28 }
 0x790   :  { %v1980_v46 = vmul.f32 %v1963_v43, %v5255_v29  ;;  %v3534_v29 = vld [vmem:[%s5725_s15 + $0x18] sm:$0xff] }
 0x791   :  { %2456 = vmatpush.bf16.msrb.mxu2 %v3534_v29 }
 0x792   :  { %v1991_v0 = vmul.f32 %v5366_v15, %v1980_v46 }
 0x794   :  { %v5450_v12 = vadd.f32 %v5372_v2, %v1991_v0 }
 0x79e   :  { %v1877_v39 = vpop.xlane.xlu1 %1876 }
 0x79f   :  { %v1885_v44 = vmul.f32 %v1877_v39, %v4061_v14 }
 0x7a1   :  { %v1893_v34 = vadd.f32 1e-12, %v1885_v44 }
 0x7a3   :  { %3812 = vrsqrt.f32 %v1893_v34  ;;  %vm1970_vm3 = vweird.f32 %v1893_v34 }
 0x7a9   :  { %v3813_v8 = vpop.eup %3812 }
 0x7aa   :  { %v1965_v42 = vmul.f32 %v3813_v8, %v1893_v34  ;;  %vm1971_vm2 = vweird.f32 %v3813_v8 }
 0x7ab   :  { %vm1972_vm4 = vmor %vm1970_vm3, %vm1971_vm2 }
 0x7ac   :  { %v1966_v30 = vmul.f32 %v3813_v8, %v1965_v42 }
 0x7ae   :  { %v1967_v49 = vmul.f32 0.5, %v1966_v30 }
 0x7b0   :  { %v1968_v1 = vsub.f32 1.5, %v1967_v49 }
 0x7b2   :  { %v1969_v37 = vmul.f32 %v3813_v8, %v1968_v1 }
 0x7b4   :  { %v1973_v18 = vsel %vm1972_vm4, %v3813_v8, %v1969_v37 }
 0x7b5   :  { %v1981_v40 = vmul.f32 %v1973_v18, %v5359_v56  ;;  %v3533_v56 = vld [vmem:[%s5725_s15 + $0x10] sm:$0xff] }
 0x7b6   :  { %2457 = vmatpush.bf16.msrb.mxu2 %v3533_v56 }
 0x7b7   :  { %v1992_v19 = vmul.f32 %v5366_v15, %v1981_v40  ;;  %v2024_v15 = vld [vmem:[%s5724_s14] sm:$0x3] }
 0x7b8   :  { %v5468_v47 = vperm.slane %v2024_v15, 1 }
 0x7b9   :  { %v5453_v23 = vadd.f32 %v5372_v2, %v1992_v19  ;;  %v5466_v2 = vperm.slane %v2024_v15, 0 }
 0x7ba   :  { %2458 = vmatpush.bf16.msrb.mxu2 %v3532_v48 }
 0x7bb   :  { %v2007_v51 = vpack.c.bf16 %v5453_v23, %v5450_v12 }
 0x7bd   :  { %2133 = vmatmul.bf16.gmra.mxu0 %v2007_v51  ;;  %2162 = vmatmul.bf16.gmra.mxu1 %v2007_v51 }
 0x7be   :  { %2459 = vmatpush.bf16.msrb.mxu2 %v3531_v36 }
 0x7c0   :  { %v2119_v60 = vpop.f32.mrf.mxu0  ;;  %v2148_v9 = vpop.f32.mrf.mxu1 }
 0x7c1   :  { %v2120_v57 = vadd.f32 %v2119_v60, %v5466_v2  ;;  %v2149_v53 = vadd.f32 %v2148_v9, %v5468_v47 }
 0x7c3   :  { %v2168_v27 = vmul.f32 %v2120_v57, %v2120_v57  ;;  %v2169_v63 = vmul.f32 %v2149_v53, %v2149_v53 }
 0x7c5   :  { %v2184_v5 = vmul.f32 %v2168_v27, %v2120_v57  ;;  %v2185_v10 = vmul.f32 %v2169_v63, %v2149_v53 }
 0x7c7   :  { %v2200_v4 = vmul.f32 0.044715, %v2184_v5  ;;  %v2201_v13 = vmul.f32 0.044715, %v2185_v10 }
 0x7c8   :  { %v2121_v3 = vpop.f32.mrf.mxu0  ;;  %v2150_v20 = vpop.f32.mrf.mxu1 }
 0x7c9   :  { %v2216_v6 = vadd.f32 %v2200_v4, %v2120_v57  ;;  %v2217_v41 = vadd.f32 %v2201_v13, %v2149_v53  ;;  %v2122_v59 = vadd.f32 %v2121_v3, %v5466_v2  ;;  %v2151_v26 = vadd.f32 %v2150_v20, %v5468_v47 }
 0x7cb   :  { %v2232_v52 = vmul.f32 0.7978846, %v2216_v6  ;;  %v2170_v39 = vmul.f32 %v2122_v59, %v2122_v59  ;;  %v2171_v44 = vmul.f32 %v2151_v26, %v2151_v26  ;;  %v2233_v34 = vmul.f32 0.7978846, %v2217_v41 }
 0x7cd   :  { %v2186_v24 = vmul.f32 %v2170_v39, %v2122_v59  ;;  %v2187_v22 = vmul.f32 %v2171_v44, %v2151_v26  ;;  %3814 = vtanh.f32 %v2232_v52 }
 0x7ce   :  { %3816 = vtanh.f32 %v2233_v34 }
 0x7cf   :  { %v2202_v58 = vmul.f32 0.044715, %v2186_v24  ;;  %v2203_v11 = vmul.f32 0.044715, %v2187_v22 }
 0x7d1   :  { %v2218_v8 = vadd.f32 %v2202_v58, %v2122_v59  ;;  %v2219_v17 = vadd.f32 %v2203_v11, %v2151_v26 }
 0x7d3   :  { %v2234_v38 = vmul.f32 0.7978846, %v2218_v8  ;;  %v2235_v28 = vmul.f32 0.7978846, %v2219_v17  ;;  %v3815_v42 = vpop.eup %3814 }
 0x7d4   :  { %v3817_v30 = vpop.eup %3816  ;;  %v2264_v62 = vadd.f32 1.0, %v3815_v42 }
 0x7d5   :  { %3818 = vtanh.f32 %v2234_v38  ;;  %v2265_v32 = vadd.f32 1.0, %v3817_v30 }
 0x7d6   :  { %3820 = vtanh.f32 %v2235_v28  ;;  %v2280_v1 = vmul.f32 0.5, %v2264_v62 }
 0x7d7   :  { %v2281_v61 = vmul.f32 0.5, %v2265_v32 }
 0x7d8   :  { %v2296_v40 = vmul.f32 %v2280_v1, %v2120_v57 }
 0x7d9   :  { %v2297_v29 = vmul.f32 %v2281_v61, %v2149_v53 }
 0x7db   :  { %v3819_v43 = vpop.eup %3818 }
 0x7dc   :  { %v3821_v49 = vpop.eup %3820  ;;  %v2266_v46 = vadd.f32 1.0, %v3819_v43 }
 0x7dd   :  { %v2267_v45 = vadd.f32 1.0, %v3821_v49 }
 0x7de   :  { %v2282_v37 = vmul.f32 0.5, %v2266_v46 }
 0x7df   :  { %v2283_v18 = vmul.f32 0.5, %v2267_v45 }
 0x7e0   :  { %v2298_v0 = vmul.f32 %v2282_v37, %v2122_v59 }
 0x7e1   :  { %v2299_v50 = vmul.f32 %v2283_v18, %v2151_v26 }
 0x7e2   :  { %v2312_v19 = vpack.c.bf16 %v2298_v0, %v2296_v40 }
 0x7e3   :  { %v2313_v56 = vpack.c.bf16 %v2299_v50, %v2297_v29 }
 0x7e4   :  { %2460 = vmatmul.bf16.vlgmr.msrb.gmra.mxu2 %v2312_v19 }
 0x7e5   :  { %2489 = vmatmul.bf16.vlgmr.msrb.gmra.mxu3 %v2313_v56 }
 0x7ee   :  { %v2124_v55 = vpop.f32.mrf.mxu0  ;;  %v2153_v15 = vpop.f32.mrf.mxu1 }
 0x7ef   :  { %v2125_v51 = vadd.f32 %v2124_v55, %v5466_v2  ;;  %v2154_v48 = vadd.f32 %v2153_v15, %v5468_v47 }
 0x7f1   :  { %v2172_v35 = vmul.f32 %v2125_v51, %v2125_v51  ;;  %v2173_v60 = vmul.f32 %v2154_v48, %v2154_v48 }
 0x7f3   :  { %v2188_v9 = vmul.f32 %v2172_v35, %v2125_v51  ;;  %v2189_v36 = vmul.f32 %v2173_v60, %v2154_v48 }
 0x7f5   :  { %v2204_v21 = vmul.f32 0.044715, %v2188_v9  ;;  %v2205_v27 = vmul.f32 0.044715, %v2189_v36 }
 0x7f6   :  { %v2126_v57 = vpop.f32.mrf.mxu0  ;;  %v2155_v63 = vpop.f32.mrf.mxu1 }
 0x7f7   :  { %v2220_v53 = vadd.f32 %v2204_v21, %v2125_v51  ;;  %v2221_v5 = vadd.f32 %v2205_v27, %v2154_v48  ;;  %v2127_v10 = vadd.f32 %v2126_v57, %v5466_v2  ;;  %v2156_v4 = vadd.f32 %v2155_v63, %v5468_v47 }
 0x7f9   :  { %v2236_v13 = vmul.f32 0.7978846, %v2220_v53  ;;  %v2174_v3 = vmul.f32 %v2127_v10, %v2127_v10  ;;  %v2175_v20 = vmul.f32 %v2156_v4, %v2156_v4  ;;  %v2237_v6 = vmul.f32 0.7978846, %v2221_v5 }
 0x7fb   :  { %v2190_v41 = vmul.f32 %v2174_v3, %v2127_v10  ;;  %v2191_v59 = vmul.f32 %v2175_v20, %v2156_v4  ;;  %3822 = vtanh.f32 %v2236_v13 }
 0x7fc   :  { %3824 = vtanh.f32 %v2237_v6 }
 0x7fd   :  { %v2206_v26 = vmul.f32 0.044715, %v2190_v41  ;;  %v2207_v52 = vmul.f32 0.044715, %v2191_v59 }
 0x7ff   :  { %v2222_v39 = vadd.f32 %v2206_v26, %v2127_v10  ;;  %v2223_v44 = vadd.f32 %v2207_v52, %v2156_v4 }
 0x801   :  { %v2238_v34 = vmul.f32 0.7978846, %v2222_v39  ;;  %v2239_v24 = vmul.f32 0.7978846, %v2223_v44  ;;  %v3823_v22 = vpop.eup %3822 }
 0x802   :  { %v3825_v58 = vpop.eup %3824  ;;  %v2268_v11 = vadd.f32 1.0, %v3823_v22 }
 0x803   :  { %3826 = vtanh.f32 %v2238_v34  ;;  %v2269_v8 = vadd.f32 1.0, %v3825_v58 }
 0x804   :  { %3828 = vtanh.f32 %v2239_v24  ;;  %v2284_v43 = vmul.f32 0.5, %v2268_v11 }
 0x805   :  { %v2285_v1 = vmul.f32 0.5, %v2269_v8 }
 0x806   :  { %v2300_v0 = vmul.f32 %v2284_v43, %v2125_v51 }
 0x807   :  { %v2301_v50 = vmul.f32 %v2285_v1, %v2154_v48 }
 0x809   :  { %v3827_v17 = vpop.eup %3826  ;;  %v2129_v38 = vpop.f32.mrf.mxu0 }
 0x80a   :  { %v2158_v28 = vpop.f32.mrf.mxu1  ;;  %v3829_v42 = vpop.eup %3828  ;;  %v2130_v30 = vadd.f32 %v2129_v38, %v5466_v2  ;;  %v2270_v32 = vadd.f32 1.0, %v3827_v17 }
 0x80b   :  { %v2159_v62 = vadd.f32 %v2158_v28, %v5468_v47  ;;  %v2271_v49 = vadd.f32 1.0, %v3829_v42 }
 0x80c   :  { %v2176_v46 = vmul.f32 %v2130_v30, %v2130_v30  ;;  %v2286_v45 = vmul.f32 0.5, %v2270_v32 }
 0x80d   :  { %v2177_v61 = vmul.f32 %v2159_v62, %v2159_v62  ;;  %v2287_v37 = vmul.f32 0.5, %v2271_v49 }
 0x80e   :  { %v2192_v18 = vmul.f32 %v2176_v46, %v2130_v30  ;;  %v2302_v29 = vmul.f32 %v2286_v45, %v2127_v10 }
 0x80f   :  { %v2193_v40 = vmul.f32 %v2177_v61, %v2159_v62  ;;  %v2303_v19 = vmul.f32 %v2287_v37, %v2156_v4 }
 0x810   :  { %v2208_v56 = vmul.f32 0.044715, %v2192_v18  ;;  %v2314_v15 = vpack.c.bf16 %v2302_v29, %v2300_v0 }
 0x811   :  { %v2209_v55 = vmul.f32 0.044715, %v2193_v40  ;;  %v2131_v35 = vpop.f32.mrf.mxu0  ;;  %v2315_v9 = vpack.c.bf16 %v2303_v19, %v2301_v50 }
 0x812   :  { %v2160_v60 = vpop.f32.mrf.mxu1  ;;  %v2224_v36 = vadd.f32 %v2208_v56, %v2130_v30  ;;  %v2132_v27 = vadd.f32 %v2131_v35, %v5466_v2  ;;  %2465 = vmatmul.bf16.gmra.mxu2 %v2314_v15 }
 0x813   :  { %v2225_v21 = vadd.f32 %v2209_v55, %v2159_v62  ;;  %v2161_v57 = vadd.f32 %v2160_v60, %v5468_v47  ;;  %2494 = vmatmul.bf16.gmra.mxu3 %v2315_v9 }
 0x814   :  { %v2240_v63 = vmul.f32 0.7978846, %v2224_v36  ;;  %v2178_v53 = vmul.f32 %v2132_v27, %v2132_v27 }
 0x815   :  { %v2179_v51 = vmul.f32 %v2161_v57, %v2161_v57  ;;  %v2241_v5 = vmul.f32 0.7978846, %v2225_v21 }
 0x816   :  { %v2194_v48 = vmul.f32 %v2178_v53, %v2132_v27  ;;  %3830 = vtanh.f32 %v2240_v63 }
 0x817   :  { %v2195_v10 = vmul.f32 %v2179_v51, %v2161_v57  ;;  %3832 = vtanh.f32 %v2241_v5 }
 0x818   :  { %v2210_v4 = vmul.f32 0.044715, %v2194_v48 }
 0x819   :  { %v2211_v13 = vmul.f32 0.044715, %v2195_v10 }
 0x81a   :  { %v2226_v3 = vadd.f32 %v2210_v4, %v2132_v27 }
 0x81b   :  { %v2227_v20 = vadd.f32 %v2211_v13, %v2161_v57 }
 0x81c   :  { %v2242_v6 = vmul.f32 0.7978846, %v2226_v3  ;;  %v3831_v59 = vpop.eup %3830 }
 0x81d   :  { %v2243_v41 = vmul.f32 0.7978846, %v2227_v20  ;;  %v3833_v26 = vpop.eup %3832  ;;  %v2272_v52 = vadd.f32 1.0, %v3831_v59 }
 0x81e   :  { %3834 = vtanh.f32 %v2242_v6  ;;  %v2273_v39 = vadd.f32 1.0, %v3833_v26 }
 0x81f   :  { %3836 = vtanh.f32 %v2243_v41  ;;  %v2288_v22 = vmul.f32 0.5, %v2272_v52 }
 0x820   :  { %v2289_v11 = vmul.f32 0.5, %v2273_v39 }
 0x821   :  { %v2304_v38 = vmul.f32 %v2288_v22, %v2130_v30 }
 0x822   :  { %v2305_v42 = vmul.f32 %v2289_v11, %v2159_v62  ;;  %v3647_v11 = vld [vmem:[%s5726_s16] ss:$0 sm:$0xff]  ;;  %s5762_s16 = sld [smem:[#allocation8_spill]] }
 0x824   :  { %v3835_v44 = vpop.eup %3834 }
 0x825   :  { %v3837_v34 = vpop.eup %3836  ;;  %v2274_v24 = vadd.f32 1.0, %v3835_v44 }
 0x826   :  { %v2275_v58 = vadd.f32 1.0, %v3837_v34 }
 0x827   :  { %v2290_v8 = vmul.f32 0.5, %v2274_v24 }
 0x828   :  { %v2291_v17 = vmul.f32 0.5, %v2275_v58 }
 0x829   :  { %v2306_v28 = vmul.f32 %v2290_v8, %v2132_v27 }
 0x82a   :  { %v2307_v32 = vmul.f32 %v2291_v17, %v2161_v57 }
 0x82b   :  { %v2316_v43 = vpack.c.bf16 %v2306_v28, %v2304_v38 }
 0x82c   :  { %v2317_v49 = vpack.c.bf16 %v2307_v32, %v2305_v42 }
 0x82d   :  { %2470 = vmatmul.bf16.gmra.mxu2 %v2316_v43 }
 0x82e   :  { %2499 = vmatmul.bf16.gmra.mxu3 %v2317_v49 }
 0x83a   :  { %v2134_v1 = vpop.f32.mrf.mxu0  ;;  %v2163_v46 = vpop.f32.mrf.mxu1 }
 0x83b   :  { %v2135_v61 = vadd.f32 %v2134_v1, %v5466_v2  ;;  %v2164_v45 = vadd.f32 %v2163_v46, %v5468_v47 }
 0x83d   :  { %v2180_v37 = vmul.f32 %v2135_v61, %v2135_v61  ;;  %v2181_v18 = vmul.f32 %v2164_v45, %v2164_v45 }
 0x83f   :  { %v2196_v40 = vmul.f32 %v2180_v37, %v2135_v61  ;;  %v2197_v0 = vmul.f32 %v2181_v18, %v2164_v45 }
 0x841   :  { %v2212_v29 = vmul.f32 0.044715, %v2196_v40  ;;  %v2213_v50 = vmul.f32 0.044715, %v2197_v0 }
 0x842   :  { %v2136_v30 = vpop.f32.mrf.mxu0  ;;  %v2165_v19 = vpop.f32.mrf.mxu1 }
 0x843   :  { %v2228_v62 = vadd.f32 %v2212_v29, %v2135_v61  ;;  %v2229_v56 = vadd.f32 %v2213_v50, %v2164_v45  ;;  %v2137_v55 = vadd.f32 %v2136_v30, %v5466_v2  ;;  %v2166_v15 = vadd.f32 %v2165_v19, %v5468_v47 }
 0x845   :  { %v2244_v35 = vmul.f32 0.7978846, %v2228_v62  ;;  %v2182_v60 = vmul.f32 %v2137_v55, %v2137_v55  ;;  %v2183_v9 = vmul.f32 %v2166_v15, %v2166_v15  ;;  %v2245_v36 = vmul.f32 0.7978846, %v2229_v56 }
 0x847   :  { %v2198_v21 = vmul.f32 %v2182_v60, %v2137_v55  ;;  %v2199_v27 = vmul.f32 %v2183_v9, %v2166_v15  ;;  %3838 = vtanh.f32 %v2244_v35 }
 0x848   :  { %3840 = vtanh.f32 %v2245_v36 }
 0x849   :  { %v2214_v57 = vmul.f32 0.044715, %v2198_v21  ;;  %v2215_v63 = vmul.f32 0.044715, %v2199_v27 }
 0x84b   :  { %v2230_v53 = vadd.f32 %v2214_v57, %v2137_v55  ;;  %v2231_v51 = vadd.f32 %v2215_v63, %v2166_v15 }
 0x84d   :  { %v2246_v5 = vmul.f32 0.7978846, %v2230_v53  ;;  %v2247_v48 = vmul.f32 0.7978846, %v2231_v51  ;;  %v3839_v10 = vpop.eup %3838 }
 0x84e   :  { %v3841_v4 = vpop.eup %3840  ;;  %v2276_v2 = vadd.f32 1.0, %v3839_v10 }
 0x84f   :  { %3842 = vtanh.f32 %v2246_v5  ;;  %v2277_v47 = vadd.f32 1.0, %v3841_v4 }
 0x850   :  { %3844 = vtanh.f32 %v2247_v48  ;;  %v2292_v6 = vmul.f32 0.5, %v2276_v2 }
 0x851   :  { %v2293_v59 = vmul.f32 0.5, %v2277_v47 }
 0x852   :  { %v2308_v39 = vmul.f32 %v2292_v6, %v2135_v61 }
 0x853   :  { %v2309_v34 = vmul.f32 %v2293_v59, %v2164_v45 }
 0x855   :  { %v3843_v13 = vpop.eup %3842 }
 0x856   :  { %v3845_v3 = vpop.eup %3844  ;;  %v2278_v20 = vadd.f32 1.0, %v3843_v13 }
 0x857   :  { %v2279_v41 = vadd.f32 1.0, %v3845_v3 }
 0x858   :  { %v2294_v26 = vmul.f32 0.5, %v2278_v20 }
 0x859   :  { %v2295_v52 = vmul.f32 0.5, %v2279_v41 }
 0x85a   :  { %v2310_v44 = vmul.f32 %v2294_v26, %v2137_v55 }
 0x85b   :  { %v2311_v24 = vmul.f32 %v2295_v52, %v2166_v15 }
 0x85c   :  { %v2318_v22 = vpack.c.bf16 %v2310_v44, %v2308_v39 }
 0x85d   :  { %v2319_v58 = vpack.c.bf16 %v2311_v24, %v2309_v34 }
 0x85e   :  { %2475 = vmatmul.bf16.gmra.mxu2 %v2318_v22 }
 0x85f   :  { %2504 = vmatmul.bf16.gmra.mxu3 %v2319_v58 }
 0x867   :  { %v2461_v8 = vpop.f32.mrf.mxu2 }
 0x868   :  { %v2462_v17 = vadd.f32 %v3647_v11, %v2461_v8  ;;  %v2490_v38 = vpop.f32.mrf.mxu3 }
 0x86a   :  { %v2491_v28 = vadd.f32 %v2490_v38, %v2462_v17 }
 0x86c   :  { %v2510_v48 = vadd.f32 %v2491_v28, %v5378_v54 }
 0x86f   :  { %v2463_v42 = vpop.f32.mrf.mxu2 }
 0x870   :  { %v2464_v32 = vadd.f32 %v3647_v11, %v2463_v42  ;;  %v2492_v43 = vpop.f32.mrf.mxu3 }
 0x872   :  { %v2493_v49 = vadd.f32 %v2492_v43, %v2464_v32 }
 0x895   :  { %v2466_v1 = vpop.f32.mrf.mxu2 }
 0x896   :  { %v2467_v46 = vadd.f32 %v3647_v11, %v2466_v1  ;;  %v2495_v61 = vpop.f32.mrf.mxu3 }
 0x898   :  { %v2496_v45 = vadd.f32 %v2495_v61, %v2467_v46 }
 0x89a   :  { %v2512_v10 = vadd.f32 %v2496_v45, %v5393_v31 }
 0x89d   :  { %v2468_v37 = vpop.f32.mrf.mxu2 }
 0x89e   :  { %v2497_v18 = vpop.f32.mrf.mxu3  ;;  %v2469_v30 = vadd.f32 %v3647_v11, %v2468_v37 }
 0x8a0   :  { %v2498_v62 = vadd.f32 %v2497_v18, %v2469_v30 }
 0x8a2   :  { %v2513_v56 = vadd.f32 %v2498_v62, %v5396_v25 }
 0x8b0   :  { %v2471_v40 = vpop.f32.mrf.mxu2 }
 0x8b1   :  { %v2472_v0 = vadd.f32 %v3647_v11, %v2471_v40  ;;  %v2500_v29 = vpop.f32.mrf.mxu3 }
 0x8b3   :  { %v2501_v50 = vadd.f32 %v2500_v29, %v2472_v0 }
 0x8b5   :  { %v2514_v19 = vadd.f32 %v2501_v50, %v5406_v7 }
 0x8b7   :  { %2528 = vadd.xlane.f32.xlu1 %v2514_v19 }
 0x8b8   :  { %v2473_v55 = vpop.f32.mrf.mxu2 }
 0x8b9   :  { %v2502_v15 = vpop.f32.mrf.mxu3  ;;  %v2474_v21 = vadd.f32 %v3647_v11, %v2473_v55 }
 0x8bb   :  { %v2503_v63 = vadd.f32 %v2502_v15, %v2474_v21 }
 0x8bd   :  { %v2515_v5 = vadd.f32 %v2503_v63, %v5409_v16 }
 0x8bf   :  { %2526 = vadd.xlane.f32.xlu1 %v2513_v56 }
 0x8e1   :  { %v2476_v35 = vpop.f32.mrf.mxu2 }
 0x8e2   :  { %v2477_v60 = vadd.f32 %v3647_v11, %v2476_v35  ;;  %v2505_v9 = vpop.f32.mrf.mxu3 }
 0x8e4   :  { %v2506_v36 = vadd.f32 %v2505_v9, %v2477_v60 }
 0x8e6   :  { %v2516_v27 = vadd.f32 %v2506_v36, %v5450_v12  ;;  %v2511_v12 = vadd.f32 %v2493_v49, %v5381_v33 }
 0x8e8   :  { %2532 = vadd.xlane.f32.xlu0 %v2516_v27 }
 0x8e9   :  { %v2478_v57 = vpop.f32.mrf.mxu2 }
 0x8ea   :  { %v2479_v53 = vadd.f32 %v3647_v11, %v2478_v57  ;;  %v2507_v51 = vpop.f32.mrf.mxu3 }
 0x8ec   :  { %v2508_v7 = vadd.f32 %v2507_v51, %v2479_v53 }
 0x8ee   :  { %v2517_v25 = vadd.f32 %v2508_v7, %v5453_v23 }
 0x8f0   :  { %2534 = vadd.xlane.f32.xlu2 %v2517_v25  ;;  %2530 = vadd.xlane.f32.xlu0 %v2515_v5 }
 0x8f8   :  { %2524 = vadd.xlane.f32.xlu2 %v2512_v10  ;;  %2520 = vadd.xlane.f32.xlu0 %v2510_v48 }
 0x900   :  { %2522 = vadd.xlane.f32.xlu2 %v2511_v12 }
 0x92a   :  { %v2529_v4 = vpop.xlane.xlu1 %2528 }
 0x92b   :  { %v2540_v2 = vmul.f32 %v2529_v4, %v4061_v14 }
 0x92d   :  { %v5510_v47 = vsub.f32 %v2514_v19, %v2540_v2 }
 0x92f   :  { %v2556_v16 = vmul.f32 %v5510_v47, %v5510_v47 }
 0x931   :  { %2568 = vadd.xlane.f32.xlu2 %v2556_v16 }
 0x932   :  { %v2527_v23 = vpop.xlane.xlu1 %2526 }
 0x933   :  { %v2539_v13 = vmul.f32 %v2527_v23, %v4061_v14 }
 0x935   :  { %v5515_v54 = vsub.f32 %v2513_v56, %v2539_v13 }
 0x937   :  { %v2555_v31 = vmul.f32 %v5515_v54, %v5515_v54 }
 0x939   :  { %2566 = vadd.xlane.f32.xlu2 %v2555_v31 }
 0x95b   :  { %v2533_v33 = vpop.xlane.xlu0 %2532 }
 0x95c   :  { %v2542_v3 = vmul.f32 %v2533_v33, %v4061_v14 }
 0x95e   :  { %v5520_v20 = vsub.f32 %v2516_v27, %v2542_v3 }
 0x960   :  { %v2558_v6 = vmul.f32 %v5520_v20, %v5520_v20 }
 0x962   :  { %2572 = vadd.xlane.f32.xlu1 %v2558_v6 }
 0x963   :  { %v2535_v41 = vpop.xlane.xlu2 %2534  ;;  %v2531_v59 = vpop.xlane.xlu0 %2530 }
 0x964   :  { %v2543_v26 = vmul.f32 %v2535_v41, %v4061_v14  ;;  %v2541_v52 = vmul.f32 %v2531_v59, %v4061_v14 }
 0x966   :  { %v5526_v39 = vsub.f32 %v2517_v25, %v2543_v26  ;;  %v5528_v44 = vsub.f32 %v2515_v5, %v2541_v52 }
 0x968   :  { %v2559_v34 = vmul.f32 %v5526_v39, %v5526_v39  ;;  %v2557_v24 = vmul.f32 %v5528_v44, %v5528_v44 }
 0x96a   :  { %2574 = vadd.xlane.f32.xlu0 %v2559_v34  ;;  %2570 = vadd.xlane.f32.xlu1 %v2557_v24 }
 0x96b   :  { %v2525_v22 = vpop.xlane.xlu2 %2524  ;;  %v2521_v58 = vpop.xlane.xlu0 %2520 }
 0x96c   :  { %v2538_v11 = vmul.f32 %v2525_v22, %v4061_v14  ;;  %v2536_v8 = vmul.f32 %v2521_v58, %v4061_v14 }
 0x96e   :  { %v5536_v17 = vsub.f32 %v2512_v10, %v2538_v11  ;;  %v5538_v38 = vsub.f32 %v2510_v48, %v2536_v8 }
 0x970   :  { %v2554_v28 = vmul.f32 %v5536_v17, %v5536_v17  ;;  %v2552_v42 = vmul.f32 %v5538_v38, %v5538_v38 }
 0x972   :  { %2564 = vadd.xlane.f32.xlu0 %v2554_v28  ;;  %2560 = vadd.xlane.f32.xlu1 %v2552_v42 }
 0x973   :  { %v2523_v32 = vpop.xlane.xlu2 %2522 }
 0x974   :  { %v2537_v43 = vmul.f32 %v2523_v32, %v4061_v14 }
 0x976   :  { %v5545_v49 = vsub.f32 %v2511_v12, %v2537_v43 }
 0x978   :  { %v2553_v1 = vmul.f32 %v5545_v49, %v5545_v49 }
 0x97a   :  { %2562 = vadd.xlane.f32.xlu0 %v2553_v1 }
 0x9a4   :  { %v2569_v46 = vpop.xlane.xlu2 %2568 }
 0x9a5   :  { %v2580_v61 = vmul.f32 %v2569_v46, %v4061_v14 }
 0x9a7   :  { %v2588_v37 = vadd.f32 1e-12, %v2580_v61 }
 0x9a9   :  { %3846 = vrsqrt.f32 %v2588_v37  ;;  %vm2638_vm9 = vweird.f32 %v2588_v37 }
 0x9ac   :  { %v2567_v45 = vpop.xlane.xlu2 %2566 }
 0x9ad   :  { %v2579_v18 = vmul.f32 %v2567_v45, %v4061_v14 }
 0x9af   :  { %v5551_v40 = vadd.f32 1e-12, %v2579_v18  ;;  %v5554_v50 = vpop.eup %3846 }
 0x9b0   :  { %v2633_v19 = vmul.f32 %v5554_v50, %v2588_v37  ;;  %vm2639_vm6 = vweird.f32 %v5554_v50 }
 0x9b1   :  { %3848 = vrsqrt.f32 %v5551_v40  ;;  %vm5580_vm11 = vmor %vm2638_vm9, %vm2639_vm6  ;;  %vm2628_vm2 = vweird.f32 %v5551_v40 }
 0x9b2   :  { %v2634_v60 = vmul.f32 %v5554_v50, %v2633_v19  ;;  %v3556_v19 = vld [vmem:[%s5731_s21] sm:$0xff] }
 0x9b4   :  { %v2635_v63 = vmul.f32 0.5, %v2634_v60 }
 0x9b6   :  { %v2636_v12 = vsub.f32 1.5, %v2635_v63 }
 0x9b7   :  { %v5558_v55 = vpop.eup %3848 }
 0x9b8   :  { %v2623_v27 = vmul.f32 %v5558_v55, %v5551_v40  ;;  %v2637_v41 = vmul.f32 %v5554_v50, %v2636_v12  ;;  %vm2629_vm12 = vweird.f32 %v5558_v55 }
 0x9b9   :  { %vm5607_vm4 = vmor %vm2628_vm2, %vm2629_vm12 }
 0x9ba   :  { %v2624_v51 = vmul.f32 %v5558_v55, %v2623_v27  ;;  %v2641_v28 = vsel %vm5580_vm11, %v5554_v50, %v2637_v41 }
 0x9bc   :  { %v2625_v31 = vmul.f32 0.5, %v2624_v51 }
 0x9be   :  { %v2626_v52 = vsub.f32 1.5, %v2625_v31 }
 0x9c0   :  { %v2627_v45 = vmul.f32 %v5558_v55, %v2626_v52 }
 0x9d5   :  { %v2573_v0 = vpop.xlane.xlu1 %2572 }
 0x9d6   :  { %v2582_v29 = vmul.f32 %v2573_v0, %v4061_v14 }
 0x9d8   :  { %v2590_v30 = vadd.f32 1e-12, %v2582_v29  ;;  %v2676_v29 = vmul.f32 %v2641_v28, %v5510_v47  ;;  %v2631_v47 = vsel %vm5607_vm4, %v5558_v55, %v2627_v45  ;;  %v3561_v28 = vld [vmem:[%s5731_s21 + $0x28] sm:$0xff]  ;;  %v2815_v45 = vld [vmem:[%s5762_s16] sm:$0x1] }
 0x9da   :  { %3850 = vrsqrt.f32 %v2590_v30  ;;  %vm2658_vm7 = vweird.f32 %v2590_v30 }
 0x9dd   :  { %v2575_v62 = vpop.xlane.xlu0 %2574  ;;  %v2571_v56 = vpop.xlane.xlu1 %2570 }
 0x9de   :  { %v2583_v15 = vmul.f32 %v2575_v62, %v4061_v14  ;;  %v2581_v35 = vmul.f32 %v2571_v56, %v4061_v14 }
 0x9e0   :  { %v3851_v9 = vpop.eup %3850  ;;  %v2591_v36 = vadd.f32 1e-12, %v2583_v15  ;;  %v5563_v21 = vadd.f32 1e-12, %v2581_v35 }
 0x9e1   :  { %v2653_v57 = vmul.f32 %v3851_v9, %v2590_v30  ;;  %vm2659_vm5 = vweird.f32 %v3851_v9 }
 0x9e2   :  { %3852 = vrsqrt.f32 %v2591_v36  ;;  %vm2660_vm8 = vmor %vm2658_vm7, %vm2659_vm5  ;;  %vm2668_vm15 = vweird.f32 %v2591_v36  ;;  %vm2648_vm1 = vweird.f32 %v5563_v21 }
 0x9e3   :  { %v2654_v53 = vmul.f32 %v3851_v9, %v2653_v57  ;;  %3854 = vrsqrt.f32 %v5563_v21 }
 0x9e5   :  { %v2655_v7 = vmul.f32 0.5, %v2654_v53  ;;  %v2565_v5 = vpop.xlane.xlu0 %2564  ;;  %v2561_v25 = vpop.xlane.xlu1 %2560  ;;  %v2675_v53 = vmul.f32 %v2631_v47, %v5515_v54 }
 0x9e6   :  { %v2578_v48 = vmul.f32 %v2565_v5, %v4061_v14  ;;  %v2576_v10 = vmul.f32 %v2561_v25, %v4061_v14 }
 0x9e7   :  { %v2656_v4 = vsub.f32 1.5, %v2655_v7 }
 0x9e8   :  { %v3853_v2 = vpop.eup %3852  ;;  %v5571_v16 = vadd.f32 1e-12, %v2578_v48  ;;  %v5573_v23 = vadd.f32 1e-12, %v2576_v10 }
 0x9e9   :  { %v3855_v13 = vpop.eup %3854  ;;  %v2657_v33 = vmul.f32 %v3851_v9, %v2656_v4  ;;  %v2663_v3 = vmul.f32 %v3853_v2, %v2591_v36  ;;  %vm2669_vm13 = vweird.f32 %v3853_v2 }
 0x9ea   :  { %v2643_v6 = vmul.f32 %v3855_v13, %v5563_v21  ;;  %3856 = vrsqrt.f32 %v5571_v16  ;;  %vm2649_vm14 = vweird.f32 %v3855_v13  ;;  %vm2670_vm0 = vmor %vm2668_vm15, %vm2669_vm13  ;;  %v3649_v21 = vld [vmem:[%s5728_s18] ss:$0 sm:$0xff]  ;;  %vm2618_vm6 = vweird.f32 %v5571_v16 }
 0x9eb   :  { %v2664_v59 = vmul.f32 %v3853_v2, %v2663_v3  ;;  %3858 = vrsqrt.f32 %v5573_v23  ;;  %v2661_v34 = vsel %vm2660_vm8, %v3851_v9, %v2657_v33  ;;  %vm2650_vm3 = vmor %vm2648_vm1, %vm2649_vm14  ;;  %vm2598_vm9 = vweird.f32 %v5573_v23 }
 0x9ec   :  { %v2644_v26 = vmul.f32 %v3855_v13, %v2643_v6  ;;  %v2678_v43 = vmul.f32 %v2661_v34, %v5520_v20  ;;  %v5600_v20 = vld [vmem:[%s5727_s17] ss:$0 sm:$0xff]  ;;  %v3554_v34 = vld [vmem:[%s5729_s19 + $0x30] sm:$0xff]  ;;  %s3064_s17 = sshll.u32 %s5734_s24, 4  ;;  %s3065_s17 = int_to_ptr.hbm [resolvable:$true] %s3064_s17 }
 0x9ed   :  { %v2665_v24 = vmul.f32 0.5, %v2664_v59  ;;  %v2563_v22 = vpop.xlane.xlu0 %2562 }
 0x9ee   :  { %v2645_v11 = vmul.f32 0.5, %v2644_v26  ;;  %v2577_v8 = vmul.f32 %v2563_v22, %v4061_v14  ;;  %v2689_v35 = vmul.f32 %v5600_v20, %v2678_v43 }
 0x9ef   :  { %v2666_v42 = vsub.f32 1.5, %v2665_v24  ;;  %v3562_v24 = vld [vmem:[%s5731_s21 + $0x30] sm:$0xff] }
 0x9f0   :  { %v3857_v32 = vpop.eup %3856  ;;  %v2646_v1 = vsub.f32 1.5, %v2645_v11  ;;  %v5590_v46 = vadd.f32 1e-12, %v2577_v8  ;;  %v2700_v51 = vadd.f32 %v3649_v21, %v2689_v35  ;;  %v3553_v8 = vld [vmem:[%s5729_s19 + $0x28] sm:$0xff] }
 0x9f1   :  { %v3859_v61 = vpop.eup %3858  ;;  %v2667_v37 = vmul.f32 %v3853_v2, %v2666_v42  ;;  %v2613_v14 = vmul.f32 %v3857_v32, %v5571_v16  ;;  %vm2619_vm5 = vweird.f32 %v3857_v32 }
 0x9f2   :  { %v2647_v18 = vmul.f32 %v3855_v13, %v2646_v1  ;;  %v2593_v0 = vmul.f32 %v3859_v61, %v5573_v23  ;;  %3860 = vrsqrt.f32 %v5590_v46  ;;  %vm2599_vm7 = vweird.f32 %v3859_v61  ;;  %vm2620_vm8 = vmor %vm2618_vm6, %vm2619_vm5  ;;  %v3555_v23 = vld [vmem:[%s5729_s19 + $0x38] sm:$0xff] }
 0x9f3   :  { %v2671_v50 = vsel %vm2670_vm0, %v3853_v2, %v2667_v37  ;;  %v2614_v30 = vmul.f32 %v3857_v32, %v2613_v14  ;;  %vm2600_vm11 = vmor %vm2598_vm9, %vm2599_vm7  ;;  %vm2608_vm13 = vweird.f32 %v5590_v46  ;;  %2799 = vmatpush.bf16.msra.mxu1 %v3555_v23  ;;  %v3551_v37 = vld [vmem:[%s5729_s19 + $0x18] sm:$0xff]  ;;  %vm3008_vm7 = vcmask 9216  }
 0x9f4   :  { %v2679_v62 = vmul.f32 %v2671_v50, %v5526_v39  ;;  %v2651_v56 = vsel %vm2650_vm3, %v3855_v13, %v2647_v18  ;;  %v2594_v15 = vmul.f32 %v3859_v61, %v2593_v0  ;;  %v2687_v39 = vmul.f32 %v5600_v20, %v2676_v29  ;;  %v3559_v14 = vld [vmem:[%s5731_s21 + $0x18] sm:$0xff]  ;;  %v3550_v18 = vld [vmem:[%s5729_s19 + $0x10] sm:$0xff]  ;;  %v3557_v29 = vld [vmem:[%s5731_s21 + $0x8] sm:$0xff] }
 0x9f5   :  { %v2677_v40 = vmul.f32 %v2651_v56, %v5528_v44  ;;  %v2615_v60 = vmul.f32 0.5, %v2614_v30  ;;  %v2686_v13 = vmul.f32 %v5600_v20, %v2675_v53  ;;  %v3558_v0 = vld [vmem:[%s5731_s21 + $0x10] sm:$0xff]  ;;  %v3548_v50 = vld [vmem:[%s5729_s19] sm:$0xff] }
 0x9f6   :  { %v2595_v9 = vmul.f32 0.5, %v2594_v15  ;;  %v2690_v36 = vmul.f32 %v5600_v20, %v2679_v62  ;;  %v2698_v54 = vadd.f32 %v3649_v21, %v2687_v39  ;;  %v2832_v30 = vld [vmem:[%s5763_s0] sm:$0x1] }
 0x9f7   :  { %v2616_v27 = vsub.f32 1.5, %v2615_v60  ;;  %v2688_v57 = vmul.f32 %v5600_v20, %v2677_v40  ;;  %v2697_v26 = vadd.f32 %v3649_v21, %v2686_v13  ;;  %2800 = vmatpush.bf16.msra.mxu1 %v3554_v34 }
 0x9f8   :  { %v3861_v63 = vpop.eup %3860  ;;  %v2596_v55 = vsub.f32 1.5, %v2595_v9  ;;  %v2701_v44 = vadd.f32 %v3649_v21, %v2690_v36 }
 0x9f9   :  { %v2617_v7 = vmul.f32 %v3857_v32, %v2616_v27  ;;  %v2603_v5 = vmul.f32 %v3861_v63, %v5590_v46  ;;  %v2699_v10 = vadd.f32 %v3649_v21, %v2688_v57  ;;  %vm2609_vm12 = vweird.f32 %v3861_v63  ;;  %v3560_v46 = vld [vmem:[%s5731_s21 + $0x20] sm:$0xff] }
 0x9fa   :  { %v2597_v25 = vmul.f32 %v3859_v61, %v2596_v55  ;;  %v2705_v48 = vpack.c.bf16 %v2701_v44, %v2700_v51  ;;  %vm2610_vm14 = vmor %vm2608_vm13, %vm2609_vm12  ;;  %v3651_v57 = vld [vmem:[%s5730_s20] ss:$0 sm:$0xff]  ;;  %s3911_s20 = smov [#allocation2]  }
 0x9fb   :  { %v2621_v12 = vsel %vm2620_vm8, %v3857_v32, %v2617_v7  ;;  %v2604_v4 = vmul.f32 %v3861_v63, %v2603_v5  ;;  %v2704_v33 = vpack.c.bf16 %v2699_v10, %v2698_v54  ;;  %2801 = vmatpush.bf16.msra.mxu1 %v3553_v8  ;;  %vm3033_vm8 = vcmask 1024  }
 0x9fc   :  { %v2674_v2 = vmul.f32 %v2621_v12, %v5536_v17  ;;  %2720 = vmatpush.bf16.msra.mxu3 %v2705_v48  ;;  %2823 = vmatpush.bf16.msra.mxu2 %v2705_v48  ;;  %v2601_v16 = vsel %vm2600_vm11, %v3859_v61, %v2597_v25  ;;  %v3563_v17 = vld [vmem:[%s5731_s21 + $0x38] sm:$0xff]  ;;  %v3547_v61 = vld [vmem:[%s5761_s6] sm:$0xff]  ;;  %vm3053_vm11 = vcmask 0  }
 0x9fd   :  { %v2605_v31 = vmul.f32 0.5, %v2604_v4  ;;  %v2672_v41 = vmul.f32 %v2601_v16, %v5538_v38  ;;  %2918 = vmatpush.bf16.msrb.mxu0 %v3563_v17 }
 0x9fe   :  { %v2685_v3 = vmul.f32 %v5600_v20, %v2674_v2 }
 0x9ff   :  { %v2606_v6 = vsub.f32 1.5, %v2605_v31  ;;  %v2683_v11 = vmul.f32 %v5600_v20, %v2672_v41 }
 0xa00   :  { %2721 = vmatpush.bf16.msra.mxu3 %v2704_v33  ;;  %2824 = vmatpush.bf16.msra.mxu2 %v2704_v33  ;;  %v2696_v59 = vadd.f32 %v3649_v21, %v2685_v3 }
 0xa01   :  { %v2607_v52 = vmul.f32 %v3861_v63, %v2606_v6  ;;  %2919 = vmatpush.bf16.msrb.mxu0 %v3562_v24  ;;  %v2694_v32 = vadd.f32 %v3649_v21, %v2683_v11 }
 0xa02   :  { %v2703_v22 = vpack.c.bf16 %v2697_v26, %v2696_v59 }
 0xa03   :  { %v2611_v38 = vsel %vm2610_vm14, %v3861_v63, %v2607_v52 }
 0xa04   :  { %v2673_v58 = vmul.f32 %v2611_v38, %v5545_v49  ;;  %2722 = vmatpush.bf16.msra.mxu3 %v2703_v22  ;;  %2825 = vmatpush.bf16.msra.mxu2 %v2703_v22  ;;  %v3552_v49 = vld [vmem:[%s5729_s19 + $0x20] sm:$0xff] }
 0xa05   :  { %2920 = vmatpush.bf16.msrb.mxu0 %v3561_v28  ;;  %2802 = vmatpush.bf16.msra.mxu1 %v3552_v49 }
 0xa06   :  { %v2684_v42 = vmul.f32 %v5600_v20, %v2673_v58  ;;  %v3549_v20 = vld [vmem:[%s5729_s19 + $0x8] sm:$0xff] }
 0xa08   :  { %v2695_v43 = vadd.f32 %v3649_v21, %v2684_v42  ;;  %v3650_v21 = vld [vmem:[%s5732_s22] ss:$0 sm:$0xff]  ;;  %v3908_v42 = vmov 0.05  }
 0xa09   :  { %2921 = vmatpush.bf16.msrb.mxu0 %v3560_v46  ;;  %2803 = vmatpush.bf16.msra.mxu1 %v3551_v37 }
 0xa0a   :  { %v2702_v1 = vpack.c.bf16 %v2695_v43, %v2694_v32 }
 0xa0c   :  { %2723 = vmatpush.bf16.msra.mxu3 %v2702_v1  ;;  %2826 = vmatpush.bf16.msra.mxu2 %v2702_v1 }
 0xa0d   :  { %2922 = vmatpush.bf16.msrb.mxu0 %v3559_v14  ;;  %2804 = vmatpush.bf16.msra.mxu1 %v3550_v18 }
 0xa0f   :  { %3415 = vmatmul.msk.bf16.vlgmr.msra.gmra.mxu3 %vm650_vm10, %v3547_v61  ;;  %3448 = vmatmul.msk.bf16.vlgmr.msra.gmra.mxu2 %vm650_vm10, %v2815_v45 }
 0xa10   :  { %2840 = vmatpush.bf16.msrb.mxu3 %v2705_v48 }
 0xa11   :  { %2923 = vmatpush.bf16.msrb.mxu0 %v3558_v0  ;;  %2805 = vmatpush.bf16.msra.mxu1 %v3549_v20 }
 0xa14   :  { %2841 = vmatpush.bf16.msrb.mxu3 %v2704_v33 }
 0xa15   :  { %2924 = vmatpush.bf16.msrb.mxu0 %v3557_v29  ;;  %2806 = vmatpush.bf16.msra.mxu1 %v3548_v50 }
 0xa18   :  { %2842 = vmatpush.bf16.msrb.mxu3 %v2703_v22 }
 0xa19   :  { %2933 = vmatpush.bf16.msrb.mxu1 %v3563_v17  ;;  %2925 = vmatpush.bf16.msrb.mxu0 %v3556_v19 }
 0xa1c   :  { %2843 = vmatpush.bf16.msrb.mxu3 %v2702_v1  ;;  %v3021_v1 = vlaneseq }
 0xa1d   :  { %2934 = vmatpush.bf16.msrb.mxu1 %v3562_v24 }
 0xa1e   :  { %v3022_v61 = vshrl.u32 %v3021_v1, 7  ;;  %v3024_v45 = vand.u32 127, %v3021_v1 }
 0xa1f   :  { %3449 = vmatmul.msk.bf16.vlgmr.msrb.gmra.mxu3 %vm650_vm10, %v2832_v30  ;;  %vm2948_vm10 = vcmask 1041408  }
 0xa20   :  { %vm3025_vm6 = vcmp.eq.s32.totalorder %v3022_v61, %v3024_v45 }
 0xa21   :  { %2935 = vmatpush.bf16.msrb.mxu1 %v3561_v28 }
 0xa25   :  { %2936 = vmatpush.bf16.msrb.mxu1 %v3560_v46 }
 0xa29   :  { %2937 = vmatpush.bf16.msrb.mxu1 %v3559_v14 }
 0xa2d   :  { %2938 = vmatpush.bf16.msrb.mxu1 %v3558_v0  ;;  %v3909_v0 = vmov 0.0  }
 0xa2e   :  { %v3482_v20 = vsel %vm3025_vm6, 1.0, %v3909_v0 }
 0xa31   :  { %2939 = vmatpush.bf16.msrb.mxu1 %v3557_v29 }
 0xa35   :  { %2940 = vmatpush.bf16.msrb.mxu1 %v3556_v19 }
 0xa92   :  { %v2725_v62 = vpop.f32.mrf.mxu3  ;;  %v2828_v56 = vpop.f32.mrf.mxu2 }
 0xa93   :  { %v2866_v15 = vpack.c.bf16 %v2828_v56, %v2828_v56 }
 0xa95   :  { %2926 = vmatmul.bf16.vlgmr.msrb.gmra.mxu0 %v2866_v15 }
 0xa9a   :  { %v2727_v35 = vpop.f32.mrf.mxu3  ;;  %v2830_v47 = vpop.f32.mrf.mxu2 }
 0xa9b   :  { %v2730_v40 = vpack.c.bf16 %v2727_v35, %v2725_v62 }
 0xa9d   :  { %2807 = vmatmul.bf16.vlgmr.msra.gmra.mxu1 %v2730_v40 }
 0xaa2   :  { %v2845_v60 = vpop.f32.mrf.mxu3 }
 0xaa3   :  { %v2932_v9 = vpack.c.bf16 %v2845_v60, %v2845_v60 }
 0xaaa   :  { %v2847_v36 = vpop.f32.mrf.mxu3 }
 0xaad   :  { %2941 = vmatmul.bf16.vlgmr.msrb.gmra.mxu1 %v2932_v9 }
 0xb12   :  { %v2927_v27 = vpop.f32.mrf.mxu0 }
 0xb13   :  { %v2928_v39 = vadd.f32 %v3650_v21, %v2927_v27 }
 0xb15   :  { %3862 = vtanh.f32 %v2928_v39 }
 0xb1a   :  { %v2808_v63 = vpop.f32.mrf.mxu1  ;;  %v2929_v53 = vpop.f32.mrf.mxu0 }
 0xb1b   :  { %v3863_v55 = vpop.eup %3862  ;;  %v2809_v51 = vadd.f32 %v3651_v57, %v2808_v63 }
 0xb1c   :  { %v2947_v44 = vmul.f32 %v3863_v55, %v3863_v55 }
 0xb1d   :  { %2813 = vst [vmem:[%s5733_s23] sm:$0xff] %v2809_v51 }
 0xb1e   :  { %v2949_v7 = vsel %vm2948_vm10, %v2947_v44, 0.0 }
 0xb1f   :  { %2950 = vadd.xlane.f32.xlu1 %v2949_v7 }
 0xb22   :  { %v2810_v5 = vpop.f32.mrf.mxu1 }
 0xb23   :  { %v2811_v25 = vadd.f32 %v3651_v57, %v2810_v5  ;;  %v3910_v5 = vmov 2.0  }
 0xb25   :  { %2814 = vst [vmem:[%s5733_s23 + $0x8] sm:$0xff] %v2811_v25  ;;  %s3062_s23 = sshll.u32 %s3911_s20, 4  ;;  %s3063_s23 = int_to_ptr.vmem [resolvable:$true] %s3062_s23 }
 0xb2a   :  { %v2942_v48 = vpop.f32.mrf.mxu1 }
 0xb2b   :  { %v2943_v10 = vadd.f32 %v3650_v21, %v2942_v48 }
 0xb2d   :  { %3864 = vtanh.f32 %v2943_v10 }
 0xb32   :  { %v2944_v12 = vpop.f32.mrf.mxu1 }
 0xb33   :  { %v3865_v4 = vpop.eup %3864 }
 0xb34   :  { %v2952_v2 = vmul.f32 %v3865_v4, %v3865_v4 }
 0xb36   :  { %v2953_v54 = vsel %vm2948_vm10, %v2952_v2, 0.0 }
 0xb37   :  { %2954 = vadd.xlane.f32.xlu2 %v2953_v54 }
 0xb92   :  { %v2951_v13 = vpop.xlane.xlu1 %2950 }
 0xb93   :  { %v2956_v16 = vmax.f32 %v2951_v13, 1e-16 }
 0xb95   :  { %3866 = vrsqrt.f32 %v2956_v16  ;;  %vm2963_vm15 = vweird.f32 %v2956_v16 }
 0xb9b   :  { %v3867_v31 = vpop.eup %3866 }
 0xb9c   :  { %v2958_v3 = vmul.f32 %v3867_v31, %v2956_v16  ;;  %vm2964_vm0 = vweird.f32 %v3867_v31 }
 0xb9d   :  { %vm2965_vm2 = vmor %vm2963_vm15, %vm2964_vm0 }
 0xb9e   :  { %v2959_v23 = vmul.f32 %v3867_v31, %v2958_v3 }
 0xba0   :  { %v2960_v41 = vmul.f32 0.5, %v2959_v23 }
 0xba2   :  { %v2961_v52 = vsub.f32 1.5, %v2960_v41 }
 0xba4   :  { %v2962_v22 = vmul.f32 %v3867_v31, %v2961_v52 }
 0xba6   :  { %v2966_v11 = vsel %vm2965_vm2, %v3867_v31, %v2962_v22 }
 0xba7   :  { %v2967_v28 = vmul.f32 %v3863_v55, %v2966_v11 }
 0xbaa   :  { %v2955_v33 = vpop.xlane.xlu2 %2954 }
 0xbab   :  { %v2968_v6 = vmax.f32 %v2955_v33, 1e-16 }
 0xbad   :  { %3868 = vrsqrt.f32 %v2968_v6  ;;  %vm2975_vm3 = vweird.f32 %v2968_v6 }
 0xbae   :  { %3870 = vrcp.f32 %v3908_v42 }
 0xbb3   :  { %v3869_v17 = vpop.eup %3868 }
 0xbb4   :  { %v2970_v59 = vmul.f32 %v3869_v17, %v2968_v6  ;;  %vm2976_vm1 = vweird.f32 %v3869_v17  ;;  %v3871_v32 = vpop.eup %3870 }
 0xbb5   :  { %vm2977_vm4 = vmor %vm2975_vm3, %vm2976_vm1  ;;  %v3001_v43 = vmul.f32 0.05, %v3871_v32  ;;  %vm3005_vm5 = vweird.f32 %v3871_v32 }
 0xbb6   :  { %v2971_v26 = vmul.f32 %v3869_v17, %v2970_v59 }
 0xbb7   :  { %v3002_v49 = vsub.f32 1.0, %v3001_v43 }
 0xbb8   :  { %v2972_v34 = vmul.f32 0.5, %v2971_v26 }
 0xbb9   :  { %v3003_v46 = vmul.f32 %v3871_v32, %v3002_v49 }
 0xbba   :  { %v2973_v24 = vsub.f32 1.5, %v2972_v34 }
 0xbbb   :  { %v3004_v37 = vadd.f32 %v3871_v32, %v3003_v46 }
 0xbbc   :  { %v2974_v38 = vmul.f32 %v3869_v17, %v2973_v24 }
 0xbbd   :  { %v3006_v14 = vsel %vm3005_vm5, %v3871_v32, %v3004_v37 }
 0xbbe   :  { %v2978_v58 = vsel %vm2977_vm4, %v3869_v17, %v2974_v38 }
 0xbbf   :  { %v2979_v8 = vmul.f32 %v3865_v4, %v2978_v58 }
 0xbc1   :  { %2995 = vmatpush.xpose.msrb.mxu2 %v2979_v8 }
 0xbc4   :  { %2996 = vmatmul.f32.vlgmr.msrb.gmra.mxu2 %v2967_v28 }
 0xc47   :  { %v2997_v18 = vpop.f32.mrf.mxu2 }
 0xc48   :  { %v3007_v29 = vmul.f32 %v3006_v14, %v2997_v18 }
 0xc4a   :  { %v3009_v50 = vsel %vm3008_vm7, %v3007_v29, -inf  ;;  %v3028_v30 = vmul.f32 %v3482_v20, %v3007_v29 }
 0xc4b   :  { %3010 = vmax.xlane.f32.xlu0 %v3009_v50 }
 0xc4c   :  { %v3029_v19 = vsel %vm3008_vm7, %v3028_v30, 0.0 }
 0xc4d   :  { %3030 = vadd.xlane.f32.xlu1 %v3029_v19 }
 0xcbe   :  { %v3011_v62 = vpop.xlane.xlu0 %3010 }
 0xcbf   :  { %v3012_v56 = vsub.f32 %v3007_v29, %v3011_v62 }
 0xcc0   :  { %v3031_v21 = vpop.xlane.xlu1 %3030 }
 0xcc1   :  { %v3013_v15 = vmul.f32 1.442695, %v3012_v56 }
 0xcc3   :  { %3872 = vpow2.f32 %v3013_v15 }
 0xcc9   :  { %v3873_v35 = vpop.eup %3872 }
 0xcca   :  { %v3015_v47 = vsel %vm3008_vm7, %v3873_v35, 0.0 }
 0xccb   :  { %3016 = vadd.xlane.f32.xlu2 %v3015_v47 }
 0xd3e   :  { %v3017_v40 = vpop.xlane.xlu2 %3016 }
 0xd3f   :  { %3874 = vlog2.f32 %v3017_v40 }
 0xd40   :  { %3876 = vrcp.f32 %v3910_v5 }
 0xd45   :  { %v3875_v60 = vpop.eup %3874 }
 0xd46   :  { %v3019_v9 = vmul.f32 0.6931472, %v3875_v60  ;;  %v3877_v25 = vpop.eup %3876 }
 0xd47   :  { %v3046_v48 = vmul.f32 2.0, %v3877_v25  ;;  %vm3050_vm9 = vweird.f32 %v3877_v25 }
 0xd48   :  { %v3020_v36 = vadd.f32 %v3019_v9, %v3011_v62 }
 0xd49   :  { %v3047_v10 = vsub.f32 1.0, %v3046_v48 }
 0xd4a   :  { %v3032_v27 = vsub.f32 %v3020_v36, %v3031_v21 }
 0xd4b   :  { %v3048_v12 = vmul.f32 %v3877_v25, %v3047_v10 }
 0xd4c   :  { %v3034_v39 = vsel %vm3033_vm8, %v3032_v27, 0.0 }
 0xd4d   :  { %3035 = vadd.xlane.f32.xlu0 %v3034_v39  ;;  %v3049_v4 = vadd.f32 %v3877_v25, %v3048_v12 }
 0xd4f   :  { %v3051_v2 = vsel %vm3050_vm9, %v3877_v25, %v3049_v4 }
 0xdc0   :  { %v3036_v57 = vpop.xlane.xlu0 %3035 }
 0xdc1   :  { %v3037_v63 = vrot.slane %v3036_v57, 4 }
 0xdc3   :  { %v3038_v53 = vadd.f32 %v3037_v63, %v3036_v57 }
 0xdc5   :  { %v3039_v55 = vrot.slane %v3038_v53, 2 }
 0xdc7   :  { %v3040_v51 = vadd.f32 %v3039_v55, %v3038_v53 }
 0xdc9   :  { %v3041_v44 = vrot.slane %v3040_v51, 1 }
 0xdcb   :  { %v3042_v7 = vadd.f32 %v3041_v44, %v3040_v51 }
 0xdcd   :  { %3572 = vpush %v3042_v7 }
 0xdfe   :  { %s3573_s1 = spop %3572 }
 0xdff   :  { %v3044_v54 = vstv %s3573_s1 }
 0xe00   :  { %v3052_v13 = vmul.f32 %v3051_v2, %v3044_v54 }
 0xe02   :  { %3054 = vst.msk [vmem:[#allocation2] sm:$0x1] %vm3053_vm11, %v3052_v13 }
 0xe03   :  { %3067 = dma.vmem_to_hbm [thread:$0]  %s3063_s23, 16, %s3065_s17, [#allocation3]  }
 0xe04   :  { %3902 = dma.done.wait [#allocation3], 16  }
 0xe05   :  { %3903 = vsyncadd [#allocation3], 4294967280 }
 0xe06   :  { %3074 = vsyncpa [#allocation3], 1 }

</bundles_post_ra>
